<compile_context>
chip_gen: v6e
topology: v6e:2x2x1
jax: 0.10.0
libtpu: 0.0.40
codegen_flags: <defaults>
</compile_context>

<pallas_src>
import math

import numpy as np
import jax
import jax.numpy as jnp
from jax import lax
from jax.experimental import pallas as pl
from jax.experimental.pallas import tpu as pltpu


# ------------------------------ Pallas kernel ------------------------------ #

def _sppelan_kernel(x_ref, w1_ref, b1_ref, w5_ref, b5_ref, o_ref, pad_ref):
    # x_ref  : [1, H, W, C1]          input tile (one batch element)
    # w1_ref : [C1, C3]     bf16      cv1 1x1 weight, BN scale folded in
    # b1_ref : [1, C3]      f32       cv1 folded BN bias
    # w5_ref : [4*C3, C2]   bf16      cv5 1x1 weight, BN scale folded in
    # b5_ref : [1, C2]      f32       cv5 folded BN bias
    # o_ref  : [1, H*W, C2] f32
    # pad_ref: VMEM [H+4, W+4, C3] f32 scratch (padded plane for the pools)
    _, H, W, C1 = x_ref.shape
    C3 = w1_ref.shape[1]

    # ---- cv1: 1x1 conv (BN scale pre-folded) + bias + SiLU ---------------- #
    x = x_ref[0].reshape(H * W, C1).astype(jnp.bfloat16)
    y1 = jnp.dot(x, w1_ref[...], preferred_element_type=jnp.float32)
    y1 = y1 + b1_ref[...]
    y1 = y1 * jax.nn.sigmoid(y1)                      # [H*W, C3] f32

    # ---- three chained 5x5 / stride-1 / pad-2 max-pools ------------------- #
    # The scratch border stays at a very negative value (acts as -inf for max);
    # only the interior is rewritten before each pool.
    pad_ref[...] = jnp.full(pad_ref.shape, -3.0e38, jnp.float32)

    def maxpool5x5(y):                                # y: [H, W, C3] f32
        pad_ref[2:2 + H, 2:2 + W, :] = y
        r = pad_ref[0:H, :, :]                        # separable: rows first
        for kh in range(1, 5):
            r = jnp.maximum(r, pad_ref[kh:kh + H, :, :])
        c = r[:, 0:W, :]                              # then cols
        for kw in range(1, 5):
            c = jnp.maximum(c, r[:, kw:kw + W, :])
        return c                                      # [H, W, C3] f32

    y1_img = y1.reshape(H, W, C3)
    y2 = maxpool5x5(y1_img)
    y3 = maxpool5x5(y2)
    y4 = maxpool5x5(y3)

    # ---- concat(4*C3) + cv5: single K=4*C3 matmul + bias + SiLU ----------- #
    cat = jnp.concatenate(
        [y1.astype(jnp.bfloat16),
         y2.reshape(H * W, C3).astype(jnp.bfloat16),
         y3.reshape(H * W, C3).astype(jnp.bfloat16),
         y4.reshape(H * W, C3).astype(jnp.bfloat16)],
        axis=-1)                                      # [H*W, 4*C3] bf16
    out = jnp.dot(cat, w5_ref[...], preferred_element_type=jnp.float32)
    out = out + b5_ref[...]
    out = out * jax.nn.sigmoid(out)
    o_ref[0] = out.astype(o_ref.dtype)


# ------------------------------ Forward wrapper ----------------------------- #

def sppelan_forward(x_nchw, params):
    """SPPELAN forward.  x_nchw: [N, c1, H, W] -> [N, c2, H, W]."""
    x = jnp.transpose(x_nchw, (0, 2, 3, 1)).astype(jnp.float32)   # NHWC
    N, H, W, C1 = x.shape
    C3 = params["w1"].shape[1]
    C2 = params["w5"].shape[1]

    out = pl.pallas_call(
        _sppelan_kernel,
        out_shape=jax.ShapeDtypeStruct((N, H * W, C2), jnp.float32),
        grid=(N,),
        in_specs=[
            pl.BlockSpec((1, H, W, C1), lambda n: (n, 0, 0, 0)),
            pl.BlockSpec((C1, C3), lambda n: (0, 0)),
            pl.BlockSpec((1, C3), lambda n: (0, 0)),
            pl.BlockSpec((4 * C3, C2), lambda n: (0, 0)),
            pl.BlockSpec((1, C2), lambda n: (0, 0)),
        ],
        out_specs=pl.BlockSpec((1, H * W, C2), lambda n: (n, 0, 0)),
        scratch_shapes=[pltpu.VMEM((H + 4, W + 4, C3), jnp.float32)],
        compiler_params=pltpu.CompilerParams(
            dimension_semantics=("parallel",)),
    )(x, params["w1"], params["b1"], params["w5"], params["b5"])

    out = out.reshape(N, H, W, C2)
    return jnp.transpose(out, (0, 3, 1, 2))                        # NCHW


# --------------------------- Deterministic parameters ----------------------- #

def init_params(key, c1, c2, c3):
    """Conv (= Conv2d bias=False + BN + SiLU) params with BN scale folded into
    the 1x1 conv weights (eval-mode BN)."""
    ks = jax.random.split(key, 10)

    w1_oi = jax.random.normal(ks[0], (c3, c1), jnp.float32) / math.sqrt(c1)
    w5_oi = jax.random.normal(ks[1], (c2, 4 * c3), jnp.float32) / math.sqrt(4 * c3)

    def folded_bn(kg, kb, km, kv, c):
        gamma = 1.0 + 0.1 * jax.random.normal(kg, (c,), jnp.float32)
        beta = 0.1 * jax.random.normal(kb, (c,), jnp.float32)
        mean = 0.1 * jax.random.normal(km, (c,), jnp.float32)
        var = jnp.abs(jax.random.normal(kv, (c,), jnp.float32)) + 0.5
        scale = gamma / jnp.sqrt(var + 1e-5)
        bias = beta - mean * scale
        return scale, bias

    s1, b1 = folded_bn(ks[2], ks[3], ks[4], ks[5], c3)
    s5, b5 = folded_bn(ks[6], ks[7], ks[8], ks[9], c2)

    # Fold BN scale into weights; layout [in, out] for x @ W.
    w1 = (w1_oi * s1[:, None]).T.astype(jnp.bfloat16)    # [c1, c3]
    w5 = (w5_oi * s5[:, None]).T.astype(jnp.bfloat16)    # [4*c3, c2]
    return {
        "w1": w1, "b1": b1.reshape(1, c3),
        "w5": w5, "b5": b5.reshape(1, c2),
    }


# ----------------------------- Pure-JAX reference --------------------------- #

def sppelan_reference(x_nchw, params):
    """Reference SPPELAN (eval-mode BN folded; same bf16 matmul inputs as the
    kernel so tolerances stay tight)."""
    x = jnp.transpose(x_nchw, (0, 2, 3, 1)).astype(jnp.float32)    # NHWC
    N, H, W, C1 = x.shape
    C3 = params["w1"].shape[1]

    y1 = jnp.dot(x.reshape(-1, C1).astype(jnp.bfloat16), params["w1"],
                 preferred_element_type=jnp.float32).reshape(N, H, W, C3)
    y1 = y1 + params["b1"]
    y1 = y1 * jax.nn.sigmoid(y1)

    def mp5(t):
        return lax.reduce_window(t, -jnp.inf, lax.max, (1, 5, 5, 1),
                                 (1, 1, 1, 1),
                                 ((0, 0), (2, 2), (2, 2), (0, 0)))

    y2 = mp5(y1)
    y3 = mp5(y2)
    y4 = mp5(y3)

    cat = jnp.concatenate([y1, y2, y3, y4], axis=-1)               # [N,H,W,4*C3]
    C4 = cat.shape[-1]
    out = jnp.dot(cat.reshape(-1, C4).astype(jnp.bfloat16), params["w5"],
                  preferred_element_type=jnp.float32).reshape(N, H, W, -1)
    out = out + params["b5"]
    out = out * jax.nn.sigmoid(out)
    return jnp.transpose(out, (0, 3, 1, 2))


# ------------------------------------ Main ----------------------------------- #

if __name__ == "__main__":
    N, C1, H, W = 2, 32, 16, 16
    C3, C2 = 16, 32          # SPPELAN(c1=32, c2=32, c3=16, k=5)

    key = jax.random.PRNGKey(0)
    kx, kp = jax.random.split(key)
    x = jax.random.normal(kx, (N, C1, H, W), jnp.float32)
    params = init_params(kp, C1, C2, C3)

    out = sppelan_forward(x, params)
    out = jax.block_until_ready(out)

    assert out.shape == (N, C2, H, W), out.shape
    ref = sppelan_reference(x, params)
    np.testing.assert_allclose(np.asarray(out), np.asarray(ref),
                               rtol=2e-3, atol=2e-3)

    print("KERNEL_OK")
</pallas_src>

<mosaic_0001>
module attributes {stable_mosaic.version = 11 : i64} {
  func.func @_sppelan_kernel(%arg0: i32, %arg1: memref<1x16x16x32xf32, #tpu.memory_space<vmem>>, %arg2: memref<32x16xbf16, #tpu.memory_space<vmem>>, %arg3: memref<1x16xf32, #tpu.memory_space<vmem>>, %arg4: memref<64x32xbf16, #tpu.memory_space<vmem>>, %arg5: memref<1x32xf32, #tpu.memory_space<vmem>>, %arg6: memref<1x256x32xf32, #tpu.memory_space<vmem>>, %arg7: memref<20x20x16xf32, #tpu.memory_space<vmem>>) attributes {dimension_semantics = [#tpu.dimension_semantics<parallel>], iteration_bounds = array<i64: 2>, scalar_prefetch = 0 : i64, scratch_operands = 1 : i64, tpu.core_type = #tpu.core_type<tc>, window_params = [{transform_indices = @transform_0, window_bounds = array<i64: 1, 16, 16, 32>}, {pipeline_mode = #tpu.pipeline_mode<synchronous>, transform_indices = @transform_1, window_bounds = array<i64: 32, 16>}, {pipeline_mode = #tpu.pipeline_mode<synchronous>, transform_indices = @transform_2, window_bounds = array<i64: 1, 16>}, {pipeline_mode = #tpu.pipeline_mode<synchronous>, transform_indices = @transform_3, window_bounds = array<i64: 64, 32>}, {pipeline_mode = #tpu.pipeline_mode<synchronous>, transform_indices = @transform_4, window_bounds = array<i64: 1, 32>}, {transform_indices = @transform_5, window_bounds = array<i64: 1, 256, 32>}]} {
    %c0 = arith.constant 0 : index
    %c0_0 = arith.constant 0 : index
    %c0_1 = arith.constant 0 : index
    %c0_2 = arith.constant 0 : index
    %0 = vector.load %arg1[%c0, %c0_0, %c0_1, %c0_2] : memref<1x16x16x32xf32, #tpu.memory_space<vmem>>, vector<1x16x16x32xf32>
    %1 = vector.shape_cast %0 : vector<1x16x16x32xf32> to vector<16x16x32xf32>
    %2 = vector.shape_cast %1 : vector<16x16x32xf32> to vector<256x32xf32>
    %3 = arith.truncf %2 : vector<256x32xf32> to vector<256x32xbf16>
    %c0_3 = arith.constant 0 : index
    %c0_4 = arith.constant 0 : index
    %4 = vector.load %arg2[%c0_3, %c0_4] : memref<32x16xbf16, #tpu.memory_space<vmem>>, vector<32x16xbf16>
    %cst = arith.constant dense<0.000000e+00> : vector<256x16xf32>
    %5 = tpu.matmul %3, %4, %cst {dimension_numbers = #tpu.dot_dimension_numbers<[1], [0], [0], [1], [0, 0, 1, 1], [], []>} : vector<256x32xbf16>, vector<32x16xbf16>, vector<256x16xf32> -> vector<256x16xf32>
    %c0_5 = arith.constant 0 : index
    %c0_6 = arith.constant 0 : index
    %6 = vector.load %arg3[%c0_5, %c0_6] : memref<1x16xf32, #tpu.memory_space<vmem>>, vector<1x16xf32>
    %7 = vector.broadcast %6 : vector<1x16xf32> to vector<256x16xf32>
    %8 = arith.addf %5, %7 : vector<256x16xf32>
    %9 = arith.negf %8 : vector<256x16xf32>
    %10 = math.exp %9 : vector<256x16xf32>
    %cst_7 = arith.constant 1.000000e+00 : f32
    %11 = vector.broadcast %cst_7 : f32 to vector<256x16xf32>
    %12 = arith.addf %11, %10 : vector<256x16xf32>
    %13 = arith.divf %11, %12 : vector<256x16xf32>
    %14 = arith.mulf %8, %13 : vector<256x16xf32>
    %cst_8 = arith.constant -3.000000e+38 : f32
    %15 = vector.broadcast %cst_8 : f32 to vector<20x20x16xf32>
    %c0_9 = arith.constant 0 : index
    %c0_10 = arith.constant 0 : index
    %c0_11 = arith.constant 0 : index
    %16 = vector.load %arg7[%c0_9, %c0_10, %c0_11] : memref<20x20x16xf32, #tpu.memory_space<vmem>>, vector<20x20x16xf32>
    tpu.vector_store %arg7[%c0_9, %c0_10, %c0_11], %15 {strides = array<i32>} : memref<20x20x16xf32, #tpu.memory_space<vmem>>, vector<20x20x16xf32>,
    %17 = vector.shape_cast %14 : vector<256x16xf32> to vector<16x16x16xf32>
    %c2 = arith.constant 2 : index
    %c2_12 = arith.constant 2 : index
    %c0_13 = arith.constant 0 : index
    %18 = vector.load %arg7[%c2, %c2_12, %c0_13] : memref<20x20x16xf32, #tpu.memory_space<vmem>>, vector<16x16x16xf32>
    tpu.vector_store %arg7[%c2, %c2_12, %c0_13], %17 {strides = array<i32>} : memref<20x20x16xf32, #tpu.memory_space<vmem>>, vector<16x16x16xf32>,
    %c0_14 = arith.constant 0 : index
    %c0_15 = arith.constant 0 : index
    %c0_16 = arith.constant 0 : index
    %19 = vector.load %arg7[%c0_14, %c0_15, %c0_16] : memref<20x20x16xf32, #tpu.memory_space<vmem>>, vector<16x20x16xf32>
    %c1 = arith.constant 1 : index
    %c0_17 = arith.constant 0 : index
    %c0_18 = arith.constant 0 : index
    %20 = vector.load %arg7[%c1, %c0_17, %c0_18] : memref<20x20x16xf32, #tpu.memory_space<vmem>>, vector<16x20x16xf32>
    %21 = arith.maximumf %19, %20 : vector<16x20x16xf32>
    %c2_19 = arith.constant 2 : index
    %c0_20 = arith.constant 0 : index
    %c0_21 = arith.constant 0 : index
    %22 = vector.load %arg7[%c2_19, %c0_20, %c0_21] : memref<20x20x16xf32, #tpu.memory_space<vmem>>, vector<16x20x16xf32>
    %23 = arith.maximumf %21, %22 : vector<16x20x16xf32>
    %c3 = arith.constant 3 : index
    %c0_22 = arith.constant 0 : index
    %c0_23 = arith.constant 0 : index
    %24 = vector.load %arg7[%c3, %c0_22, %c0_23] : memref<20x20x16xf32, #tpu.memory_space<vmem>>, vector<16x20x16xf32>
    %25 = arith.maximumf %23, %24 : vector<16x20x16xf32>
    %c4 = arith.constant 4 : index
    %c0_24 = arith.constant 0 : index
    %c0_25 = arith.constant 0 : index
    %26 = vector.load %arg7[%c4, %c0_24, %c0_25] : memref<20x20x16xf32, #tpu.memory_space<vmem>>, vector<16x20x16xf32>
    %27 = arith.maximumf %25, %26 : vector<16x20x16xf32>
    %28 = vector.extract_strided_slice %27 {offsets = [0, 0, 0], sizes = [16, 16, 16], strides = [1, 1, 1]} : vector<16x20x16xf32> to vector<16x16x16xf32>
    %29 = vector.extract_strided_slice %27 {offsets = [0, 1, 0], sizes = [16, 16, 16], strides = [1, 1, 1]} : vector<16x20x16xf32> to vector<16x16x16xf32>
    %30 = arith.maximumf %28, %29 : vector<16x16x16xf32>
    %31 = vector.extract_strided_slice %27 {offsets = [0, 2, 0], sizes = [16, 16, 16], strides = [1, 1, 1]} : vector<16x20x16xf32> to vector<16x16x16xf32>
    %32 = arith.maximumf %30, %31 : vector<16x16x16xf32>
    %33 = vector.extract_strided_slice %27 {offsets = [0, 3, 0], sizes = [16, 16, 16], strides = [1, 1, 1]} : vector<16x20x16xf32> to vector<16x16x16xf32>
    %34 = arith.maximumf %32, %33 : vector<16x16x16xf32>
    %35 = vector.extract_strided_slice %27 {offsets = [0, 4, 0], sizes = [16, 16, 16], strides = [1, 1, 1]} : vector<16x20x16xf32> to vector<16x16x16xf32>
    %36 = arith.maximumf %34, %35 : vector<16x16x16xf32>
    %c2_26 = arith.constant 2 : index
    %c2_27 = arith.constant 2 : index
    %c0_28 = arith.constant 0 : index
    %37 = vector.load %arg7[%c2_26, %c2_27, %c0_28] : memref<20x20x16xf32, #tpu.memory_space<vmem>>, vector<16x16x16xf32>
    tpu.vector_store %arg7[%c2_26, %c2_27, %c0_28], %36 {strides = array<i32>} : memref<20x20x16xf32, #tpu.memory_space<vmem>>, vector<16x16x16xf32>,
    %c0_29 = arith.constant 0 : index
    %c0_30 = arith.constant 0 : index
    %c0_31 = arith.constant 0 : index
    %38 = vector.load %arg7[%c0_29, %c0_30, %c0_31] : memref<20x20x16xf32, #tpu.memory_space<vmem>>, vector<16x20x16xf32>
    %c1_32 = arith.constant 1 : index
    %c0_33 = arith.constant 0 : index
    %c0_34 = arith.constant 0 : index
    %39 = vector.load %arg7[%c1_32, %c0_33, %c0_34] : memref<20x20x16xf32, #tpu.memory_space<vmem>>, vector<16x20x16xf32>
    %40 = arith.maximumf %38, %39 : vector<16x20x16xf32>
    %c2_35 = arith.constant 2 : index
    %c0_36 = arith.constant 0 : index
    %c0_37 = arith.constant 0 : index
    %41 = vector.load %arg7[%c2_35, %c0_36, %c0_37] : memref<20x20x16xf32, #tpu.memory_space<vmem>>, vector<16x20x16xf32>
    %42 = arith.maximumf %40, %41 : vector<16x20x16xf32>
    %c3_38 = arith.constant 3 : index
    %c0_39 = arith.constant 0 : index
    %c0_40 = arith.constant 0 : index
    %43 = vector.load %arg7[%c3_38, %c0_39, %c0_40] : memref<20x20x16xf32, #tpu.memory_space<vmem>>, vector<16x20x16xf32>
    %44 = arith.maximumf %42, %43 : vector<16x20x16xf32>
    %c4_41 = arith.constant 4 : index
    %c0_42 = arith.constant 0 : index
    %c0_43 = arith.constant 0 : index
    %45 = vector.load %arg7[%c4_41, %c0_42, %c0_43] : memref<20x20x16xf32, #tpu.memory_space<vmem>>, vector<16x20x16xf32>
    %46 = arith.maximumf %44, %45 : vector<16x20x16xf32>
    %47 = vector.extract_strided_slice %46 {offsets = [0, 0, 0], sizes = [16, 16, 16], strides = [1, 1, 1]} : vector<16x20x16xf32> to vector<16x16x16xf32>
    %48 = vector.extract_strided_slice %46 {offsets = [0, 1, 0], sizes = [16, 16, 16], strides = [1, 1, 1]} : vector<16x20x16xf32> to vector<16x16x16xf32>
    %49 = arith.maximumf %47, %48 : vector<16x16x16xf32>
    %50 = vector.extract_strided_slice %46 {offsets = [0, 2, 0], sizes = [16, 16, 16], strides = [1, 1, 1]} : vector<16x20x16xf32> to vector<16x16x16xf32>
    %51 = arith.maximumf %49, %50 : vector<16x16x16xf32>
    %52 = vector.extract_strided_slice %46 {offsets = [0, 3, 0], sizes = [16, 16, 16], strides = [1, 1, 1]} : vector<16x20x16xf32> to vector<16x16x16xf32>
    %53 = arith.maximumf %51, %52 : vector<16x16x16xf32>
    %54 = vector.extract_strided_slice %46 {offsets = [0, 4, 0], sizes = [16, 16, 16], strides = [1, 1, 1]} : vector<16x20x16xf32> to vector<16x16x16xf32>
    %55 = arith.maximumf %53, %54 : vector<16x16x16xf32>
    %c2_44 = arith.constant 2 : index
    %c2_45 = arith.constant 2 : index
    %c0_46 = arith.constant 0 : index
    %56 = vector.load %arg7[%c2_44, %c2_45, %c0_46] : memref<20x20x16xf32, #tpu.memory_space<vmem>>, vector<16x16x16xf32>
    tpu.vector_store %arg7[%c2_44, %c2_45, %c0_46], %55 {strides = array<i32>} : memref<20x20x16xf32, #tpu.memory_space<vmem>>, vector<16x16x16xf32>,
    %c0_47 = arith.constant 0 : index
    %c0_48 = arith.constant 0 : index
    %c0_49 = arith.constant 0 : index
    %57 = vector.load %arg7[%c0_47, %c0_48, %c0_49] : memref<20x20x16xf32, #tpu.memory_space<vmem>>, vector<16x20x16xf32>
    %c1_50 = arith.constant 1 : index
    %c0_51 = arith.constant 0 : index
    %c0_52 = arith.constant 0 : index
    %58 = vector.load %arg7[%c1_50, %c0_51, %c0_52] : memref<20x20x16xf32, #tpu.memory_space<vmem>>, vector<16x20x16xf32>
    %59 = arith.maximumf %57, %58 : vector<16x20x16xf32>
    %c2_53 = arith.constant 2 : index
    %c0_54 = arith.constant 0 : index
    %c0_55 = arith.constant 0 : index
    %60 = vector.load %arg7[%c2_53, %c0_54, %c0_55] : memref<20x20x16xf32, #tpu.memory_space<vmem>>, vector<16x20x16xf32>
    %61 = arith.maximumf %59, %60 : vector<16x20x16xf32>
    %c3_56 = arith.constant 3 : index
    %c0_57 = arith.constant 0 : index
    %c0_58 = arith.constant 0 : index
    %62 = vector.load %arg7[%c3_56, %c0_57, %c0_58] : memref<20x20x16xf32, #tpu.memory_space<vmem>>, vector<16x20x16xf32>
    %63 = arith.maximumf %61, %62 : vector<16x20x16xf32>
    %c4_59 = arith.constant 4 : index
    %c0_60 = arith.constant 0 : index
    %c0_61 = arith.constant 0 : index
    %64 = vector.load %arg7[%c4_59, %c0_60, %c0_61] : memref<20x20x16xf32, #tpu.memory_space<vmem>>, vector<16x20x16xf32>
    %65 = arith.maximumf %63, %64 : vector<16x20x16xf32>
    %66 = vector.extract_strided_slice %65 {offsets = [0, 0, 0], sizes = [16, 16, 16], strides = [1, 1, 1]} : vector<16x20x16xf32> to vector<16x16x16xf32>
    %67 = vector.extract_strided_slice %65 {offsets = [0, 1, 0], sizes = [16, 16, 16], strides = [1, 1, 1]} : vector<16x20x16xf32> to vector<16x16x16xf32>
    %68 = arith.maximumf %66, %67 : vector<16x16x16xf32>
    %69 = vector.extract_strided_slice %65 {offsets = [0, 2, 0], sizes = [16, 16, 16], strides = [1, 1, 1]} : vector<16x20x16xf32> to vector<16x16x16xf32>
    %70 = arith.maximumf %68, %69 : vector<16x16x16xf32>
    %71 = vector.extract_strided_slice %65 {offsets = [0, 3, 0], sizes = [16, 16, 16], strides = [1, 1, 1]} : vector<16x20x16xf32> to vector<16x16x16xf32>
    %72 = arith.maximumf %70, %71 : vector<16x16x16xf32>
    %73 = vector.extract_strided_slice %65 {offsets = [0, 4, 0], sizes = [16, 16, 16], strides = [1, 1, 1]} : vector<16x20x16xf32> to vector<16x16x16xf32>
    %74 = arith.maximumf %72, %73 : vector<16x16x16xf32>
    %75 = arith.truncf %14 : vector<256x16xf32> to vector<256x16xbf16>
    %76 = vector.shape_cast %36 : vector<16x16x16xf32> to vector<256x16xf32>
    %77 = arith.truncf %76 : vector<256x16xf32> to vector<256x16xbf16>
    %78 = vector.shape_cast %55 : vector<16x16x16xf32> to vector<256x16xf32>
    %79 = arith.truncf %78 : vector<256x16xf32> to vector<256x16xbf16>
    %80 = vector.shape_cast %74 : vector<16x16x16xf32> to vector<256x16xf32>
    %81 = arith.truncf %80 : vector<256x16xf32> to vector<256x16xbf16>
    %82 = tpu.concatenate %75, %77, %79, %81 in 1 : vector<256x16xbf16>, vector<256x16xbf16>, vector<256x16xbf16>, vector<256x16xbf16> -> vector<256x64xbf16>
    %c0_62 = arith.constant 0 : index
    %c0_63 = arith.constant 0 : index
    %83 = vector.load %arg4[%c0_62, %c0_63] : memref<64x32xbf16, #tpu.memory_space<vmem>>, vector<64x32xbf16>
    %cst_64 = arith.constant dense<0.000000e+00> : vector<256x32xf32>
    %84 = tpu.matmul %82, %83, %cst_64 {dimension_numbers = #tpu.dot_dimension_numbers<[1], [0], [0], [1], [0, 0, 1, 1], [], []>} : vector<256x64xbf16>, vector<64x32xbf16>, vector<256x32xf32> -> vector<256x32xf32>
    %c0_65 = arith.constant 0 : index
    %c0_66 = arith.constant 0 : index
    %85 = vector.load %arg5[%c0_65, %c0_66] : memref<1x32xf32, #tpu.memory_space<vmem>>, vector<1x32xf32>
    %86 = vector.broadcast %85 : vector<1x32xf32> to vector<256x32xf32>
    %87 = arith.addf %84, %86 : vector<256x32xf32>
    %88 = arith.negf %87 : vector<256x32xf32>
    %89 = math.exp %88 : vector<256x32xf32>
    %cst_67 = arith.constant 1.000000e+00 : f32
    %90 = vector.broadcast %cst_67 : f32 to vector<256x32xf32>
    %91 = arith.addf %90, %89 : vector<256x32xf32>
    %92 = arith.divf %90, %91 : vector<256x32xf32>
    %93 = arith.mulf %87, %92 : vector<256x32xf32>
    %c0_68 = arith.constant 0 : index
    %c0_69 = arith.constant 0 : index
    %c0_70 = arith.constant 0 : index
    %94 = vector.load %arg6[%c0_68, %c0_69, %c0_70] : memref<1x256x32xf32, #tpu.memory_space<vmem>>, vector<1x256x32xf32>
    %95 = vector.shape_cast %94 : vector<1x256x32xf32> to vector<256x32xf32>
    %96 = vector.shape_cast %93 : vector<256x32xf32> to vector<1x256x32xf32>
    tpu.vector_store %arg6[%c0_68, %c0_69, %c0_70], %96 {strides = array<i32>} : memref<1x256x32xf32, #tpu.memory_space<vmem>>, vector<1x256x32xf32>,
    return
  }
  func.func @transform_0(%arg0: i32) -> (i32, i32, i32, i32) {
    %c0_i32 = arith.constant 0 : i32
    %c0_i32_0 = arith.constant 0 : i32
    %c0_i32_1 = arith.constant 0 : i32
    %c0_i32_2 = arith.constant 0 : i32
    return %arg0, %c0_i32, %c0_i32_0, %c0_i32_1 : i32, i32, i32, i32
  }
  func.func @transform_1(%arg0: i32) -> (i32, i32) {
    %c0_i32 = arith.constant 0 : i32
    %c0_i32_0 = arith.constant 0 : i32
    %c0_i32_1 = arith.constant 0 : i32
    return %c0_i32, %c0_i32_0 : i32, i32
  }
  func.func @transform_2(%arg0: i32) -> (i32, i32) {
    %c0_i32 = arith.constant 0 : i32
    %c0_i32_0 = arith.constant 0 : i32
    %c0_i32_1 = arith.constant 0 : i32
    return %c0_i32, %c0_i32_0 : i32, i32
  }
  func.func @transform_3(%arg0: i32) -> (i32, i32) {
    %c0_i32 = arith.constant 0 : i32
    %c0_i32_0 = arith.constant 0 : i32
    %c0_i32_1 = arith.constant 0 : i32
    return %c0_i32, %c0_i32_0 : i32, i32
  }
  func.func @transform_4(%arg0: i32) -> (i32, i32) {
    %c0_i32 = arith.constant 0 : i32
    %c0_i32_0 = arith.constant 0 : i32
    %c0_i32_1 = arith.constant 0 : i32
    return %c0_i32, %c0_i32_0 : i32, i32
  }
  func.func @transform_5(%arg0: i32) -> (i32, i32, i32) {
    %c0_i32 = arith.constant 0 : i32
    %c0_i32_0 = arith.constant 0 : i32
    %c0_i32_1 = arith.constant 0 : i32
    return %arg0, %c0_i32, %c0_i32_0 : i32, i32, i32
  }
}

</mosaic_0001>

<bundles_post_ra>
// kernel: tpu_custom_call.1
= control target key start
LH: loop header
LB: loop body
LE: loop exit
PB: predicated region body
PF: predicated region fallthrough
CT: control target
= control target key end

     0   :  { %10 = vsyncpa [#allocation4], 0  ;;  %s8215_s0 = inlined_call_operand.hbm [shape: f32[2,16,16,32], index: 0, kind: input, shape index: {}]   ;;  %s8216_s1 = inlined_call_operand.vmem [shape: bf16[32,16], index: 1, kind: input, shape index: {}]   ;;  %s8217_s2 = inlined_call_operand.vmem [shape: f32[1,16], index: 2, kind: input, shape index: {}]   ;;  %s8218_s3 = inlined_call_operand.vmem [shape: bf16[64,32], index: 3, kind: input, shape index: {}]   ;;  %s8219_s4 = inlined_call_operand.vmem [shape: f32[1,32], index: 4, kind: input, shape index: {}]   ;;  %s8220_s5 = inlined_call_operand.vmem [shape: f32[2,256,32], index: 5, kind: output, shape index: {}]  }
   0x1   :  { %12 = vsyncpa [#allocation4 + $0x1], 0  ;;  %s5604_s18 = smov 0   ;;  %s5606_s19 = smov 0  }
   0x2   :  { %s5608_s20 = smov 0   ;;  %s5610_s21 = smov 0  }
   0x3 LB: > { %s5623_s22 = sadd.s32 4294967295, %s5565_s21   ;;  %s5626_s23 = sadd.s32 1, %s5565_s21   ;;  %s5565_s21 = sphi %s5610_s21, %s8385_s21   ;;  %s5561_s20 = sphi %s5608_s20, %s8384_s20   ;;  %s5557_s19 = sphi %s5606_s19, %s8383_s19   ;;  %s5553_s18 = sphi %s5604_s18, %s8382_s18  }
   0x4   : > { %s22_s24 = ssub.s32 %s5565_s21, %s5626_s23  ;;  %s25_s25 = sadd.s32 1, %s5561_s20 }
   0x5   : > { %p23_p0 = scmp.eq.s32.totalorder %s22_s24, 0  ;;  %p32_p1 = scmp.ne.s32.totalorder %s5561_s20, %s5557_s19 }
   0x6   : > { %p33_p2 = scmp.eq.s32.totalorder %s5565_s21, 0  ;;  %p38_p3 = scmp.ne.s32.totalorder %s5557_s19, %s5553_s18 }
   0x7   : > { %s5636_s26 = scalar_select %p23_p0, %s5561_s20, %s25_s25  }
   0x8   : > { %p34_p4 = por %p33_p2, %p32_p1  ;;  %p39_p5 = scmp.eq.s32.totalorder %s5623_s22, 0 }
   0x9   : > { %p5200_p6 = scmp.lt.s32.totalorder %s5565_s21, 2  ;;  %s184_s28 = sand.u32 1, %s5561_s20  }
   0xa   : > { %p5640_p7 = por %p39_p5, %p38_p3  ;;  %s4965_s29 = sshll.u32 %s184_s28, 8 }
   0xb   : > { %s5078_s30 = sshll.u32 %s5565_s21, 12  ;;  %s188_s9 = scalar_lea.vmem [#allocation3], %s4965_s29 }
   0xc   : > { %s8261_s27 = scalar_select %p5640_p7, 1, 0 }
   0xd   : > { %s5649_s8 = scalar_lea.hbm %s8215_s0, %s5078_s30  ;;  %s195_s10 = sshll.u32 %s188_s9, 4  ;;  %s5651_s10 = int_to_ptr.vmem [resolvable:$true] %s195_s10 }
   0xe   : > { %p5653_p8 = pnand %p5200_p6, %p34_p4  ;;  %s5658_s12 = scalar_lea.sflag [#allocation4], %s184_s28 }
   0xf   : > { %s5503_s13 = scalar_lea.hbm %s5649_s8, 4096  ;;  %s5508_s16 = scalar_lea.hbm %s8215_s0, 8192 }
  0x10   : > { %p5504_p10 = scmp.ne.s32.totalorder %s5649_s8, %s5503_s13  ;;  %p5505_p11 = pneg %p5653_p8 }
  0x11   : > { %p5509_p0 = scmp.lt.s32.totalorder %s5649_s8, %s8215_s0  ;;  %p5510_p1 = scmp.lt.s32.totalorder %s5508_s16, %s5503_s13 }
  0x12   : > { %p5506_p12 = pnand %p5505_p11, %p5504_p10 }
  0x13   : > { %p5511_p2 = por %p5510_p1, %p5509_p0 }
  0x14   : > { %p5507_p13 = pneg %p5506_p12 }
  0x16   : > { %p5512_p3 = pnand %p5511_p2, %p5507_p13 }
  0x18   : > { %5515 = shalt.err (!%p5512_p3)
}
  0x19   : > { %s5516_s24 = scalar_lea.vmem %s5651_s10, 4096  ;;  %s5567_s25 = smov [#allocation3]  }
  0x1a   : > { %p5517_p4 = scmp.ne.s32.totalorder %s5651_s10, %s5516_s24  ;;  %s5521_s28 = sshll.u32 %s5567_s25, 4  ;;  %s5522_s28 = int_to_ptr.vmem [resolvable:$false] %s5521_s28 }
  0x1b   : > { %s5523_s29 = scalar_lea.vmem %s5522_s28, 8192  ;;  %p5524_p10 = scmp.lt.s32.totalorder %s5651_s10, %s5522_s28 }
  0x1c   : > { %p5519_p5 = pnand %p5517_p4, %p5505_p11  ;;  %p5525_p12 = scmp.lt.s32.totalorder %s5523_s29, %s5516_s24 }
  0x1e   : > { %p5520_p6 = pneg %p5519_p5  ;;  %p5526_p9 = por %p5525_p12, %p5524_p10 }
  0x20   : > { %p5527_p7 = pnand %p5526_p9, %p5520_p6 }
  0x22   : > { %5530 = shalt.err (!%p5527_p7)
}
  0x23   : > { %s5568_s30 = smov 128   ;;  %s5569_s6 = smov 8  }
  0x24   : > { %5199 = dma.hbm_to_vmem [thread:$0]  (!%p5653_p8), %s5649_s8, 4096, %s5651_s10, %s5658_s12, %s5568_s30, %s5568_s30, %s5569_s6  }
  0x25   : > { %p203_p11 = scmp.lt.s32.totalorder %s5565_s21, 3  ;;  %p8263_p13 = scmp.ge.s32.totalorder %s5565_s21, 1 }
  0x27   : > { %p204_p0 = pnand %p8263_p13, %p203_p11 }
  0x29   : > { %207 = sbr.rel (%p204_p0) target bundleno = 1178 (0x49a), region = 40 }
  0x2e   : > { %s209_s7 = sand.u32 1, %s5557_s19   ;;  %p8264_p7 = scmp.ne.s32.totalorder %s8261_s27, 0 }
  0x2f   : > { %s4969_s9 = sshll.u32 %s209_s7, 8  ;;  %s210_s13 = scalar_lea.sflag [#allocation4], %s209_s7 }
  0x30   : > { %s5683_s14 = scalar_lea.vmem [#allocation3], %s4969_s9 }
  0x31   : > { %5548 = dma.done.wait (%p8264_p7), %s210_s13, 4096  }
  0x32   : > { %5550 = vsyncadd (%p8264_p7), %s210_s13, 4294963200  ;;  %v5239_v0 = vld [vmem:[%s8216_s1 + $0x8] sm:$0xff]   ;;  %v5240_v1 = vld [vmem:[%s8216_s1] sm:$0xff]   ;;  %vm317_vm0 = vcmask 261120   ;;  %vm751_vm1 = vcmask 130048   ;;  %vm754_vm2 = vcmask 125952  }
  0x33   : > { %5118 = vmatprep.subr.bf16.mxu0 %v5239_v0  ;;  %v246_v2 = vld [vmem:[%s5683_s14] sm:$0xff]  ;;  %v247_v3 = vld [vmem:[%s5683_s14 + $0x8] sm:$0xff]  ;;  %v248_v5 = vld [vmem:[%s5683_s14 + $0x10] sm:$0xff]  ;;  %v5570_v50 = vmov -3e+38   ;;  %vm1329_vm3 = vcmask 1046528  }
  0x34   : > { %5119 = vmatpush3.bf16.msra.mxu0 %v5239_v0  ;;  %v278_v4 = vpack.c.bf16 %v247_v3, %v246_v2  ;;  %v249_v6 = vld [vmem:[%s5683_s14 + $0x18] sm:$0xff]  ;;  %v250_v7 = vld [vmem:[%s5683_s14 + $0x20] sm:$0xff]  ;;  %v251_v8 = vld [vmem:[%s5683_s14 + $0x28] sm:$0xff]  ;;  %762 = vst.msk [vmem:[#allocation2 + $0x48] sm:$0xff] %vm751_vm1, %v5570_v50  ;;  %vm1474_vm4 = vcmask 1045504   ;;  %vm1619_vm5 = vcmask 1044480  }
  0x35   : > { %5120 = vmatprep.subr.bf16.mxu0 %v5240_v1  ;;  %v279_v9 = vpack.c.bf16 %v249_v6, %v248_v5  ;;  %v280_v10 = vpack.c.bf16 %v251_v8, %v250_v7  ;;  %v252_v11 = vld [vmem:[%s5683_s14 + $0x30] sm:$0xff]  ;;  %v253_v12 = vld [vmem:[%s5683_s14 + $0x38] sm:$0xff]  ;;  %v254_v13 = vld [vmem:[%s5683_s14 + $0x40] sm:$0xff]  ;;  %763 = vst.msk [vmem:[#allocation2 + $0x50] sm:$0xff] %vm751_vm1, %v5570_v50  ;;  %vm1764_vm6 = vcmask 1043456   ;;  %s5571_s11 = smov 16  }
  0x36   : > { %5122 = vmatprep.mubr.msk.bf16.mxu0 %vm317_vm0, %v278_v4  ;;  %v255_v14 = vld [vmem:[%s5683_s14 + $0x48] sm:$0xff]  ;;  %v281_v15 = vpack.c.bf16 %v253_v12, %v252_v11  ;;  %v256_v17 = vld [vmem:[%s5683_s14 + $0x50] sm:$0xff]  ;;  %v257_v18 = vld [vmem:[%s5683_s14 + $0x58] sm:$0xff]  ;;  %752 = vst.msk [vmem:[#allocation2] sm:$0xff] %vm751_vm1, %v5570_v50  ;;  %s5572_s12 = smov 32   ;;  %s5573_s17 = smov 48  }
  0x37   : > { %v282_v16 = vpack.c.bf16 %v255_v14, %v254_v13  ;;  %v258_v19 = vld [vmem:[%s5683_s14 + $0x60] sm:$0xff]  ;;  %v259_v20 = vld [vmem:[%s5683_s14 + $0x68] sm:$0xff]  ;;  %v283_v21 = vpack.c.bf16 %v257_v18, %v256_v17  ;;  %v260_v23 = vld [vmem:[%s5683_s14 + $0x70] sm:$0xff]  ;;  %753 = vst.msk [vmem:[#allocation2 + $0x8] sm:$0xff] %vm751_vm1, %v5570_v50  ;;  %vm4373_vm7 = vcmask 392192   ;;  %vm4445_vm8 = vcmask 523264  }
  0x38   : > { %5121 = vmatpush3.bf16.msra.mxu0 %v5240_v1  ;;  %v284_v22 = vpack.c.bf16 %v259_v20, %v258_v19  ;;  %v261_v24 = vld [vmem:[%s5683_s14 + $0x78] sm:$0xff]  ;;  %v262_v25 = vld [vmem:[%s5683_s14 + $0x80] sm:$0xff]  ;;  %v263_v26 = vld [vmem:[%s5683_s14 + $0x88] sm:$0xff]  ;;  %756 = vst.msk [vmem:[#allocation2 + $0x18] sm:$0xff] %vm751_vm1, %v5570_v50  ;;  %p240_p8 = scmp.lt.s32.totalorder %s5623_s22, 1 }
  0x39   : > { %v285_v27 = vpack.c.bf16 %v261_v24, %v260_v23  ;;  %v286_v28 = vpack.c.bf16 %v263_v26, %v262_v25  ;;  %v264_v29 = vld [vmem:[%s5683_s14 + $0x90] sm:$0xff]  ;;  %v265_v30 = vld [vmem:[%s5683_s14 + $0x98] sm:$0xff]  ;;  %v266_v31 = vld [vmem:[%s5683_s14 + $0xa0] sm:$0xff]  ;;  %757 = vst.msk [vmem:[#allocation2 + $0x20] sm:$0xff] %vm751_vm1, %v5570_v50 }
  0x3a   : > { %v267_v32 = vld [vmem:[%s5683_s14 + $0xa8] sm:$0xff]  ;;  %v287_v33 = vpack.c.bf16 %v265_v30, %v264_v29  ;;  %v268_v35 = vld [vmem:[%s5683_s14 + $0xb0] sm:$0xff]  ;;  %v269_v36 = vld [vmem:[%s5683_s14 + $0xb8] sm:$0xff]  ;;  %759 = vst.msk [vmem:[#allocation2 + $0x30] sm:$0xff] %vm751_vm1, %v5570_v50  ;;  %s8387_s22 = smov (!%p240_p8, %s5623_s22), 1 }
  0x3b   : > { %5123 = vmatmul.mubr.msk.bf16.vlgmr.msra.gmra.mxu0 %vm317_vm0, %v279_v9  ;;  %v288_v34 = vpack.c.bf16 %v267_v32, %v266_v31  ;;  %v270_v37 = vld [vmem:[%s5683_s14 + $0xc0] sm:$0xff]  ;;  %v271_v38 = vld [vmem:[%s5683_s14 + $0xc8] sm:$0xff]  ;;  %v289_v39 = vpack.c.bf16 %v269_v36, %v268_v35  ;;  %v272_v41 = vld [vmem:[%s5683_s14 + $0xd0] sm:$0xff]  ;;  %760 = vst.msk [vmem:[#allocation2 + $0x38] sm:$0xff] %vm751_vm1, %v5570_v50 }
  0x3c   : > { %5126 = vmatprep.mubr.msk.bf16.mxu0 %vm317_vm0, %v280_v10  ;;  %v290_v40 = vpack.c.bf16 %v271_v38, %v270_v37  ;;  %v273_v42 = vld [vmem:[%s5683_s14 + $0xd8] sm:$0xff]  ;;  %v274_v43 = vld [vmem:[%s5683_s14 + $0xe0] sm:$0xff]  ;;  %v275_v44 = vld [vmem:[%s5683_s14 + $0xe8] sm:$0xff]  ;;  %765 = vst.msk [vmem:[#allocation2 + $0x60] sm:$0xff] %vm751_vm1, %v5570_v50 }
  0x3d   : > { %v291_v45 = vpack.c.bf16 %v273_v42, %v272_v41  ;;  %v292_v46 = vpack.c.bf16 %v275_v44, %v274_v43  ;;  %v276_v47 = vld [vmem:[%s5683_s14 + $0xf0] sm:$0xff]  ;;  %v277_v48 = vld [vmem:[%s5683_s14 + $0xf8] sm:$0xff]  ;;  %766 = vst.msk [vmem:[#allocation2 + $0x68] sm:$0xff] %vm751_vm1, %v5570_v50  ;;  %768 = vst.msk [vmem:[#allocation2 + $0x78] sm:$0xff] %vm751_vm1, %v5570_v50  ;;  %s5079_s14 = sshll.u32 %s8387_s22, 8 }
  0x3e   : > { %v293_v49 = vpack.c.bf16 %v277_v48, %v276_v47  ;;  %769 = vst.msk [vmem:[#allocation2 + $0x80] sm:$0xff] %vm751_vm1, %v5570_v50  ;;  %771 = vst.msk [vmem:[#allocation2 + $0x90] sm:$0xff] %vm751_vm1, %v5570_v50  ;;  %v5806_v51 = vld [vmem:[%s8217_s2] ss:$0 sm:$0xff]  ;;  %s8091_s16 = scalar_lea.vmem %s8220_s5, %s5079_s14 }
  0x3f   : > { %772 = vst.msk [vmem:[#allocation2 + $0x98] sm:$0xff] %vm751_vm1, %v5570_v50  ;;  %774 = vst.msk [vmem:[#allocation2 + $0xa8] sm:$0xff] %vm751_vm1, %v5570_v50 }
  0x40   : > { %775 = vst.msk [vmem:[#allocation2 + $0xb0] sm:$0xff] %vm751_vm1, %v5570_v50  ;;  %777 = vst.msk [vmem:[#allocation2 + $0xc0] sm:$0xff] %vm751_vm1, %v5570_v50 }
  0x41   : > { %778 = vst.msk [vmem:[#allocation2 + $0xc8] sm:$0xff] %vm751_vm1, %v5570_v50  ;;  %780 = vst.msk [vmem:[#allocation2 + $0xd8] sm:$0xff] %vm751_vm1, %v5570_v50 }
  0x42   : > { %781 = vst.msk [vmem:[#allocation2 + $0xe0] sm:$0xff] %vm751_vm1, %v5570_v50  ;;  %783 = vst.msk [vmem:[#allocation2 + $0xf0] sm:$0xff] %vm751_vm1, %v5570_v50 }
  0x43   : > { %5127 = vmatmul.mubr.msk.bf16.gmra.mxu0 %vm317_vm0, %v281_v15  ;;  %784 = vst.msk [vmem:[#allocation2 + $0xf8] sm:$0xff] %vm751_vm1, %v5570_v50  ;;  %786 = vst.msk [vmem:[#allocation2 + $0x108] sm:$0xff] %vm751_vm1, %v5570_v50 }
  0x44   : > { %5130 = vmatprep.mubr.msk.bf16.mxu0 %vm317_vm0, %v282_v16  ;;  %787 = vst.msk [vmem:[#allocation2 + $0x110] sm:$0xff] %vm751_vm1, %v5570_v50  ;;  %789 = vst.msk [vmem:[#allocation2 + $0x120] sm:$0xff] %vm751_vm1, %v5570_v50 }
  0x45   : > { %790 = vst.msk [vmem:[#allocation2 + $0x128] sm:$0xff] %vm751_vm1, %v5570_v50  ;;  %792 = vst.msk [vmem:[#allocation2 + $0x138] sm:$0xff] %vm751_vm1, %v5570_v50 }
  0x46   : > { %793 = vst.msk [vmem:[#allocation2 + $0x140] sm:$0xff] %vm751_vm1, %v5570_v50  ;;  %795 = vst.msk [vmem:[#allocation2 + $0x150] sm:$0xff] %vm751_vm1, %v5570_v50 }
  0x47   : > { %796 = vst.msk [vmem:[#allocation2 + $0x158] sm:$0xff] %vm751_vm1, %v5570_v50  ;;  %798 = vst.msk [vmem:[#allocation2 + $0x168] sm:$0xff] %vm751_vm1, %v5570_v50 }
  0x48   : > { %799 = vst.msk [vmem:[#allocation2 + $0x170] sm:$0xff] %vm751_vm1, %v5570_v50  ;;  %801 = vst.msk [vmem:[#allocation2 + $0x180] sm:$0xff] %vm751_vm1, %v5570_v50 }
  0x49   : > { %802 = vst.msk [vmem:[#allocation2 + $0x188] sm:$0xff] %vm751_vm1, %v5570_v50  ;;  %804 = vst.msk [vmem:[#allocation2 + $0x198] sm:$0xff] %vm751_vm1, %v5570_v50 }
  0x4a   : > { %805 = vst.msk [vmem:[#allocation2 + $0x1a0] sm:$0xff] %vm751_vm1, %v5570_v50  ;;  %807 = vst.msk [vmem:[#allocation2 + $0x1b0] sm:$0xff] %vm751_vm1, %v5570_v50 }
  0x4b   : > { %5131 = vmatmul.mubr.msk.bf16.gmra.mxu0 %vm317_vm0, %v283_v21  ;;  %808 = vst.msk [vmem:[#allocation2 + $0x1b8] sm:$0xff] %vm751_vm1, %v5570_v50  ;;  %810 = vst.msk [vmem:[#allocation2 + $0x1c8] sm:$0xff] %vm751_vm1, %v5570_v50 }
  0x4c   : > { %5134 = vmatprep.mubr.msk.bf16.mxu0 %vm317_vm0, %v284_v22  ;;  %811 = vst.msk [vmem:[#allocation2 + $0x1d0] sm:$0xff] %vm751_vm1, %v5570_v50 }
  0x4d   : > { %764 = vst.msk [vmem:[#allocation2 + $0x58] sm:$0xf] %vm754_vm2, %v5570_v50  ;;  %755 = vst.msk [vmem:[#allocation2 + $0x10] sm:$0xf] %vm754_vm2, %v5570_v50 }
  0x4e   : > { %758 = vst.msk [vmem:[#allocation2 + $0x28] sm:$0xf] %vm754_vm2, %v5570_v50  ;;  %761 = vst.msk [vmem:[#allocation2 + $0x40] sm:$0xf] %vm754_vm2, %v5570_v50 }
  0x4f   : > { %767 = vst.msk [vmem:[#allocation2 + $0x70] sm:$0xf] %vm754_vm2, %v5570_v50  ;;  %770 = vst.msk [vmem:[#allocation2 + $0x88] sm:$0xf] %vm754_vm2, %v5570_v50 }
  0x50   : > { %773 = vst.msk [vmem:[#allocation2 + $0xa0] sm:$0xf] %vm754_vm2, %v5570_v50  ;;  %776 = vst.msk [vmem:[#allocation2 + $0xb8] sm:$0xf] %vm754_vm2, %v5570_v50 }
  0x51   : > { %779 = vst.msk [vmem:[#allocation2 + $0xd0] sm:$0xf] %vm754_vm2, %v5570_v50  ;;  %782 = vst.msk [vmem:[#allocation2 + $0xe8] sm:$0xf] %vm754_vm2, %v5570_v50 }
  0x52   : > { %785 = vst.msk [vmem:[#allocation2 + $0x100] sm:$0xf] %vm754_vm2, %v5570_v50  ;;  %788 = vst.msk [vmem:[#allocation2 + $0x118] sm:$0xf] %vm754_vm2, %v5570_v50 }
  0x53   : > { %5135 = vmatmul.mubr.msk.bf16.gmra.mxu0 %vm317_vm0, %v285_v27  ;;  %791 = vst.msk [vmem:[#allocation2 + $0x130] sm:$0xf] %vm754_vm2, %v5570_v50  ;;  %794 = vst.msk [vmem:[#allocation2 + $0x148] sm:$0xf] %vm754_vm2, %v5570_v50 }
  0x54   : > { %5138 = vmatprep.mubr.msk.bf16.mxu0 %vm317_vm0, %v286_v28  ;;  %797 = vst.msk [vmem:[#allocation2 + $0x160] sm:$0xf] %vm754_vm2, %v5570_v50  ;;  %800 = vst.msk [vmem:[#allocation2 + $0x178] sm:$0xf] %vm754_vm2, %v5570_v50 }
  0x55   : > { %803 = vst.msk [vmem:[#allocation2 + $0x190] sm:$0xf] %vm754_vm2, %v5570_v50  ;;  %806 = vst.msk [vmem:[#allocation2 + $0x1a8] sm:$0xf] %vm754_vm2, %v5570_v50 }
  0x56   : > { %809 = vst.msk [vmem:[#allocation2 + $0x1c0] sm:$0xf] %vm754_vm2, %v5570_v50  ;;  %812 = vst.msk [vmem:[#allocation2 + $0x1d8] sm:$0xf] %vm754_vm2, %v5570_v50 }
  0x5b   : > { %5139 = vmatmul.mubr.msk.bf16.gmra.mxu0 %vm317_vm0, %v287_v33 }
  0x5c   : > { %5142 = vmatprep.mubr.msk.bf16.mxu0 %vm317_vm0, %v288_v34 }
  0x63   : > { %5143 = vmatmul.mubr.msk.bf16.gmra.mxu0 %vm317_vm0, %v289_v39 }
  0x64   : > { %5146 = vmatprep.mubr.msk.bf16.mxu0 %vm317_vm0, %v290_v40 }
  0x6b   : > { %5147 = vmatmul.mubr.msk.bf16.gmra.mxu0 %vm317_vm0, %v291_v45 }
  0x6c   : > { %5150 = vmatprep.mubr.msk.bf16.mxu0 %vm317_vm0, %v292_v46 }
  0x73   : > { %5151 = vmatmul.mubr.msk.bf16.gmra.mxu0 %vm317_vm0, %v293_v49 }
  0xfb   : > { %v5124_v52 = vpop.f32.mrf.mxu0 }
  0xfc   : > { %v5809_v53 = vadd.f32 %v5124_v52, %v5806_v51 }
  0xfd   : > { %v400_v54 = vpop.f32.mrf.mxu0 }
  0xfe   : > { %v4993_v55 = vmul.f32 -1.442695, %v5809_v53  ;;  %v5813_v56 = vadd.f32 %v5806_v51, %v400_v54 }
  0xff   : > { %v5125_v57 = vpop.f32.mrf.mxu0 }
 0x100   : > { %5245 = vpow2.f32 %v4993_v55  ;;  %v4991_v58 = vmul.f32 -1.442695, %v5813_v56  ;;  %v5817_v59 = vadd.f32 %v5125_v57, %v5806_v51 }
 0x101   : > { %v403_v60 = vpop.f32.mrf.mxu0 }
 0x102   : > { %5247 = vpow2.f32 %v4991_v58  ;;  %v4994_v61 = vmul.f32 -1.442695, %v5817_v59  ;;  %v5821_v62 = vadd.f32 %v5806_v51, %v403_v60 }
 0x103   : > { %v5128_v63 = vpop.f32.mrf.mxu0 }
 0x104   : > { %5249 = vpow2.f32 %v4994_v61  ;;  %v4992_v0 = vmul.f32 -1.442695, %v5821_v62  ;;  %v5825_v1 = vadd.f32 %v5128_v63, %v5806_v51 }
 0x105   : > { %v416_v2 = vpop.f32.mrf.mxu0 }
 0x106   : > { %5251 = vpow2.f32 %v4992_v0  ;;  %v4997_v3 = vmul.f32 -1.442695, %v5825_v1  ;;  %v5829_v4 = vadd.f32 %v5806_v51, %v416_v2 }
 0x107   : > { %v5129_v5 = vpop.f32.mrf.mxu0 }
 0x108   : > { %5253 = vpow2.f32 %v4997_v3  ;;  %v4995_v6 = vmul.f32 -1.442695, %v5829_v4  ;;  %v5833_v7 = vadd.f32 %v5129_v5, %v5806_v51 }
 0x109   : > { %v419_v8 = vpop.f32.mrf.mxu0 }
 0x10a   : > { %5255 = vpow2.f32 %v4995_v6  ;;  %v4998_v9 = vmul.f32 -1.442695, %v5833_v7  ;;  %v5837_v10 = vadd.f32 %v5806_v51, %v419_v8 }
 0x10b   : > { %v5132_v11 = vpop.f32.mrf.mxu0 }
 0x10c   : > { %5257 = vpow2.f32 %v4998_v9  ;;  %v4996_v12 = vmul.f32 -1.442695, %v5837_v10  ;;  %v5841_v13 = vadd.f32 %v5132_v11, %v5806_v51 }
 0x10d   : > { %v5246_v14 = vpop.eup %5245  ;;  %v432_v15 = vpop.f32.mrf.mxu0 }
 0x10e   : > { %v625_v16 = vadd.f32 1.0, %v5246_v14  ;;  %5259 = vpow2.f32 %v4996_v12  ;;  %v5001_v17 = vmul.f32 -1.442695, %v5841_v13  ;;  %v5845_v18 = vadd.f32 %v5806_v51, %v432_v15 }
 0x10f   : > { %v5248_v19 = vpop.eup %5247  ;;  %v5133_v20 = vpop.f32.mrf.mxu0 }
 0x110   : > { %5261 = vrcp.f32 %v625_v16  ;;  %v623_v21 = vadd.f32 1.0, %v5248_v19  ;;  %v4999_v22 = vmul.f32 -1.442695, %v5845_v18  ;;  %v5849_v23 = vadd.f32 %v5133_v20, %v5806_v51 }
 0x111   : > { %v5250_v24 = vpop.eup %5249  ;;  %5263 = vpow2.f32 %v5001_v17  ;;  %v435_v25 = vpop.f32.mrf.mxu0 }
 0x112   : > { %5265 = vrcp.f32 %v623_v21  ;;  %v626_v26 = vadd.f32 1.0, %v5250_v24  ;;  %v5002_v27 = vmul.f32 -1.442695, %v5849_v23  ;;  %v5853_v28 = vadd.f32 %v5806_v51, %v435_v25 }
 0x113   : > { %v5252_v29 = vpop.eup %5251  ;;  %5267 = vpow2.f32 %v4999_v22  ;;  %v5136_v30 = vpop.f32.mrf.mxu0 }
 0x114   : > { %5269 = vrcp.f32 %v626_v26  ;;  %v624_v31 = vadd.f32 1.0, %v5252_v29  ;;  %v5000_v32 = vmul.f32 -1.442695, %v5853_v28  ;;  %v5857_v33 = vadd.f32 %v5136_v30, %v5806_v51  ;;  %v846_v26 = vld [vmem:[#allocation2] sm:$0xff] }
 0x115   : > { %v5254_v34 = vpop.eup %5253  ;;  %5271 = vpow2.f32 %v5002_v27  ;;  %v448_v35 = vpop.f32.mrf.mxu0  ;;  %v5908_v27 = vld [vmem:[#allocation2 + $0x18] sm:$0xff] }
 0x116   : > { %5273 = vrcp.f32 %v624_v31  ;;  %v629_v36 = vadd.f32 1.0, %v5254_v34  ;;  %v5005_v37 = vmul.f32 -1.442695, %v5857_v33  ;;  %v5861_v38 = vadd.f32 %v5806_v51, %v448_v35  ;;  %v847_v34 = vld [vmem:[#allocation2 + $0x8] sm:$0xff] }
 0x117   : > { %v5256_v39 = vpop.eup %5255  ;;  %5275 = vpow2.f32 %v5000_v32  ;;  %v5137_v40 = vpop.f32.mrf.mxu0 }
 0x118   : > { %5277 = vrcp.f32 %v629_v36  ;;  %v627_v41 = vadd.f32 1.0, %v5256_v39  ;;  %v5003_v42 = vmul.f32 -1.442695, %v5861_v38  ;;  %v5865_v43 = vadd.f32 %v5137_v40, %v5806_v51  ;;  %v5923_v39 = vld [vmem:[#allocation2 + $0x10] sm:$0xf]  ;;  %v5925_v40 = vld [vmem:[#allocation2 + $0x20] sm:$0xff] }
 0x119   : > { %v5258_v44 = vpop.eup %5257  ;;  %5279 = vpow2.f32 %v5005_v37  ;;  %v451_v45 = vpop.f32.mrf.mxu0 }
 0x11a   : > { %5281 = vrcp.f32 %v627_v41  ;;  %v630_v46 = vadd.f32 1.0, %v5258_v44  ;;  %v5006_v47 = vmul.f32 -1.442695, %v5865_v43  ;;  %v5869_v48 = vadd.f32 %v5806_v51, %v451_v45  ;;  %v5927_v41 = vld [vmem:[#allocation2 + $0x28] sm:$0xf] }
 0x11b   : > { %v5260_v49 = vpop.eup %5259  ;;  %5283 = vpow2.f32 %v5003_v42  ;;  %v5140_v50 = vpop.f32.mrf.mxu0 }
 0x11c   : > { %5285 = vrcp.f32 %v630_v46  ;;  %v628_v52 = vadd.f32 1.0, %v5260_v49  ;;  %v5004_v54 = vmul.f32 -1.442695, %v5869_v48  ;;  %v5873_v55 = vadd.f32 %v5140_v50, %v5806_v51 }
 0x11d   : > { %v5262_v57 = vpop.eup %5261  ;;  %5287 = vpow2.f32 %v5006_v47  ;;  %v464_v58 = vpop.f32.mrf.mxu0  ;;  %v5931_v47 = vmax.f32 %v846_v26, %v5908_v27 }
 0x11e   : > { %v5264_v60 = vpop.eup %5263  ;;  %v5876_v61 = vmul.f32 %v5262_v57, %v5809_v53  ;;  %5289 = vrcp.f32 %v628_v52  ;;  %v5009_v63 = vmul.f32 -1.442695, %v5873_v55  ;;  %v5880_v0 = vadd.f32 %v5806_v51, %v464_v58 }
 0x11f   : > { %v5266_v2 = vpop.eup %5265  ;;  %v633_v3 = vadd.f32 1.0, %v5264_v60  ;;  %5291 = vpow2.f32 %v5004_v54  ;;  %v5141_v5 = vpop.f32.mrf.mxu0  ;;  %v5943_v60 = vmax.f32 %v847_v34, %v5925_v40 }
 0x120   : > { %8265 = vst [vmem:[#allocation6_spill] sm:$0xff] %v5876_v61  ;;  %v5268_v6 = vpop.eup %5267  ;;  %816 = vst.msk [vmem:[#allocation2 + $0x4a] sm:$0xff] %vm751_vm1, %v5876_v61  ;;  %v5885_v8 = vmul.f32 %v5266_v2, %v5813_v56  ;;  %5293 = vpow2.f32 %v5009_v63  ;;  %v5007_v53 = vmul.f32 -1.442695, %v5880_v0  ;;  %v5889_v9 = vadd.f32 %v5141_v5, %v5806_v51 }
 0x121   : > { %v5270_v11 = vpop.eup %5269  ;;  %5295 = vrcp.f32 %v633_v3  ;;  %v631_v12 = vadd.f32 1.0, %v5268_v6  ;;  %v467_v14 = vpop.f32.mrf.mxu0  ;;  %v945_v63 = vmax.f32 %v5923_v39, %v5927_v41 }
 0x122   : > { %8266 = vst [vmem:[#allocation7_spill] sm:$0xff] %v5885_v8  ;;  %v5272_v15 = vpop.eup %5271  ;;  %814 = vst.msk [vmem:[#allocation2 + $0x32] sm:$0xff] %vm751_vm1, %v5885_v8  ;;  %v5894_v16 = vmul.f32 %v5270_v11, %v5817_v59  ;;  %5297 = vpow2.f32 %v5007_v53  ;;  %v5010_v56 = vmul.f32 -1.442695, %v5889_v9  ;;  %v5898_v17 = vadd.f32 %v5806_v51, %v467_v14 }
 0x123   : > { %v5274_v19 = vpop.eup %5273  ;;  %5299 = vrcp.f32 %v631_v12  ;;  %v634_v20 = vadd.f32 1.0, %v5272_v15  ;;  %v5144_v21 = vpop.f32.mrf.mxu0 }
 0x124   : > { %8267 = vst [vmem:[#allocation8_spill] sm:$0xff] %v5894_v16  ;;  %v5276_v22 = vpop.eup %5275  ;;  %817 = vst.msk [vmem:[#allocation2 + $0x52] sm:$0xff] %vm751_vm1, %v5894_v16  ;;  %v5905_v59 = vmul.f32 %v5274_v19, %v5821_v62  ;;  %5301 = vpow2.f32 %v5010_v56  ;;  %v5008_v25 = vmul.f32 -1.442695, %v5898_v17  ;;  %v5911_v31 = vadd.f32 %v5144_v21, %v5806_v51 }
 0x125   : > { %v5278_v29 = vpop.eup %5277  ;;  %5303 = vrcp.f32 %v634_v20  ;;  %v632_v30 = vadd.f32 1.0, %v5276_v22  ;;  %v480_v32 = vpop.f32.mrf.mxu0 }
 0x126   : > { %8268 = vst [vmem:[#allocation9_spill] sm:$0xff] %v5905_v59  ;;  %v5280_v35 = vpop.eup %5279  ;;  %815 = vst.msk [vmem:[#allocation2 + $0x3a] sm:$0xff] %vm751_vm1, %v5905_v59  ;;  %v5918_v36 = vmul.f32 %v5278_v29, %v5825_v1  ;;  %5305 = vpow2.f32 %v5008_v25  ;;  %v5921_v37 = vadd.f32 %v5806_v51, %v480_v32  ;;  %v5013_v45 = vmul.f32 -1.442695, %v5911_v31 }
 0x127   : > { %v5282_v42 = vpop.eup %5281  ;;  %5307 = vrcp.f32 %v632_v30  ;;  %v637_v44 = vadd.f32 1.0, %v5280_v35  ;;  %v5145_v46 = vpop.f32.mrf.mxu0  ;;  %v5970_v21 = vld [vmem:[#allocation2 + $0x48] sm:$0xff] }
 0x128   : > { %8269 = vst [vmem:[#allocation10_spill] sm:$0xff] %v5918_v36  ;;  %v5284_v1 = vpop.eup %5283  ;;  %820 = vst.msk [vmem:[#allocation2 + $0x7a] sm:$0xff] %vm751_vm1, %v5918_v36  ;;  %v5936_v49 = vmul.f32 %v5282_v42, %v5829_v4  ;;  %v5011_v50 = vmul.f32 -1.442695, %v5921_v37  ;;  %v5940_v52 = vadd.f32 %v5145_v46, %v5806_v51 }
 0x129   : > { %v5286_v54 = vpop.eup %5285  ;;  %5309 = vrcp.f32 %v637_v44  ;;  %v635_v57 = vadd.f32 1.0, %v5284_v1  ;;  %v483_v58 = vpop.f32.mrf.mxu0  ;;  %v5947_v2 = vld [vmem:[#allocation2 + $0x30] sm:$0xff] }
 0x12a   : > { %8270 = vst [vmem:[#allocation11_spill] sm:$0xff] %v5936_v49  ;;  %v5288_v3 = vpop.eup %5287  ;;  %818 = vst.msk [vmem:[#allocation2 + $0x62] sm:$0xff] %vm751_vm1, %v5936_v49  ;;  %v5952_v4 = vmul.f32 %v5286_v54, %v5833_v7  ;;  %5311 = vpow2.f32 %v5013_v45  ;;  %v5014_v5 = vmul.f32 -1.442695, %v5940_v52  ;;  %v5956_v6 = vadd.f32 %v5806_v51, %v483_v58 }
 0x12b   : > { %v5290_v53 = vpop.eup %5289  ;;  %5313 = vrcp.f32 %v635_v57  ;;  %v638_v11 = vadd.f32 1.0, %v5288_v3  ;;  %v5148_v12 = vpop.f32.mrf.mxu0  ;;  %v1039_v14 = vmax.f32 %v5931_v47, %v5947_v2  ;;  %v5995_v3 = vld [vmem:[#allocation2 + $0x50] sm:$0xff] }
 0x12c   : > { %8271 = vst [vmem:[#allocation12_spill] sm:$0xff] %v5952_v4  ;;  %v5292_v56 = vpop.eup %5291  ;;  %821 = vst.msk [vmem:[#allocation2 + $0x82] sm:$0xff] %vm751_vm1, %v5952_v4  ;;  %v5967_v19 = vmul.f32 %v5290_v53, %v5837_v10  ;;  %5315 = vpow2.f32 %v5011_v50  ;;  %v5012_v20 = vmul.f32 -1.442695, %v5956_v6  ;;  %v5973_v26 = vadd.f32 %v5148_v12, %v5806_v51 }
 0x12d   : > { %v5294_v22 = vpop.eup %5293  ;;  %5317 = vrcp.f32 %v638_v11  ;;  %v636_v25 = vadd.f32 1.0, %v5292_v56  ;;  %v496_v29 = vpop.f32.mrf.mxu0  ;;  %v5975_v30 = vld [vmem:[#allocation2 + $0x38] sm:$0xff]  ;;  %v1136_v32 = vmax.f32 %v1039_v14, %v5970_v21  ;;  %v993_v41 = vld [vmem:[#allocation2 + $0x40] sm:$0xf] }
 0x12e   : > { %8272 = vst [vmem:[#allocation13_spill] sm:$0xff] %v5967_v19  ;;  %v5296_v34 = vpop.eup %5295  ;;  %819 = vst.msk [vmem:[#allocation2 + $0x6a] sm:$0xff] %vm751_vm1, %v5967_v19  ;;  %v641_v35 = vadd.f32 1.0, %v5294_v22  ;;  %5319 = vpow2.f32 %v5014_v5  ;;  %v5983_v39 = vadd.f32 %v5806_v51, %v496_v29  ;;  %v5017_v45 = vmul.f32 -1.442695, %v5973_v26 }
 0x12f   : > { %v5298_v42 = vpop.eup %5297  ;;  %v5986_v44 = vmul.f32 %v5296_v34, %v5841_v13  ;;  %5321 = vrcp.f32 %v636_v25  ;;  %v5149_v46 = vpop.f32.mrf.mxu0  ;;  %v1040_v1 = vmax.f32 %v5943_v60, %v5975_v30  ;;  %v1041_v11 = vmax.f32 %v945_v63, %v993_v41  ;;  %v1090_v34 = vld [vmem:[#allocation2 + $0x58] sm:$0xf] }
 0x130   : > { %v5300_v50 = vpop.eup %5299  ;;  %5323 = vrcp.f32 %v641_v35  ;;  %v639_v54 = vadd.f32 1.0, %v5298_v42  ;;  %v5015_v57 = vmul.f32 -1.442695, %v5983_v39  ;;  %v5993_v58 = vadd.f32 %v5149_v46, %v5806_v51 }
 0x131   : > { %8273 = vst [vmem:[#allocation14_spill] sm:$0xff] %v5986_v44  ;;  %v5302_v13 = vpop.eup %5301  ;;  %824 = vst.msk [vmem:[#allocation2 + $0xaa] sm:$0xff] %vm751_vm1, %v5986_v44  ;;  %v6000_v5 = vmul.f32 %v5300_v50, %v5845_v18  ;;  %5325 = vpow2.f32 %v5012_v20  ;;  %v499_v53 = vpop.f32.mrf.mxu0  ;;  %v1137_v12 = vmax.f32 %v1040_v1, %v5995_v3  ;;  %v6003_v14 = vld [vmem:[#allocation2 + $0x60] sm:$0xff]  ;;  %v1138_v20 = vmax.f32 %v1041_v11, %v1090_v34 }
 0x132   : > { %v5304_v56 = vpop.eup %5303  ;;  %5327 = vrcp.f32 %v639_v54  ;;  %v642_v22 = vadd.f32 1.0, %v5302_v13  ;;  %v5018_v25 = vmul.f32 -1.442695, %v5993_v58  ;;  %v6007_v29 = vadd.f32 %v5806_v51, %v499_v53 }
 0x133   : > { %8274 = vst [vmem:[#allocation15_spill] sm:$0xff] %v6000_v5  ;;  %v5306_v35 = vpop.eup %5305  ;;  %822 = vst.msk [vmem:[#allocation2 + $0x92] sm:$0xff] %vm751_vm1, %v6000_v5  ;;  %v6012_v18 = vmul.f32 %v5304_v56, %v5849_v23  ;;  %5329 = vpow2.f32 %v5017_v45  ;;  %v5152_v63 = vpop.f32.mrf.mxu0  ;;  %v6015_v41 = vmax.f32 %v1136_v32, %v6003_v14 }
 0x134   : > { %v5308_v42 = vpop.eup %5307  ;;  %5331 = vrcp.f32 %v642_v22  ;;  %v640_v46 = vadd.f32 1.0, %v5306_v35  ;;  %v5016_v1 = vmul.f32 -1.442695, %v6007_v29  ;;  %v6019_v50 = vadd.f32 %v5152_v63, %v5806_v51 }
 0x135   : > { %8275 = vst [vmem:[#allocation16_spill] sm:$0xff] %v6012_v18  ;;  %825 = vst.msk [vmem:[#allocation2 + $0xb2] sm:$0xff] %vm751_vm1, %v6012_v18  ;;  %v6026_v45 = vmul.f32 %v5308_v42, %v5853_v28  ;;  %5333 = vpow2.f32 %v5015_v57  ;;  %v512_v32 = vpop.f32.mrf.mxu0  ;;  %v6028_v54 = vld [vmem:[#allocation2 + $0x68] sm:$0xff]  ;;  %v1187_v13 = vld [vmem:[#allocation2 + $0x70] sm:$0xf]  ;;  %v1330_v53 = vrot.slane %v6015_v41, 1 }
 0x136   : > { %v5310_v11 = vpop.eup %5309  ;;  %5335 = vrcp.f32 %v640_v46  ;;  %v5021_v56 = vmul.f32 -1.442695, %v6019_v50  ;;  %v6033_v22 = vadd.f32 %v5806_v51, %v512_v32  ;;  %v6036_v34 = vmax.f32 %v1137_v12, %v6028_v54 }
 0x137   : > { %8276 = vst [vmem:[#allocation17_spill] sm:$0xff] %v6026_v45  ;;  %v5312_v28 = vpop.eup %5311  ;;  %823 = vst.msk [vmem:[#allocation2 + $0x9a] sm:$0xff] %vm751_vm1, %v6026_v45  ;;  %v6043_v35 = vmul.f32 %v5310_v11, %v5857_v33  ;;  %5337 = vpow2.f32 %v5018_v25  ;;  %v5153_v63 = vpop.f32.mrf.mxu0  ;;  %v6045_v42 = vmax.f32 %v1138_v20, %v1187_v13 }
 0x138   : > { %v5314_v46 = vpop.eup %5313  ;;  %v645_v32 = vadd.f32 1.0, %v5312_v28  ;;  %5339 = vpow2.f32 %v5016_v1  ;;  %v5019_v12 = vmul.f32 -1.442695, %v6033_v22  ;;  %v6049_v23 = vadd.f32 %v5153_v63, %v5806_v51 }
 0x139   : > { %8277 = vst [vmem:[#allocation18_spill] sm:$0xff] %v6043_v35  ;;  %v5316_v7 = vpop.eup %5315  ;;  %828 = vst.msk [vmem:[#allocation2 + $0xda] sm:$0xff] %vm751_vm1, %v6043_v35  ;;  %v6054_v33 = vmul.f32 %v5314_v46, %v5861_v38  ;;  %5341 = vpow2.f32 %v5021_v56  ;;  %v515_v25 = vpop.f32.mrf.mxu0  ;;  %v1331_v20 = vrot.slane %v6036_v34, 1  ;;  %v1333_v13 = vrot.slane %v6045_v42, 1 }
 0x13a   : > { %v5318_v11 = vpop.eup %5317  ;;  %5343 = vrcp.f32 %v645_v32  ;;  %v643_v1 = vadd.f32 1.0, %v5316_v7  ;;  %v5022_v28 = vmul.f32 -1.442695, %v6049_v23  ;;  %v6060_v63 = vadd.f32 %v5806_v51, %v515_v25 }
 0x13b   : > { %8278 = vst [vmem:[#allocation19_spill] sm:$0xff] %v6054_v33  ;;  %v5320_v57 = vpop.eup %5319  ;;  %826 = vst.msk [vmem:[#allocation2 + $0xc2] sm:$0xff] %vm751_vm1, %v6054_v33  ;;  %v6065_v38 = vmul.f32 %v5318_v11, %v5865_v43  ;;  %5345 = vpow2.f32 %v5019_v12  ;;  %v1332_v56 = vsel %vm1329_vm3, %v1330_v53, %v1331_v20  ;;  %v1334_v46 = vsel %vm1329_vm3, %v1331_v20, %v1333_v13 }
 0x13c   : > { %v5322_v32 = vpop.eup %5321  ;;  %5347 = vrcp.f32 %v643_v1  ;;  %v646_v7 = vadd.f32 1.0, %v5320_v57  ;;  %v5020_v10 = vmul.f32 -1.442695, %v6060_v63  ;;  %v1442_v51 = vmax.f32 %v6015_v41, %v1332_v56 }
 0x13d   : > { %8279 = vst [vmem:[#allocation20_spill] sm:$0xff] %v6065_v38  ;;  %v5324_v25 = vpop.eup %5323  ;;  %829 = vst.msk [vmem:[#allocation2 + $0xe2] sm:$0xff] %vm751_vm1, %v6065_v38  ;;  %v6076_v12 = vmul.f32 %v5322_v32, %v5869_v48  ;;  %5349 = vpow2.f32 %v5022_v28  ;;  %v1443_v53 = vmax.f32 %v6036_v34, %v1334_v46  ;;  %v1475_v13 = vrot.slane %v6015_v41, 2 }
 0x13e   : > { %v5326_v20 = vpop.eup %5325  ;;  %v6080_v57 = vmul.f32 %v5324_v25, %v5873_v55  ;;  %5351 = vrcp.f32 %v646_v7  ;;  %v1476_v11 = vrot.slane %v6036_v34, 2  ;;  %v1478_v28 = vrot.slane %v6045_v42, 2 }
 0x13f   : > { %8280 = vst [vmem:[#allocation21_spill] sm:$0xff] %v6076_v12  ;;  %v5328_v1 = vpop.eup %5327  ;;  %827 = vst.msk [vmem:[#allocation2 + $0xca] sm:$0xff] %vm751_vm1, %v6076_v12  ;;  %v644_v56 = vadd.f32 1.0, %v5326_v20  ;;  %5353 = vpow2.f32 %v5020_v10  ;;  %v1620_v7 = vrot.slane %v6015_v41, 3  ;;  %v1621_v25 = vrot.slane %v6036_v34, 3 }
 0x140   : > { %8281 = vst [vmem:[#allocation22_spill] sm:$0xff] %v6080_v57  ;;  %v5330_v46 = vpop.eup %5329  ;;  %832 = vst.msk [vmem:[#allocation2 + $0x10a] sm:$0xff] %vm751_vm1, %v6080_v57  ;;  %v6092_v55 = vmul.f32 %v5328_v1, %v5880_v0  ;;  %v1477_v32 = vsel %vm1474_vm4, %v1475_v13, %v1476_v11  ;;  %v1479_v10 = vsel %vm1474_vm4, %v1476_v11, %v1478_v28  ;;  %v1623_v1 = vrot.slane %v6045_v42, 3 }
 0x141   : > { %v5332_v43 = vpop.eup %5331  ;;  %5355 = vrcp.f32 %v644_v56  ;;  %v649_v48 = vadd.f32 1.0, %v5330_v46  ;;  %v1587_v20 = vmax.f32 %v1442_v51, %v1477_v32  ;;  %v1588_v0 = vmax.f32 %v1443_v53, %v1479_v10  ;;  %v851_v32 = vld [vmem:[#allocation2 + $0x28] sm:$0xf]  ;;  %v996_v51 = vld [vmem:[#allocation2 + $0x58] sm:$0xf] }
 0x142   : > { %8282 = vst [vmem:[#allocation23_spill] sm:$0xff] %v6092_v55  ;;  %v5334_v24 = vpop.eup %5333  ;;  %830 = vst.msk [vmem:[#allocation2 + $0xf2] sm:$0xff] %vm751_vm1, %v6092_v55  ;;  %v6101_v62 = vmul.f32 %v5332_v43, %v5889_v9  ;;  %v1622_v13 = vsel %vm1619_vm5, %v1620_v7, %v1621_v25  ;;  %v1765_v46 = vrot.slane %v6015_v41, 4  ;;  %v1624_v43 = vsel %vm1619_vm5, %v1621_v25, %v1623_v1  ;;  %v900_v7 = vld [vmem:[#allocation2 + $0x40] sm:$0xf] }
 0x143   : > { %v5336_v15 = vpop.eup %5335  ;;  %5357 = vrcp.f32 %v649_v48  ;;  %v647_v35 = vadd.f32 1.0, %v5334_v24  ;;  %v1732_v56 = vmax.f32 %v1587_v20, %v1622_v13  ;;  %v1766_v53 = vrot.slane %v6036_v34, 4 }
 0x144   : > { %8283 = vst [vmem:[#allocation24_spill] sm:$0xff] %v6101_v62  ;;  %v5338_v11 = vpop.eup %5337  ;;  %833 = vst.msk [vmem:[#allocation2 + $0x112] sm:$0xff] %vm751_vm1, %v6101_v62  ;;  %v6111_v9 = vmul.f32 %v5336_v15, %v5898_v17  ;;  %v1733_v48 = vmax.f32 %v1588_v0, %v1624_v43  ;;  %v1768_v41 = vrot.slane %v6045_v42, 4  ;;  %v947_v34 = vmax.f32 %v5925_v40, %v5975_v30 }
 0x145   : > { %v5340_v28 = vpop.eup %5339  ;;  %5359 = vrcp.f32 %v647_v35  ;;  %v650_v24 = vadd.f32 1.0, %v5338_v11  ;;  %v1767_v25 = vsel %vm1764_vm6, %v1765_v46, %v1766_v53  ;;  %v948_v43 = vmax.f32 %v851_v32, %v900_v7 }
 0x146   : > { %8284 = vst [vmem:[#allocation25_spill] sm:$0xff] %v6111_v9  ;;  %v5342_v10 = vpop.eup %5341  ;;  %831 = vst.msk [vmem:[#allocation2 + $0xfa] sm:$0xff] %vm751_vm1, %v6111_v9  ;;  %v648_v15 = vadd.f32 1.0, %v5340_v28  ;;  %v1769_v42 = vsel %vm1764_vm6, %v1766_v53, %v1768_v41  ;;  %v1877_v0 = vmax.f32 %v1732_v56, %v1767_v25  ;;  %v6127_v28 = vld [vmem:[#allocation2 + $0x40] sm:$0xf]  ;;  %v8286_v56 = vmax.f32 %v5908_v27, %v5947_v2 }
 0x147   : > { %v5344_v35 = vpop.eup %5343  ;;  %5361 = vrcp.f32 %v650_v24  ;;  %v653_v20 = vadd.f32 1.0, %v5342_v10  ;;  %v1878_v11 = vmax.f32 %v1733_v48, %v1769_v42  ;;  %v6129_v17 = vld [vmem:[#allocation2 + $0x108] sm:$0xff]  ;;  %v1093_v41 = vld [vmem:[#allocation2 + $0x70] sm:$0xf] }
 0x148   : > { %v5346_v13 = vpop.eup %5345  ;;  %v6125_v1 = vmul.f32 %v5344_v35, %v5911_v31  ;;  %5363 = vrcp.f32 %v648_v15  ;;  %v1042_v53 = vmax.f32 %v8286_v56, %v5970_v21  ;;  %v1043_v31 = vmax.f32 %v947_v34, %v5995_v3  ;;  %1909 = vst.msk [vmem:[#allocation2 + $0x32] sm:$0xff] %vm751_vm1, %v1877_v0 }
 0x149   : > { %v5348_v46 = vpop.eup %5347  ;;  %v6131_v40 = vld [vmem:[#allocation2 + $0xf0] sm:$0xff]  ;;  %5365 = vrcp.f32 %v653_v20  ;;  %v651_v24 = vadd.f32 1.0, %v5346_v13  ;;  %v4101_v10 = vpack.c.bf16 %v1878_v11, %v1877_v0  ;;  %v1044_v15 = vmax.f32 %v948_v43, %v996_v51  ;;  %1910 = vst.msk [vmem:[#allocation2 + $0x3a] sm:$0xff] %vm751_vm1, %v1878_v11  ;;  %v6149_v20 = vld [vmem:[#allocation2 + $0x78] sm:$0xff]  ;;  %v6159_v0 = vld [vmem:[#allocation2 + $0x80] sm:$0xff] }
 0x14a   : > { %8285 = vst [vmem:[#allocation26_spill] sm:$0xff] %v6125_v1  ;;  %v5350_v48 = vpop.eup %5349  ;;  %836 = vst.msk [vmem:[#allocation2 + $0x13a] sm:$0xff] %vm751_vm1, %v6125_v1  ;;  %v6144_v7 = vmul.f32 %v5348_v46, %v5921_v37  ;;  %v1139_v34 = vmax.f32 %v1042_v53, %v6003_v14  ;;  %v1140_v35 = vmax.f32 %v1043_v31, %v6028_v54  ;;  %v1190_v11 = vld [vmem:[#allocation2 + $0x88] sm:$0xf] }
 0x14b   : > { %v5352_v27 = vpop.eup %5351  ;;  %5367 = vrcp.f32 %v651_v24  ;;  %v654_v25 = vadd.f32 1.0, %v5350_v48  ;;  %v6151_v13 = vld [vmem:[#allocation2 + $0x110] sm:$0xff]  ;;  %4165 = vrot.lane.b32.xlu0 %v4101_v10, %s5571_s11  ;;  %v1141_v51 = vmax.f32 %v1044_v15, %v1093_v41  ;;  %v6165_v24 = vld [vmem:[#allocation2 + $0x118] sm:$0xf] }
 0x14c   : > { %8287 = vst [vmem:[#allocation27_spill] sm:$0xff] %v6144_v7  ;;  %v5354_v42 = vpop.eup %5353  ;;  %834 = vst.msk [vmem:[#allocation2 + $0x122] sm:$0xff] %vm751_vm1, %v6144_v7  ;;  %v6156_v37 = vmul.f32 %v5352_v27, %v5940_v52  ;;  %v6172_v31 = vmax.f32 %v1139_v34, %v6149_v20  ;;  %v6175_v41 = vmax.f32 %v1140_v35, %v6159_v0 }
 0x14d   : > { %v6167_v56 = vld [vmem:[#allocation2 + $0xf8] sm:$0xff]  ;;  %v6169_v53 = vld [vmem:[#allocation2 + $0x100] sm:$0xf]  ;;  %5369 = vrcp.f32 %v654_v25  ;;  %v652_v52 = vadd.f32 1.0, %v5354_v42  ;;  %v6185_v25 = vmax.f32 %v1141_v51, %v1190_v11 }
 0x14e   : > { %8288 = vst [vmem:[#allocation28_spill] sm:$0xff] %v6156_v37  ;;  %v5356_v48 = vpop.eup %5355  ;;  %837 = vst.msk [vmem:[#allocation2 + $0x142] sm:$0xff] %vm751_vm1, %v6156_v37  ;;  %v1335_v35 = vrot.slane %v6172_v31, 1  ;;  %v1336_v42 = vrot.slane %v6175_v41, 1  ;;  %v1480_v15 = vrot.slane %v6172_v31, 2  ;;  %v1481_v43 = vrot.slane %v6175_v41, 2 }
 0x14f   : > { %v6188_v34 = vmul.f32 %v5356_v48, %v5956_v6  ;;  %5371 = vrcp.f32 %v652_v52  ;;  %v1338_v10 = vrot.slane %v6185_v25, 1  ;;  %v1483_v32 = vrot.slane %v6185_v25, 2 }
 0x150   : > { %v5358_v46 = vpop.eup %5357  ;;  %v1337_v11 = vsel %vm1329_vm3, %v1335_v35, %v1336_v42  ;;  %v1625_v52 = vrot.slane %v6172_v31, 3  ;;  %v1482_v37 = vsel %vm1474_vm4, %v1480_v15, %v1481_v43  ;;  %v1628_v35 = vrot.slane %v6185_v25, 3 }
 0x151   : > { %8289 = vst [vmem:[#allocation29_spill] sm:$0xff] %v6188_v34  ;;  %835 = vst.msk [vmem:[#allocation2 + $0x12a] sm:$0xff] %vm751_vm1, %v6188_v34  ;;  %v6201_v51 = vmul.f32 %v5358_v46, %v5973_v26  ;;  %v1339_v27 = vsel %vm1329_vm3, %v1336_v42, %v1338_v10  ;;  %v1444_v1 = vmax.f32 %v6172_v31, %v1337_v11  ;;  %v6209_v62 = vld [vmem:[#allocation2 + $0x138] sm:$0xff]  ;;  %v1626_v10 = vrot.slane %v6175_v41, 3 }
 0x152   : > { %v5360_v48 = vpop.eup %5359  ;;  %v1484_v57 = vsel %vm1474_vm4, %v1481_v43, %v1483_v32  ;;  %v1445_v46 = vmax.f32 %v6175_v41, %v1339_v27  ;;  %v8292_v15 = vmax.f32 %v6131_v40, %v6129_v17  ;;  %v6245_v40 = vld [vmem:[#allocation2 + $0x58] sm:$0xf]  ;;  %v1773_v33 = vrot.slane %v6185_v25, 4 }
 0x153   : > { %8290 = vst [vmem:[#allocation30_spill] sm:$0xff] %v6201_v51  ;;  %v6211_v55 = vld [vmem:[#allocation2 + $0x120] sm:$0xff]  ;;  %840 = vst.msk [vmem:[#allocation2 + $0x16a] sm:$0xff] %vm751_vm1, %v6201_v51  ;;  %v6216_v26 = vmul.f32 %v5360_v48, %v5983_v39  ;;  %v1589_v39 = vmax.f32 %v1444_v1, %v1482_v37  ;;  %v1627_v7 = vsel %vm1619_vm5, %v1625_v52, %v1626_v10 }
 0x154   : > { %v5362_v42 = vpop.eup %5361  ;;  %v976_v32 = vmax.f32 %v6129_v17, %v6211_v55  ;;  %v979_v43 = vmax.f32 %v6211_v55, %v6209_v62  ;;  %v1069_v11 = vmax.f32 %v8292_v15, %v6211_v55  ;;  %v6234_v6 = vmax.f32 %v1445_v46, %v1484_v57 }
 0x155   : > { %8291 = vst [vmem:[#allocation31_spill] sm:$0xff] %v6216_v26  ;;  %v5364_v48 = vpop.eup %5363  ;;  %838 = vst.msk [vmem:[#allocation2 + $0x152] sm:$0xff] %vm751_vm1, %v6216_v26  ;;  %v6232_v27 = vmul.f32 %v5362_v42, %v5993_v58  ;;  %v6238_v34 = vsel %vm1619_vm5, %v1626_v10, %v1628_v35  ;;  %v1734_v1 = vmax.f32 %v1589_v39, %v1627_v7  ;;  %v881_v58 = vld [vmem:[#allocation2 + $0x118] sm:$0xf]  ;;  %v6247_v37 = vld [vmem:[#allocation2 + $0x140] sm:$0xff]  ;;  %v1770_v7 = vrot.slane %v6172_v31, 4 }
 0x156   : > { %v5366_v9 = vpop.eup %5365  ;;  %v1072_v38 = vmax.f32 %v976_v32, %v6209_v62  ;;  %v1166_v55 = vmax.f32 %v1069_v11, %v6209_v62  ;;  %v6243_v17 = vmul.f32 %v5364_v48, %v6007_v29  ;;  %v6249_v57 = vld [vmem:[#allocation2 + $0x148] sm:$0xf]  ;;  %v1735_v29 = vmax.f32 %v6234_v6, %v6238_v34 }
 0x157   : > { %8293 = vst [vmem:[#allocation32_spill] sm:$0xff] %v6232_v27  ;;  %841 = vst.msk [vmem:[#allocation2 + $0x172] sm:$0xff] %vm751_vm1, %v6232_v27  ;;  %v6256_v46 = vmul.f32 %v5366_v9, %v6019_v50  ;;  %v1771_v50 = vrot.slane %v6175_v41, 4  ;;  %v8296_v31 = vmax.f32 %v5947_v2, %v5970_v21  ;;  %v1026_v52 = vld [vmem:[#allocation2 + $0x148] sm:$0xf]  ;;  %v8297_v2 = vmax.f32 %v6167_v56, %v6151_v13 }
 0x158   : > { %8294 = vst [vmem:[#allocation33_spill] sm:$0xff] %v6243_v17  ;;  %v5368_v10 = vpop.eup %5367  ;;  %v6261_v35 = vld [vmem:[#allocation2 + $0x128] sm:$0xff]  ;;  %v6263_v42 = vld [vmem:[#allocation2 + $0x130] sm:$0xf]  ;;  %839 = vst.msk [vmem:[#allocation2 + $0x15a] sm:$0xff] %vm751_vm1, %v6243_v17 }
 0x159   : > { %8295 = vst [vmem:[#allocation34_spill] sm:$0xff] %v6256_v46  ;;  %v930_v32 = vld [vmem:[#allocation2 + $0x130] sm:$0xf]  ;;  %v6276_v34 = vmax.f32 %v8296_v31, %v6003_v14  ;;  %v977_v6 = vmax.f32 %v6151_v13, %v6261_v35  ;;  %v980_v39 = vmax.f32 %v6261_v35, %v6247_v37  ;;  %v981_v48 = vmax.f32 %v6263_v42, %v6249_v57  ;;  %v1120_v42 = vld [vmem:[#allocation2 + $0x148] sm:$0xf] }
 0x15a   : > { %v978_v11 = vmax.f32 %v881_v58, %v930_v32  ;;  %v1023_v41 = vld [vmem:[#allocation2 + $0x130] sm:$0xf]  ;;  %844 = vst.msk [vmem:[#allocation2 + $0x19a] sm:$0xff] %vm751_vm1, %v6256_v46  ;;  %v5370_v15 = vpop.eup %5369  ;;  %v1070_v14 = vmax.f32 %v8297_v2, %v6261_v35  ;;  %v8298_v58 = vmax.f32 %v6169_v53, %v6165_v24  ;;  %v6294_v31 = vmul.f32 %v5368_v10, %v6033_v22  ;;  %v6302_v56 = vld [vmem:[#allocation2 + $0x168] sm:$0xff] }
 0x15b   : > { %v1772_v57 = vsel %vm1764_vm6, %v1770_v7, %v1771_v50  ;;  %v1073_v9 = vmax.f32 %v977_v6, %v6247_v37  ;;  %v6299_v17 = vmul.f32 %v5370_v15, %v6049_v23 }
 0x15c   : > { %v1071_v32 = vmax.f32 %v8298_v58, %v1023_v41  ;;  %8299 = vst [vmem:[#allocation35_spill] sm:$0xff] %v6294_v31  ;;  %v1074_v26 = vmax.f32 %v978_v11, %v1026_v52  ;;  %v5372_v13 = vpop.eup %5371  ;;  %v888_v35 = vld [vmem:[#allocation2 + $0x150] sm:$0xff]  ;;  %v1167_v24 = vmax.f32 %v1070_v14, %v6247_v37  ;;  %842 = vst.msk [vmem:[#allocation2 + $0x182] sm:$0xff] %vm751_vm1, %v6294_v31  ;;  %v6340_v41 = vld [vmem:[#allocation2 + $0x58] sm:$0xf] }
 0x15d   : > { %8300 = vst [vmem:[#allocation36_spill] sm:$0xff] %v6299_v17  ;;  %v6307_v22 = vmax.f32 %v1734_v1, %v1772_v57  ;;  %v8301_v52 = vmax.f32 %v5975_v30, %v5995_v3  ;;  %v982_v25 = vmax.f32 %v6209_v62, %v888_v35  ;;  %v985_v7 = vmax.f32 %v888_v35, %v6302_v56 }
 0x15e   : > { %v1168_v53 = vmax.f32 %v1071_v32, %v1120_v42  ;;  %v1075_v10 = vmax.f32 %v979_v43, %v888_v35  ;;  %v1169_v15 = vmax.f32 %v1072_v38, %v888_v35  ;;  %845 = vst.msk [vmem:[#allocation2 + $0x1a2] sm:$0xff] %vm751_vm1, %v6299_v17  ;;  %v6319_v6 = vmax.f32 %v1166_v55, %v888_v35  ;;  %v6348_v58 = vld [vmem:[#allocation2 + $0x170] sm:$0xff]  ;;  %v1220_v18 = vld [vmem:[#allocation2 + $0x178] sm:$0xf] }
 0x15f   : > { %v6313_v23 = vmax.f32 %v8301_v52, %v6028_v54  ;;  %v6324_v11 = vmul.f32 %v5372_v13, %v6060_v63  ;;  %v1774_v30 = vsel %vm1764_vm6, %v1771_v50, %v1773_v33  ;;  %1911 = vst.msk [vmem:[#allocation2 + $0x4a] sm:$0xff] %vm751_vm1, %v6307_v22  ;;  %v6332_v54 = vld [vmem:[#allocation2 + $0x178] sm:$0xf]  ;;  %v6335_v38 = vmax.f32 %v982_v25, %v6302_v56  ;;  %v6342_v63 = vld [vmem:[#allocation2 + $0x148] sm:$0xf] }
 0x160   : > { %v6330_v62 = vmax.f32 %v1169_v15, %v6302_v56  ;;  %v1172_v43 = vmax.f32 %v1075_v10, %v6302_v56  ;;  %v6338_v55 = vmax.f32 %v1735_v29, %v1774_v30  ;;  %v1380_v33 = vrot.slane %v6319_v6, 1  ;;  %v6350_v32 = vld [vmem:[#allocation2 + $0x158] sm:$0xff]  ;;  %v6358_v35 = vld [vmem:[#allocation2 + $0x160] sm:$0xf] }
 0x161   : > { %v1525_v50 = vrot.slane %v6319_v6, 2  ;;  %v1670_v2 = vrot.slane %v6319_v6, 3  ;;  %843 = vst.msk [vmem:[#allocation2 + $0x18a] sm:$0xff] %vm751_vm1, %v6324_v11  ;;  %v6362_v52 = vld [vmem:[#allocation2 + $0x160] sm:$0xf]  ;;  %v6371_v1 = vmax.f32 %v980_v39, %v6350_v32  ;;  %v1170_v17 = vmax.f32 %v1073_v9, %v6350_v32 }
 0x162   : > { %v1385_v29 = vrot.slane %v6330_v62, 1  ;;  %v1530_v57 = vrot.slane %v6330_v62, 2  ;;  %v1675_v42 = vrot.slane %v6330_v62, 3  ;;  %1912 = vst.msk [vmem:[#allocation2 + $0x52] sm:$0xff] %vm751_vm1, %v6338_v55  ;;  %v1029_v30 = vld [vmem:[#allocation2 + $0x160] sm:$0xf]  ;;  %v1264_v10 = vmax.f32 %v1167_v24, %v6350_v32 }
 0x163   : > { %v1123_v13 = vld [vmem:[#allocation2 + $0x160] sm:$0xf]  ;;  %v6375_v46 = vmax.f32 %v981_v48, %v1029_v30  ;;  %v1267_v39 = vmax.f32 %v1170_v17, %v6348_v58 }
 0x164   : > { %v1171_v12 = vmax.f32 %v1074_v26, %v1123_v13  ;;  %v1217_v25 = vld [vmem:[#allocation2 + $0x160] sm:$0xf]  ;;  %v1381_v30 = vrot.slane %v1264_v10, 1  ;;  %v1526_v26 = vrot.slane %v1264_v10, 2 }
 0x165   : > { %v940_v44 = vld [vmem:[#allocation2 + $0x180] sm:$0xff]  ;;  %v1265_v5 = vmax.f32 %v1168_v53, %v1217_v25  ;;  %v1386_v4 = vrot.slane %v1267_v39, 1  ;;  %v1531_v27 = vrot.slane %v1267_v39, 2 }
 0x166   : > { %v988_v15 = vmax.f32 %v6302_v56, %v940_v44  ;;  %v6380_v45 = vmax.f32 %v985_v7, %v940_v44  ;;  %v1268_v36 = vmax.f32 %v1171_v12, %v1220_v18  ;;  %v1175_v14 = vmax.f32 %v6335_v38, %v940_v44 }
 0x167   : > { %v6384_v48 = vmax.f32 %v1172_v43, %v940_v44  ;;  %v1383_v9 = vrot.slane %v1265_v5, 1  ;;  %v1528_v13 = vrot.slane %v1265_v5, 2  ;;  %v1382_v53 = vsel %vm1329_vm3, %v1380_v33, %v1381_v30 }
 0x168   : > { %v1388_v51 = vrot.slane %v1268_v36, 1  ;;  %v1533_v24 = vrot.slane %v1268_v36, 2  ;;  %v1527_v7 = vsel %vm1474_vm4, %v1525_v50, %v1526_v26  ;;  %v1387_v12 = vsel %vm1329_vm3, %v1385_v29, %v1386_v4 }
 0x169   : > { %v1384_v56 = vsel %vm1329_vm3, %v1381_v30, %v1383_v9  ;;  %v1529_v18 = vsel %vm1474_vm4, %v1526_v26, %v1528_v13  ;;  %v1462_v17 = vmax.f32 %v6319_v6, %v1382_v53  ;;  %v1464_v43 = vmax.f32 %v6330_v62, %v1387_v12 }
 0x16a   : > { %v1389_v44 = vsel %vm1329_vm3, %v1386_v4, %v1388_v51  ;;  %v1463_v38 = vmax.f32 %v1264_v10, %v1384_v56  ;;  %v1532_v49 = vsel %vm1474_vm4, %v1530_v57, %v1531_v27  ;;  %v1534_v33 = vsel %vm1474_vm4, %v1531_v27, %v1533_v24 }
 0x16b   : > { %v1465_v25 = vmax.f32 %v1267_v39, %v1389_v44  ;;  %v1607_v19 = vmax.f32 %v1462_v17, %v1527_v7  ;;  %v1671_v9 = vrot.slane %v1264_v10, 3  ;;  %v1673_v50 = vrot.slane %v1265_v5, 3 }
 0x16c   : > { %v1608_v30 = vmax.f32 %v1463_v38, %v1529_v18  ;;  %v1609_v61 = vmax.f32 %v1464_v43, %v1532_v49  ;;  %v1676_v13 = vrot.slane %v1267_v39, 3  ;;  %v1678_v29 = vrot.slane %v1268_v36, 3 }
 0x16d   : > { %v1610_v26 = vmax.f32 %v1465_v25, %v1534_v33  ;;  %v1672_v4 = vsel %vm1619_vm5, %v1670_v2, %v1671_v9  ;;  %v1674_v51 = vsel %vm1619_vm5, %v1671_v9, %v1673_v50  ;;  %v1816_v53 = vrot.slane %v1264_v10, 4  ;;  %v1230_v50 = vld [vmem:[#allocation2 + $0x1c8] sm:$0xff] }
 0x16e   : > { %v1818_v56 = vrot.slane %v1265_v5, 4  ;;  %v1677_v12 = vsel %vm1619_vm5, %v1675_v42, %v1676_v13  ;;  %v1679_v57 = vsel %vm1619_vm5, %v1676_v13, %v1678_v29  ;;  %v1752_v44 = vmax.f32 %v1607_v19, %v1672_v4  ;;  %v1036_v5 = vld [vmem:[#allocation2 + $0x198] sm:$0xff]  ;;  %v1133_v42 = vld [vmem:[#allocation2 + $0x1b0] sm:$0xff] }
 0x16f   : > { %v1753_v27 = vmax.f32 %v1608_v30, %v1674_v51  ;;  %v1754_v24 = vmax.f32 %v1609_v61, %v1677_v12  ;;  %v1755_v7 = vmax.f32 %v1610_v26, %v1679_v57  ;;  %v8302_v18 = vrot.slane %v6319_v6, 4  ;;  %v6412_v6 = vld [vmem:[#allocation2 + $0x120] sm:$0xff]  ;;  %v6414_v30 = vld [vmem:[#allocation2 + $0x128] sm:$0xff]  ;;  %v942_v4 = vld [vmem:[#allocation2 + $0x190] sm:$0xf] }
 0x170   : > { %v1819_v17 = vsel %vm1764_vm6, %v1816_v53, %v1818_v56  ;;  %v1821_v38 = vrot.slane %v1267_v39, 4  ;;  %v1823_v2 = vrot.slane %v1268_v36, 4  ;;  %v1084_v25 = vmax.f32 %v988_v15, %v1036_v5  ;;  %v893_v51 = vld [vmem:[#allocation2 + $0x178] sm:$0xf]  ;;  %v1037_v57 = vld [vmem:[#allocation2 + $0x1a0] sm:$0xff] }
 0x171   : > { %v1817_v49 = vsel %vm1764_vm6, %v8302_v18, %v1816_v53  ;;  %v6406_v10 = vmax.f32 %v1753_v27, %v1819_v17  ;;  %v1178_v19 = vmax.f32 %v6380_v45, %v1036_v5  ;;  %v6409_v33 = vmax.f32 %v1175_v14, %v1036_v5  ;;  %v1035_v18 = vld [vmem:[#allocation2 + $0x190] sm:$0xf]  ;;  %v1126_v17 = vld [vmem:[#allocation2 + $0x178] sm:$0xf]  ;;  %v1229_v53 = vld [vmem:[#allocation2 + $0x1c0] sm:$0xf] }
 0x172   : > { %v6404_v43 = vmax.f32 %v1752_v44, %v1817_v49  ;;  %v8305_v39 = vrot.slane %v6330_v62, 4  ;;  %v1824_v9 = vsel %vm1764_vm6, %v1821_v38, %v1823_v2  ;;  %v1181_v13 = vmax.f32 %v1084_v25, %v1133_v42  ;;  %v941_v62 = vld [vmem:[#allocation2 + $0x188] sm:$0xff]  ;;  %v1032_v49 = vld [vmem:[#allocation2 + $0x178] sm:$0xf] }
 0x173   : > { %8304 = vst [vmem:[#allocation38_spill] sm:$0xff] %v6406_v10  ;;  %v6426_v14 = vmax.f32 %v1755_v7, %v1824_v9  ;;  %v6428_v29 = vmax.f32 %v1178_v19, %v1133_v42  ;;  %v989_v5 = vmax.f32 %v6348_v58, %v941_v62  ;;  %v990_v42 = vmax.f32 %v893_v51, %v942_v4  ;;  %v1134_v25 = vld [vmem:[#allocation2 + $0x1b8] sm:$0xff]  ;;  %v1135_v19 = vld [vmem:[#allocation2 + $0x1c0] sm:$0xf]  ;;  %v1038_v7 = vld [vmem:[#allocation2 + $0x1a8] sm:$0xf] }
 0x174   : > { %8303 = vst [vmem:[#allocation37_spill] sm:$0xff] %v6404_v43  ;;  %v1822_v36 = vsel %vm1764_vm6, %v8305_v39, %v1821_v38  ;;  %1929 = vst.msk [vmem:[#allocation2 + $0x122] sm:$0xff] %vm751_vm1, %v6404_v43  ;;  %v6434_v44 = vmax.f32 %v1181_v13, %v1230_v50  ;;  %v1129_v13 = vld [vmem:[#allocation2 + $0x190] sm:$0xf]  ;;  %v8308_v2 = vmax.f32 %v6247_v37, %v6350_v32  ;;  %v1226_v61 = vld [vmem:[#allocation2 + $0x1a8] sm:$0xf] }
 0x175   : > { %v6424_v45 = vmax.f32 %v1754_v24, %v1822_v36  ;;  %8307 = vst [vmem:[#allocation40_spill] sm:$0xff] %v6426_v14  ;;  %v1400_v27 = vrot.slane %v6428_v29, 1  ;;  %v8309_v4 = vmax.f32 %v6342_v63, %v6362_v52  ;;  %v8310_v12 = vmax.f32 %v6350_v32, %v6348_v58  ;;  %v1223_v36 = vld [vmem:[#allocation2 + $0x190] sm:$0xf]  ;;  %v1132_v24 = vld [vmem:[#allocation2 + $0x1a8] sm:$0xf] }
 0x176   : > { %v1405_v39 = vrot.slane %v6434_v44, 1  ;;  %v1079_v38 = vmax.f32 %v8308_v2, %v6348_v58  ;;  %v8311_v9 = vmax.f32 %v6358_v35, %v6332_v54  ;;  %v1085_v56 = vmax.f32 %v989_v5, %v1037_v57  ;;  %v1231_v32 = vld [vmem:[#allocation2 + $0x1d0] sm:$0xff] }
 0x177   : > { %8306 = vst [vmem:[#allocation39_spill] sm:$0xff] %v6424_v45  ;;  %v1080_v51 = vmax.f32 %v8309_v4, %v1032_v49  ;;  %v1082_v15 = vmax.f32 %v8310_v12, %v941_v62  ;;  %v1086_v26 = vmax.f32 %v990_v42, %v1038_v7  ;;  %v1173_v37 = vmax.f32 %v6371_v1, %v6348_v58  ;;  %v1232_v12 = vld [vmem:[#allocation2 + $0x1d8] sm:$0xf] }
 0x178   : > { %v1083_v50 = vmax.f32 %v8311_v9, %v1035_v18  ;;  %v1174_v2 = vmax.f32 %v6375_v46, %v1126_v17  ;;  %v1176_v63 = vmax.f32 %v1079_v38, %v941_v62  ;;  %v1182_v16 = vmax.f32 %v1085_v56, %v1134_v25 }
 0x179   : > { %v1177_v52 = vmax.f32 %v1080_v51, %v1129_v13  ;;  %v1179_v49 = vmax.f32 %v1082_v15, %v1037_v57  ;;  %v1183_v54 = vmax.f32 %v1086_v26, %v1135_v19  ;;  %v6462_v35 = vmax.f32 %v1173_v37, %v941_v62  ;;  %v6496_v13 = vld [vmem:[#allocation2 + $0x138] sm:$0xff]  ;;  %v6498_v51 = vld [vmem:[#allocation2 + $0x140] sm:$0xff]  ;;  %v6500_v37 = vld [vmem:[#allocation2 + $0x148] sm:$0xf] }
 0x17a   : > { %v1180_v4 = vmax.f32 %v1083_v50, %v1132_v24  ;;  %v6464_v18 = vmax.f32 %v1174_v2, %v1223_v36  ;;  %v6466_v7 = vmax.f32 %v1176_v63, %v1037_v57  ;;  %v6474_v58 = vmax.f32 %v1182_v16, %v1231_v32  ;;  %8314 = vst [vmem:[#allocation41_spill] sm:$0xff] %v6500_v37  ;;  %v6508_v32 = vld [vmem:[#allocation2 + $0x130] sm:$0xf] }
 0x17b   : > { %v6468_v5 = vmax.f32 %v1177_v52, %v1226_v61  ;;  %v6470_v1 = vmax.f32 %v1179_v49, %v1134_v25  ;;  %v6476_v15 = vmax.f32 %v1183_v54, %v1232_v12  ;;  %v1391_v24 = vrot.slane %v6462_v35, 1  ;;  %1931 = vst.msk [vmem:[#allocation2 + $0x13a] sm:$0xff] %vm751_vm1, %v6424_v45  ;;  %1932 = vst.msk [vmem:[#allocation2 + $0x142] sm:$0xff] %vm751_vm1, %v6426_v14 }
 0x17c   : > { %v6472_v46 = vmax.f32 %v1180_v4, %v1229_v53  ;;  %v1393_v26 = vrot.slane %v6464_v18, 1  ;;  %v1396_v62 = vrot.slane %v6466_v7, 1  ;;  %v8312_v17 = vrot.slane %v6384_v48, 1  ;;  %v6506_v4 = vld [vmem:[#allocation2 + $0x130] sm:$0xf] }
 0x17d   : > { %v1398_v56 = vrot.slane %v6468_v5, 1  ;;  %v1401_v57 = vrot.slane %v6470_v1, 1  ;;  %v1406_v38 = vrot.slane %v6474_v58, 1  ;;  %v1408_v42 = vrot.slane %v6476_v15, 1  ;;  %1930 = vst.msk [vmem:[#allocation2 + $0x12a] sm:$0xff] %vm751_vm1, %v6406_v10 }
 0x17e   : > { %v1403_v61 = vrot.slane %v6472_v46, 1  ;;  %v1392_v53 = vsel %vm1329_vm3, %v8312_v17, %v1391_v24  ;;  %v1394_v16 = vsel %vm1329_vm3, %v1391_v24, %v1393_v26  ;;  %v8313_v25 = vrot.slane %v6409_v33, 1 }
 0x17f   : > { %v1399_v36 = vsel %vm1329_vm3, %v1396_v62, %v1398_v56  ;;  %v1402_v9 = vsel %vm1329_vm3, %v1400_v27, %v1401_v57  ;;  %v1407_v2 = vsel %vm1329_vm3, %v1405_v39, %v1406_v38  ;;  %v1409_v63 = vsel %vm1329_vm3, %v1406_v38, %v1408_v42 }
 0x180   : > { %v1397_v19 = vsel %vm1329_vm3, %v8313_v25, %v1396_v62  ;;  %v1404_v50 = vsel %vm1329_vm3, %v1401_v57, %v1403_v61  ;;  %v1466_v52 = vmax.f32 %v6384_v48, %v1392_v53  ;;  %v1467_v49 = vmax.f32 %v6462_v35, %v1394_v16 }
 0x181   : > { %v1468_v27 = vmax.f32 %v6409_v33, %v1397_v19  ;;  %v1469_v39 = vmax.f32 %v6466_v7, %v1399_v36  ;;  %v1470_v12 = vmax.f32 %v6428_v29, %v1402_v9  ;;  %v1471_v54 = vmax.f32 %v6470_v1, %v1404_v50 }
 0x182   : > { %v1472_v24 = vmax.f32 %v6434_v44, %v1407_v2  ;;  %v1473_v26 = vmax.f32 %v6474_v58, %v1409_v63  ;;  %v1536_v62 = vrot.slane %v6462_v35, 2  ;;  %v1538_v56 = vrot.slane %v6464_v18, 2 }
 0x183   : > { %v1541_v57 = vrot.slane %v6466_v7, 2  ;;  %v1543_v61 = vrot.slane %v6468_v5, 2  ;;  %v1546_v17 = vrot.slane %v6470_v1, 2  ;;  %v1548_v53 = vrot.slane %v6472_v46, 2 }
 0x184   : > { %v8315_v16 = vrot.slane %v6384_v48, 2  ;;  %v1539_v42 = vsel %vm1474_vm4, %v1536_v62, %v1538_v56  ;;  %v1551_v25 = vrot.slane %v6474_v58, 2  ;;  %v1553_v19 = vrot.slane %v6476_v15, 2 }
 0x185   : > { %v8316_v36 = vrot.slane %v6409_v33, 2  ;;  %v1544_v50 = vsel %vm1474_vm4, %v1541_v57, %v1543_v61  ;;  %v8317_v2 = vrot.slane %v6428_v29, 2  ;;  %v1549_v8 = vsel %vm1474_vm4, %v1546_v17, %v1548_v53 }
 0x186   : > { %v1537_v38 = vsel %vm1474_vm4, %v8315_v16, %v1536_v62  ;;  %v8318_v16 = vrot.slane %v6434_v44, 2  ;;  %v1554_v56 = vsel %vm1474_vm4, %v1551_v25, %v1553_v19  ;;  %v1612_v14 = vmax.f32 %v1467_v49, %v1539_v42 }
 0x187   : > { %v1542_v9 = vsel %vm1474_vm4, %v8316_v36, %v1541_v57  ;;  %v1547_v63 = vsel %vm1474_vm4, %v8317_v2, %v1546_v17  ;;  %v1611_v59 = vmax.f32 %v1466_v52, %v1537_v38  ;;  %v1614_v10 = vmax.f32 %v1469_v39, %v1544_v50 }
 0x188   : > { %v1552_v62 = vsel %vm1474_vm4, %v8318_v16, %v1551_v25  ;;  %v1613_v45 = vmax.f32 %v1468_v27, %v1542_v9  ;;  %v1615_v43 = vmax.f32 %v1470_v12, %v1547_v63  ;;  %v1616_v36 = vmax.f32 %v1471_v54, %v1549_v8 }
 0x189   : > { %v1617_v37 = vmax.f32 %v1472_v24, %v1552_v62  ;;  %v1618_v57 = vmax.f32 %v1473_v26, %v1554_v56  ;;  %v1681_v61 = vrot.slane %v6462_v35, 3  ;;  %v1683_v2 = vrot.slane %v6464_v18, 3 }
 0x18a   : > { %v1686_v17 = vrot.slane %v6466_v7, 3  ;;  %v1688_v53 = vrot.slane %v6468_v5, 3  ;;  %v1691_v16 = vrot.slane %v6470_v1, 3  ;;  %v1693_v25 = vrot.slane %v6472_v46, 3 }
 0x18b   : > { %v8319_v52 = vrot.slane %v6384_v48, 3  ;;  %v1684_v8 = vsel %vm1619_vm5, %v1681_v61, %v1683_v2  ;;  %v1696_v27 = vrot.slane %v6474_v58, 3  ;;  %v1698_v39 = vrot.slane %v6476_v15, 3 }
 0x18c   : > { %v8320_v12 = vrot.slane %v6409_v33, 3  ;;  %v1689_v24 = vsel %vm1619_vm5, %v1686_v17, %v1688_v53  ;;  %v8321_v26 = vrot.slane %v6428_v29, 3  ;;  %v1694_v42 = vsel %vm1619_vm5, %v1691_v16, %v1693_v25 }
 0x18d   : > { %v1682_v49 = vsel %vm1619_vm5, %v8319_v52, %v1681_v61  ;;  %v8322_v19 = vrot.slane %v6434_v44, 3  ;;  %v1699_v50 = vsel %vm1619_vm5, %v1696_v27, %v1698_v39  ;;  %v1757_v62 = vmax.f32 %v1612_v14, %v1684_v8  ;;  %v906_v39 = vld [vmem:[#allocation2 + $0x70] sm:$0xf] }
 0x18e   : > { %v1687_v54 = vsel %vm1619_vm5, %v8320_v12, %v1686_v17  ;;  %v1692_v38 = vsel %vm1619_vm5, %v8321_v26, %v1691_v16  ;;  %v1756_v63 = vmax.f32 %v1611_v59, %v1682_v49  ;;  %v1759_v61 = vmax.f32 %v1614_v10, %v1689_v24 }
 0x18f   : > { %v1697_v9 = vsel %vm1619_vm5, %v8322_v19, %v1696_v27  ;;  %v1758_v56 = vmax.f32 %v1613_v45, %v1687_v54  ;;  %v1760_v2 = vmax.f32 %v1615_v43, %v1692_v38  ;;  %v1761_v52 = vmax.f32 %v1616_v36, %v1694_v42  ;;  %v6618_v42 = vld [vmem:[#allocation2 + $0x90] sm:$0xff] }
 0x190   : > { %v1762_v12 = vmax.f32 %v1617_v37, %v1697_v9  ;;  %v1763_v17 = vmax.f32 %v1618_v57, %v1699_v50  ;;  %v1826_v53 = vrot.slane %v6462_v35, 4  ;;  %v1828_v26 = vrot.slane %v6464_v18, 4  ;;  %v6620_v9 = vld [vmem:[#allocation2 + $0x98] sm:$0xff] }
 0x191   : > { %v1831_v16 = vrot.slane %v6466_v7, 4  ;;  %v1833_v25 = vrot.slane %v6468_v5, 4  ;;  %v1836_v19 = vrot.slane %v6470_v1, 4  ;;  %v1838_v27 = vrot.slane %v6472_v46, 4 }
 0x192   : > { %v8323_v59 = vrot.slane %v6384_v48, 4  ;;  %v1829_v43 = vsel %vm1764_vm6, %v1826_v53, %v1828_v26  ;;  %v1841_v45 = vrot.slane %v6474_v58, 4  ;;  %v1843_v14 = vrot.slane %v6476_v15, 4  ;;  %v1002_v26 = vld [vmem:[#allocation2 + $0x88] sm:$0xf] }
 0x193   : > { %v8324_v35 = vrot.slane %v6409_v33, 4  ;;  %v1834_v7 = vsel %vm1764_vm6, %v1831_v16, %v1833_v25  ;;  %v8325_v5 = vrot.slane %v6428_v29, 4  ;;  %v1839_v48 = vsel %vm1764_vm6, %v1836_v19, %v1838_v27  ;;  %v999_v33 = vld [vmem:[#allocation2 + $0x70] sm:$0xf]  ;;  %v909_v25 = vld [vmem:[#allocation2 + $0x88] sm:$0xf] }
 0x194   : > { %v1827_v10 = vsel %vm1764_vm6, %v8323_v59, %v1826_v53  ;;  %v8326_v46 = vrot.slane %v6434_v44, 4  ;;  %v1844_v58 = vsel %vm1764_vm6, %v1841_v45, %v1843_v14  ;;  %v6596_v15 = vmax.f32 %v1757_v62, %v1829_v43  ;;  %v5501_v62 = vld [vmem:[#allocation2 + $0x60] sm:$0xff] }
 0x195   : > { %v1832_v18 = vsel %vm1764_vm6, %v8324_v35, %v1831_v16  ;;  %v1837_v1 = vsel %vm1764_vm6, %v8325_v5, %v1836_v19  ;;  %v6594_v36 = vmax.f32 %v1756_v63, %v1827_v10  ;;  %v6600_v49 = vmax.f32 %v1759_v61, %v1834_v7  ;;  %v860_v61 = vld [vmem:[#allocation2 + $0x70] sm:$0xf] }
 0x196   : > { %v1842_v37 = vsel %vm1764_vm6, %v8326_v46, %v1841_v45  ;;  %v6598_v57 = vmax.f32 %v1758_v56, %v1832_v18  ;;  %v6602_v29 = vmax.f32 %v1760_v2, %v1837_v1  ;;  %v6604_v8 = vmax.f32 %v1761_v52, %v1839_v48  ;;  %1934 = vst.msk [vmem:[#allocation2 + $0x15a] sm:$0xff] %vm751_vm1, %v6596_v15  ;;  %v5502_v2 = vld [vmem:[#allocation2 + $0x68] sm:$0xff] }
 0x197   : > { %v6606_v54 = vmax.f32 %v1762_v12, %v1842_v37  ;;  %v6608_v44 = vmax.f32 %v1763_v17, %v1844_v58  ;;  %1933 = vst.msk [vmem:[#allocation2 + $0x152] sm:$0xff] %vm751_vm1, %v6594_v36  ;;  %v4102_v38 = vpack.c.bf16 %v6338_v55, %v6307_v22  ;;  %1936 = vst.msk [vmem:[#allocation2 + $0x172] sm:$0xff] %vm751_vm1, %v6600_v49 }
 0x198   : > { %1938 = vst.msk [vmem:[#allocation2 + $0x18a] sm:$0xff] %vm751_vm1, %v6604_v8  ;;  %1935 = vst.msk [vmem:[#allocation2 + $0x16a] sm:$0xff] %vm751_vm1, %v6598_v57  ;;  %v8327_v50 = vmax.f32 %v6127_v28, %v6245_v40  ;;  %v1142_v55 = vmax.f32 %v6276_v34, %v6149_v20  ;;  %v1143_v63 = vmax.f32 %v6313_v23, %v6159_v0  ;;  %v1096_v28 = vld [vmem:[#allocation2 + $0x88] sm:$0xf]  ;;  %v1193_v40 = vld [vmem:[#allocation2 + $0xa0] sm:$0xf] }
 0x199   : > { %1937 = vst.msk [vmem:[#allocation2 + $0x182] sm:$0xff] %vm751_vm1, %v6602_v29  ;;  %v952_v56 = vmax.f32 %v5970_v21, %v5501_v62  ;;  %1939 = vst.msk [vmem:[#allocation2 + $0x19a] sm:$0xff] %vm751_vm1, %v6606_v54  ;;  %4167 = vrot.lane.b32.xlu0 %v4102_v38, %s5571_s11  ;;  %v953_v34 = vmax.f32 %v5995_v3, %v5502_v2  ;;  %v954_v52 = vmax.f32 %v6340_v41, %v906_v39  ;;  %v1099_v38 = vld [vmem:[#allocation2 + $0xa0] sm:$0xf] }
 0x19a   : > { %v1047_v22 = vmax.f32 %v8327_v50, %v999_v33  ;;  %1940 = vst.msk [vmem:[#allocation2 + $0x1a2] sm:$0xff] %vm751_vm1, %v6608_v44  ;;  %v955_v23 = vmax.f32 %v5501_v62, %v6149_v20  ;;  %v956_v21 = vmax.f32 %v5502_v2, %v6159_v0  ;;  %v1239_v17 = vmax.f32 %v1142_v55, %v6618_v42  ;;  %v1005_v62 = vld [vmem:[#allocation2 + $0xa0] sm:$0xf] }
 0x19b   : > { %v1240_v53 = vmax.f32 %v1143_v63, %v6620_v9  ;;  %v1048_v16 = vmax.f32 %v952_v56, %v6149_v20  ;;  %v1049_v19 = vmax.f32 %v953_v34, %v6159_v0  ;;  %v1050_v27 = vmax.f32 %v954_v52, %v1002_v26 }
 0x19c   : > { %v1144_v12 = vmax.f32 %v1047_v22, %v1096_v28  ;;  %v957_v59 = vmax.f32 %v860_v61, %v909_v25  ;;  %v6652_v3 = vmax.f32 %v955_v23, %v6618_v42  ;;  %v1340_v10 = vrot.slane %v1239_v17, 1  ;;  %v6664_v23 = vld [vmem:[#allocation2 + $0xa8] sm:$0xff]  ;;  %v6667_v25 = vld [vmem:[#allocation2 + $0xb0] sm:$0xff] }
 0x19d   : > { %v1341_v43 = vrot.slane %v1240_v53, 1  ;;  %v1485_v45 = vrot.slane %v1239_v17, 2  ;;  %v1486_v14 = vrot.slane %v1240_v53, 2  ;;  %v1630_v35 = vrot.slane %v1239_v17, 3 }
 0x19e   : > { %v1241_v41 = vmax.f32 %v1144_v12, %v1193_v40  ;;  %v1631_v18 = vrot.slane %v1240_v53, 3  ;;  %v1775_v7 = vrot.slane %v1239_v17, 4  ;;  %v1776_v39 = vrot.slane %v1240_v53, 4 }
 0x19f   : > { %v1342_v5 = vsel %vm1329_vm3, %v1340_v10, %v1341_v43  ;;  %v1487_v58 = vsel %vm1474_vm4, %v1485_v45, %v1486_v14  ;;  %v1145_v40 = vmax.f32 %v1048_v16, %v6618_v42  ;;  %v1146_v34 = vmax.f32 %v1049_v19, %v6620_v9 }
 0x1a0   : > { %v1343_v1 = vrot.slane %v1241_v41, 1  ;;  %v1488_v48 = vrot.slane %v1241_v41, 2  ;;  %v1633_v46 = vrot.slane %v1241_v41, 3  ;;  %v1446_v37 = vmax.f32 %v1239_v17, %v1342_v5 }
 0x1a1   : > { %v1632_v33 = vsel %vm1619_vm5, %v1630_v35, %v1631_v18  ;;  %v1778_v63 = vrot.slane %v1241_v41, 4  ;;  %v1777_v28 = vsel %vm1764_vm6, %v1775_v7, %v1776_v39  ;;  %v1147_v52 = vmax.f32 %v1050_v27, %v1099_v38  ;;  %v1196_v41 = vld [vmem:[#allocation2 + $0xb8] sm:$0xf]  ;;  %v6679_v38 = vld [vmem:[#allocation2 + $0xc0] sm:$0xff] }
 0x1a2   : > { %v1344_v50 = vsel %vm1329_vm3, %v1341_v43, %v1343_v1  ;;  %v1489_v22 = vsel %vm1474_vm4, %v1486_v14, %v1488_v48  ;;  %v1634_v55 = vsel %vm1619_vm5, %v1631_v18, %v1633_v46  ;;  %v1591_v61 = vmax.f32 %v1446_v37, %v1487_v58 }
 0x1a3   : > { %v1447_v56 = vmax.f32 %v1240_v53, %v1344_v50  ;;  %v1779_v2 = vsel %vm1764_vm6, %v1776_v39, %v1778_v63  ;;  %v1052_v12 = vmax.f32 %v956_v21, %v6620_v9  ;;  %v1242_v53 = vmax.f32 %v1145_v40, %v6664_v23 }
 0x1a4   : > { %v1736_v26 = vmax.f32 %v1591_v61, %v1632_v33  ;;  %v1053_v10 = vmax.f32 %v957_v59, %v1005_v62  ;;  %v1243_v43 = vmax.f32 %v1146_v34, %v6667_v25  ;;  %v1244_v16 = vmax.f32 %v1147_v52, %v1196_v41  ;;  %v1102_v62 = vld [vmem:[#allocation2 + $0xb8] sm:$0xf]  ;;  %v1199_v34 = vld [vmem:[#allocation2 + $0xd0] sm:$0xf] }
 0x1a5   : > { %v1592_v17 = vmax.f32 %v1447_v56, %v1489_v22  ;;  %v1148_v45 = vmax.f32 %v6652_v3, %v6664_v23  ;;  %v1149_v19 = vmax.f32 %v1052_v12, %v6667_v25  ;;  %v1345_v35 = vrot.slane %v1242_v53, 1  ;;  %v6682_v56 = vld [vmem:[#allocation2 + $0xc8] sm:$0xff] }
 0x1a6   : > { %v1881_v14 = vmax.f32 %v1736_v26, %v1777_v28  ;;  %v1490_v21 = vrot.slane %v1242_v53, 2  ;;  %v1346_v18 = vrot.slane %v1243_v43, 1  ;;  %v1348_v7 = vrot.slane %v1244_v16, 1 }
 0x1a7   : > { %v1737_v27 = vmax.f32 %v1592_v17, %v1634_v55  ;;  %v1491_v5 = vrot.slane %v1243_v43, 2  ;;  %v1493_v1 = vrot.slane %v1244_v16, 2  ;;  %v1635_v46 = vrot.slane %v1242_v53, 3 }
 0x1a8   : > { %v1636_v37 = vrot.slane %v1243_v43, 3  ;;  %v1638_v59 = vrot.slane %v1244_v16, 3  ;;  %1913 = vst.msk [vmem:[#allocation2 + $0x62] sm:$0xff] %vm751_vm1, %v1881_v14  ;;  %v1347_v58 = vsel %vm1329_vm3, %v1345_v35, %v1346_v18  ;;  %v1349_v3 = vsel %vm1329_vm3, %v1346_v18, %v1348_v7 }
 0x1a9   : > { %v1882_v48 = vmax.f32 %v1737_v27, %v1779_v2  ;;  %v1492_v33 = vsel %vm1474_vm4, %v1490_v21, %v1491_v5  ;;  %v1494_v39 = vsel %vm1474_vm4, %v1491_v5, %v1493_v1  ;;  %v1448_v22 = vmax.f32 %v1242_v53, %v1347_v58 }
 0x1aa   : > { %v1449_v55 = vmax.f32 %v1243_v43, %v1349_v3  ;;  %v1637_v63 = vsel %vm1619_vm5, %v1635_v46, %v1636_v37  ;;  %v1639_v61 = vsel %vm1619_vm5, %v1636_v37, %v1638_v59  ;;  %v1780_v28 = vrot.slane %v1242_v53, 4  ;;  %v863_v3 = vld [vmem:[#allocation2 + $0x88] sm:$0xf] }
 0x1ab   : > { %v4103_v50 = vpack.c.bf16 %v1882_v48, %v1881_v14  ;;  %1914 = vst.msk [vmem:[#allocation2 + $0x6a] sm:$0xff] %vm751_vm1, %v1882_v48  ;;  %v1781_v40 = vrot.slane %v1243_v43, 4  ;;  %v1783_v2 = vrot.slane %v1244_v16, 4  ;;  %v1593_v52 = vmax.f32 %v1448_v22, %v1492_v33  ;;  %v912_v22 = vld [vmem:[#allocation2 + $0xa0] sm:$0xf] }
 0x1ac   : > { %v1594_v12 = vmax.f32 %v1449_v55, %v1494_v39  ;;  %v1150_v17 = vmax.f32 %v1053_v10, %v1102_v62  ;;  %v1245_v26 = vmax.f32 %v1148_v45, %v6679_v38  ;;  %v1246_v14 = vmax.f32 %v1149_v19, %v6682_v56 }
 0x1ad   : > { %4169 = vrot.lane.b32.xlu0 %v4103_v50, %s5571_s11  ;;  %v1782_v41 = vsel %vm1764_vm6, %v1780_v28, %v1781_v40  ;;  %v1784_v27 = vsel %vm1764_vm6, %v1781_v40, %v1783_v2  ;;  %v958_v35 = vmax.f32 %v6149_v20, %v6618_v42  ;;  %v1738_v53 = vmax.f32 %v1593_v52, %v1637_v63 }
 0x1ae   : > { %v1739_v43 = vmax.f32 %v1594_v12, %v1639_v61  ;;  %v1247_v16 = vmax.f32 %v1150_v17, %v1199_v34  ;;  %v1350_v21 = vrot.slane %v1245_v26, 1  ;;  %v1351_v18 = vrot.slane %v1246_v14, 1 }
 0x1af   : > { %v1495_v7 = vrot.slane %v1245_v26, 2  ;;  %v1496_v5 = vrot.slane %v1246_v14, 2  ;;  %v1640_v1 = vrot.slane %v1245_v26, 3  ;;  %v1883_v10 = vmax.f32 %v1738_v53, %v1782_v41  ;;  %v866_v41 = vld [vmem:[#allocation2 + $0xa0] sm:$0xf] }
 0x1b0   : > { %v1884_v48 = vmax.f32 %v1739_v43, %v1784_v27  ;;  %v1353_v45 = vrot.slane %v1247_v16, 1  ;;  %v1498_v46 = vrot.slane %v1247_v16, 2  ;;  %v1352_v37 = vsel %vm1329_vm3, %v1350_v21, %v1351_v18  ;;  %v1008_v21 = vld [vmem:[#allocation2 + $0xb8] sm:$0xf] }
 0x1b1   : > { %v1497_v59 = vsel %vm1474_vm4, %v1495_v7, %v1496_v5  ;;  %v1641_v19 = vrot.slane %v1246_v14, 3  ;;  %v1643_v58 = vrot.slane %v1247_v16, 3  ;;  %v1450_v39 = vmax.f32 %v1245_v26, %v1352_v37  ;;  %1915 = vst.msk [vmem:[#allocation2 + $0x7a] sm:$0xff] %vm751_vm1, %v1883_v10 }
 0x1b2   : > { %v4104_v20 = vpack.c.bf16 %v1884_v48, %v1883_v10  ;;  %v1354_v33 = vsel %vm1329_vm3, %v1351_v18, %v1353_v45  ;;  %v1499_v50 = vsel %vm1474_vm4, %v1496_v5, %v1498_v46  ;;  %1916 = vst.msk [vmem:[#allocation2 + $0x82] sm:$0xff] %vm751_vm1, %v1884_v48  ;;  %v1785_v61 = vrot.slane %v1245_v26, 4  ;;  %v915_v5 = vld [vmem:[#allocation2 + $0xb8] sm:$0xf] }
 0x1b3   : > { %v1451_v55 = vmax.f32 %v1246_v14, %v1354_v33  ;;  %v1642_v63 = vsel %vm1619_vm5, %v1640_v1, %v1641_v19  ;;  %v1644_v62 = vsel %vm1619_vm5, %v1641_v19, %v1643_v58  ;;  %v1595_v28 = vmax.f32 %v1450_v39, %v1497_v59  ;;  %v1011_v1 = vld [vmem:[#allocation2 + $0xd0] sm:$0xf]  ;;  %v6714_v48 = vld [vmem:[#allocation2 + $0xd8] sm:$0xff]  ;;  %v6717_v19 = vld [vmem:[#allocation2 + $0xe0] sm:$0xff] }
 0x1b4   : > { %4171 = vrot.lane.b32.xlu1 %v4104_v20, %s5571_s11  ;;  %v1786_v40 = vrot.slane %v1246_v14, 4  ;;  %v1788_v2 = vrot.slane %v1247_v16, 4  ;;  %v959_v34 = vmax.f32 %v6159_v0, %v6620_v9  ;;  %v960_v12 = vmax.f32 %v863_v3, %v912_v22  ;;  %v1105_v16 = vld [vmem:[#allocation2 + $0xd0] sm:$0xf]  ;;  %v1202_v20 = vld [vmem:[#allocation2 + $0xe8] sm:$0xf] }
 0x1b5   : > { %v1596_v52 = vmax.f32 %v1451_v55, %v1499_v50  ;;  %v1054_v17 = vmax.f32 %v958_v35, %v6664_v23  ;;  %v961_v27 = vmax.f32 %v6618_v42, %v6664_v23  ;;  %v1740_v53 = vmax.f32 %v1595_v28, %v1642_v63 }
 0x1b6   : > { %v1787_v43 = vsel %vm1764_vm6, %v1785_v61, %v1786_v40  ;;  %v1789_v26 = vsel %vm1764_vm6, %v1786_v40, %v1788_v2  ;;  %v1055_v14 = vmax.f32 %v959_v34, %v6667_v25  ;;  %v1056_v7 = vmax.f32 %v960_v12, %v1008_v21 }
 0x1b7   : > { %v1741_v18 = vmax.f32 %v1596_v52, %v1644_v62  ;;  %v1151_v0 = vmax.f32 %v1054_v17, %v6679_v38  ;;  %v962_v35 = vmax.f32 %v6620_v9, %v6667_v25  ;;  %v1885_v10 = vmax.f32 %v1740_v53, %v1787_v43 }
 0x1b8   : > { %v1152_v42 = vmax.f32 %v1055_v14, %v6682_v56  ;;  %v963_v45 = vmax.f32 %v866_v41, %v915_v5  ;;  %v1057_v46 = vmax.f32 %v961_v27, %v6679_v38  ;;  %v1153_v59 = vmax.f32 %v1056_v7, %v1105_v16  ;;  %v6736_v7 = vld [vmem:[#allocation2 + $0xf8] sm:$0xff] }
 0x1b9   : > { %v1886_v37 = vmax.f32 %v1741_v18, %v1789_v26  ;;  %v1248_v58 = vmax.f32 %v1151_v0, %v6714_v48  ;;  %v1058_v3 = vmax.f32 %v962_v35, %v6682_v56  ;;  %1917 = vst.msk [vmem:[#allocation2 + $0x92] sm:$0xff] %vm751_vm1, %v1885_v10  ;;  %v964_v50 = vmax.f32 %v6664_v23, %v6679_v38  ;;  %v6731_v26 = vld [vmem:[#allocation2 + $0xf0] sm:$0xff] }
 0x1ba   : > { %v1249_v9 = vmax.f32 %v1152_v42, %v6717_v19  ;;  %v1059_v33 = vmax.f32 %v963_v45, %v1011_v1  ;;  %v1154_v39 = vmax.f32 %v1057_v46, %v6714_v48  ;;  %v1250_v55 = vmax.f32 %v1153_v59, %v1202_v20  ;;  %v918_v0 = vld [vmem:[#allocation2 + $0xd0] sm:$0xf]  ;;  %v1205_v45 = vld [vmem:[#allocation2 + $0x100] sm:$0xf] }
 0x1bb   : > { %v4105_v22 = vpack.c.bf16 %v1886_v37, %v1885_v10  ;;  %v1355_v63 = vrot.slane %v1248_v58, 1  ;;  %v1500_v62 = vrot.slane %v1248_v58, 2  ;;  %1918 = vst.msk [vmem:[#allocation2 + $0x9a] sm:$0xff] %vm751_vm1, %v1886_v37  ;;  %v1645_v40 = vrot.slane %v1248_v58, 3  ;;  %v1108_v10 = vld [vmem:[#allocation2 + $0xe8] sm:$0xf] }
 0x1bc   : > { %v1356_v61 = vrot.slane %v1249_v9, 1  ;;  %v1501_v28 = vrot.slane %v1249_v9, 2  ;;  %v1646_v2 = vrot.slane %v1249_v9, 3  ;;  %v1358_v34 = vrot.slane %v1250_v55, 1 }
 0x1bd   : > { %4173 = vrot.lane.b32.xlu0 %v4105_v22, %s5571_s11  ;;  %v1503_v52 = vrot.slane %v1250_v55, 2  ;;  %v1648_v12 = vrot.slane %v1250_v55, 3  ;;  %v1790_v17 = vrot.slane %v1248_v58, 4  ;;  %v1791_v43 = vrot.slane %v1249_v9, 4 }
 0x1be   : > { %v1357_v41 = vsel %vm1329_vm3, %v1355_v63, %v1356_v61  ;;  %v1502_v27 = vsel %vm1474_vm4, %v1500_v62, %v1501_v28  ;;  %v1647_v53 = vsel %vm1619_vm5, %v1645_v40, %v1646_v2  ;;  %v1359_v21 = vsel %vm1329_vm3, %v1356_v61, %v1358_v34 }
 0x1bf   : > { %v1452_v14 = vmax.f32 %v1248_v58, %v1357_v41  ;;  %v1504_v16 = vsel %vm1474_vm4, %v1501_v28, %v1503_v52  ;;  %v1649_v18 = vsel %vm1619_vm5, %v1646_v2, %v1648_v12  ;;  %v1453_v5 = vmax.f32 %v1249_v9, %v1359_v21  ;;  %v869_v58 = vld [vmem:[#allocation2 + $0xb8] sm:$0xf] }
 0x1c0   : > { %v1792_v35 = vsel %vm1764_vm6, %v1790_v17, %v1791_v43  ;;  %v1793_v1 = vrot.slane %v1250_v55, 4  ;;  %v1155_v42 = vmax.f32 %v1058_v3, %v6717_v19  ;;  %v1156_v37 = vmax.f32 %v1059_v33, %v1108_v10 }
 0x1c1   : > { %v1597_v46 = vmax.f32 %v1452_v14, %v1502_v27  ;;  %v1251_v59 = vmax.f32 %v1154_v39, %v6731_v26  ;;  %v965_v20 = vmax.f32 %v6667_v25, %v6682_v56  ;;  %v1598_v22 = vmax.f32 %v1453_v5, %v1504_v16 }
 0x1c2   : > { %v1794_v63 = vsel %vm1764_vm6, %v1791_v43, %v1793_v1  ;;  %v1252_v9 = vmax.f32 %v1155_v42, %v6736_v7  ;;  %v966_v62 = vmax.f32 %v869_v58, %v918_v0  ;;  %v1253_v55 = vmax.f32 %v1156_v37, %v1205_v45  ;;  %v1991_v0 = vld [vmem:[#allocation2 + $0x28] sm:$0xf] }
 0x1c3   : > { %v1742_v61 = vmax.f32 %v1597_v46, %v1647_v53  ;;  %v1360_v28 = vrot.slane %v1251_v59, 1  ;;  %v1505_v40 = vrot.slane %v1251_v59, 2  ;;  %v1743_v3 = vmax.f32 %v1598_v22, %v1649_v18  ;;  %v1943_v18 = vld [vmem:[#allocation2 + $0x10] sm:$0xf]  ;;  %v1014_v42 = vld [vmem:[#allocation2 + $0xe8] sm:$0xf] }
 0x1c4   : > { %v1361_v2 = vrot.slane %v1252_v9, 1  ;;  %v1506_v34 = vrot.slane %v1252_v9, 2  ;;  %v1650_v33 = vrot.slane %v1251_v59, 3  ;;  %v1363_v39 = vrot.slane %v1253_v55, 1  ;;  %v1111_v22 = vld [vmem:[#allocation2 + $0x100] sm:$0xf] }
 0x1c5   : > { %v1887_v52 = vmax.f32 %v1742_v61, %v1792_v35  ;;  %v1508_v12 = vrot.slane %v1253_v55, 2  ;;  %v1651_v17 = vrot.slane %v1252_v9, 3  ;;  %v1888_v41 = vmax.f32 %v1743_v3, %v1794_v63  ;;  %v6757_v63 = vld [vmem:[#allocation2 + $0x30] sm:$0xff]  ;;  %v6761_v3 = vld [vmem:[#allocation2 + $0x38] sm:$0xff] }
 0x1c6   : > { %v1362_v25 = vsel %vm1329_vm3, %v1360_v28, %v1361_v2  ;;  %v1507_v27 = vsel %vm1474_vm4, %v1505_v40, %v1506_v34  ;;  %v1653_v43 = vrot.slane %v1253_v55, 3  ;;  %v1364_v21 = vsel %vm1329_vm3, %v1361_v2, %v1363_v39  ;;  %v2087_v2 = vld [vmem:[#allocation2 + $0x40] sm:$0xf] }
 0x1c7   : > { %v1454_v53 = vmax.f32 %v1251_v59, %v1362_v25  ;;  %v1509_v14 = vsel %vm1474_vm4, %v1506_v34, %v1508_v12  ;;  %v1652_v16 = vsel %vm1619_vm5, %v1650_v33, %v1651_v17  ;;  %1919 = vst.msk [vmem:[#allocation2 + $0xaa] sm:$0xff] %vm751_vm1, %v1887_v52  ;;  %v4106_v5 = vpack.c.bf16 %v1888_v41, %v1887_v52  ;;  %v6769_v12 = vld [vmem:[#allocation2 + $0x108] sm:$0xff] }
 0x1c8   : > { %v1455_v35 = vmax.f32 %v1252_v9, %v1364_v21  ;;  %v1654_v1 = vsel %vm1619_vm5, %v1651_v17, %v1653_v43  ;;  %v1795_v10 = vrot.slane %v1251_v59, 4  ;;  %1920 = vst.msk [vmem:[#allocation2 + $0xb2] sm:$0xff] %vm751_vm1, %v1888_v41  ;;  %v1796_v46 = vrot.slane %v1252_v9, 4  ;;  %v6773_v17 = vld [vmem:[#allocation2 + $0x110] sm:$0xff]  ;;  %v1208_v41 = vld [vmem:[#allocation2 + $0x118] sm:$0xf] }
 0x1c9   : > { %v1599_v45 = vmax.f32 %v1454_v53, %v1507_v27  ;;  %v1798_v37 = vrot.slane %v1253_v55, 4  ;;  %v1060_v58 = vmax.f32 %v964_v50, %v6714_v48  ;;  %4175 = vrot.lane.b32.xlu1 %v4106_v5, %s5571_s11  ;;  %v1061_v28 = vmax.f32 %v965_v20, %v6717_v19  ;;  %v6766_v50 = vld [vmem:[#allocation2 + $0x48] sm:$0xff] }
 0x1ca   : > { %v1600_v61 = vmax.f32 %v1455_v35, %v1509_v14  ;;  %v1062_v59 = vmax.f32 %v966_v62, %v1014_v42  ;;  %v2039_v40 = vmax.f32 %v1943_v18, %v1991_v0  ;;  %v1797_v55 = vsel %vm1764_vm6, %v1795_v10, %v1796_v46  ;;  %v6780_v35 = vld [vmem:[#allocation2 + $0xd0] sm:$0xf] }
 0x1cb   : > { %v1744_v9 = vmax.f32 %v1599_v45, %v1652_v16  ;;  %v1799_v34 = vsel %vm1764_vm6, %v1796_v46, %v1798_v37  ;;  %v1157_v23 = vmax.f32 %v1060_v58, %v6731_v26  ;;  %v1158_v52 = vmax.f32 %v1061_v28, %v6736_v7 }
 0x1cc   : > { %v1745_v33 = vmax.f32 %v1600_v61, %v1654_v1  ;;  %v1159_v39 = vmax.f32 %v1062_v59, %v1111_v22  ;;  %v2133_v20 = vmax.f32 %v5931_v47, %v6757_v63  ;;  %v2134_v27 = vmax.f32 %v5943_v60, %v6761_v3  ;;  %v6784_v22 = vld [vmem:[#allocation2 + $0x50] sm:$0xff] }
 0x1cd   : > { %v1889_v62 = vmax.f32 %v1744_v9, %v1797_v55  ;;  %v1254_v25 = vmax.f32 %v1157_v23, %v6769_v12  ;;  %v2135_v43 = vmax.f32 %v2039_v40, %v2087_v2  ;;  %v1255_v53 = vmax.f32 %v1158_v52, %v6773_v17  ;;  %v2183_v2 = vld [vmem:[#allocation2 + $0x58] sm:$0xf]  ;;  %v6790_v9 = vld [vmem:[#allocation2 + $0x60] sm:$0xff]  ;;  %v6794_v52 = vld [vmem:[#allocation2 + $0x68] sm:$0xff] }
 0x1ce   : > { %v1890_v21 = vmax.f32 %v1745_v33, %v1799_v34  ;;  %v1256_v14 = vmax.f32 %v1159_v39, %v1208_v41  ;;  %v2229_v16 = vmax.f32 %v2133_v20, %v6766_v50  ;;  %v2230_v41 = vmax.f32 %v2134_v27, %v6784_v22 }
 0x1cf   : > { %v1365_v18 = vrot.slane %v1254_v25, 1  ;;  %v1510_v0 = vrot.slane %v1254_v25, 2  ;;  %v1655_v5 = vrot.slane %v1254_v25, 3  ;;  %v1800_v47 = vrot.slane %v1254_v25, 4  ;;  %1921 = vst.msk [vmem:[#allocation2 + $0xc2] sm:$0xff] %vm751_vm1, %v1889_v62 }
 0x1d0   : > { %v4107_v1 = vpack.c.bf16 %v1890_v21, %v1889_v62  ;;  %v1366_v10 = vrot.slane %v1255_v53, 1  ;;  %v1368_v42 = vrot.slane %v1256_v14, 1  ;;  %v1511_v45 = vrot.slane %v1255_v53, 2  ;;  %1922 = vst.msk [vmem:[#allocation2 + $0xca] sm:$0xff] %vm751_vm1, %v1890_v21  ;;  %v2279_v21 = vld [vmem:[#allocation2 + $0x70] sm:$0xf] }
 0x1d1   : > { %v1513_v60 = vrot.slane %v1256_v14, 2  ;;  %v1656_v46 = vrot.slane %v1255_v53, 3  ;;  %v1658_v37 = vrot.slane %v1256_v14, 3  ;;  %v1801_v58 = vrot.slane %v1255_v53, 4 }
 0x1d2   : > { %4177 = vrot.lane.b32.xlu0 %v4107_v1, %s5571_s11  ;;  %v1367_v61 = vsel %vm1329_vm3, %v1365_v18, %v1366_v10  ;;  %v1369_v28 = vsel %vm1329_vm3, %v1366_v10, %v1368_v42  ;;  %v1512_v59 = vsel %vm1474_vm4, %v1510_v0, %v1511_v45  ;;  %v1803_v40 = vrot.slane %v1256_v14, 4 }
 0x1d3   : > { %v1456_v55 = vmax.f32 %v1254_v25, %v1367_v61  ;;  %v1457_v34 = vmax.f32 %v1255_v53, %v1369_v28  ;;  %v1514_v23 = vsel %vm1474_vm4, %v1511_v45, %v1513_v60  ;;  %v1657_v33 = vsel %vm1619_vm5, %v1655_v5, %v1656_v46  ;;  %v921_v53 = vld [vmem:[#allocation2 + $0xe8] sm:$0xf] }
 0x1d4   : > { %v1659_v39 = vsel %vm1619_vm5, %v1656_v46, %v1658_v37  ;;  %v1802_v20 = vsel %vm1764_vm6, %v1800_v47, %v1801_v58  ;;  %v1804_v62 = vsel %vm1764_vm6, %v1801_v58, %v1803_v40  ;;  %v2231_v0 = vmax.f32 %v2135_v43, %v2183_v2 }
 0x1d5   : > { %v1601_v14 = vmax.f32 %v1456_v55, %v1512_v59  ;;  %v1602_v18 = vmax.f32 %v1457_v34, %v1514_v23  ;;  %v2325_v25 = vmax.f32 %v2229_v16, %v6790_v9  ;;  %v2326_v1 = vmax.f32 %v2230_v41, %v6794_v52  ;;  %v6809_v55 = vld [vmem:[#allocation2 + $0xe8] sm:$0xf]  ;;  %v6813_v41 = vld [vmem:[#allocation2 + $0x18] sm:$0xff] }
 0x1d6   : > { %v967_v5 = vmax.f32 %v6679_v38, %v6714_v48  ;;  %v968_v10 = vmax.f32 %v6682_v56, %v6717_v19  ;;  %v969_v47 = vmax.f32 %v6780_v35, %v921_v53  ;;  %v2327_v27 = vmax.f32 %v2231_v0, %v2279_v21 }
 0x1d7   : > { %v1746_v42 = vmax.f32 %v1601_v14, %v1657_v33  ;;  %v1747_v45 = vmax.f32 %v1602_v18, %v1659_v39  ;;  %v2421_v60 = vrot.slane %v2325_v25, 1  ;;  %v2422_v46 = vrot.slane %v2326_v1, 1  ;;  %v1017_v39 = vld [vmem:[#allocation2 + $0x100] sm:$0xf] }
 0x1d8   : > { %v2565_v37 = vrot.slane %v2325_v25, 2  ;;  %v2566_v43 = vrot.slane %v2326_v1, 2  ;;  %v2709_v58 = vrot.slane %v2325_v25, 3  ;;  %v2424_v28 = vrot.slane %v2327_v27, 1 }
 0x1d9   : > { %v1891_v16 = vmax.f32 %v1746_v42, %v1802_v20  ;;  %v1892_v61 = vmax.f32 %v1747_v45, %v1804_v62  ;;  %v2568_v59 = vrot.slane %v2327_v27, 2  ;;  %v2423_v40 = vsel %vm1329_vm3, %v2421_v60, %v2422_v46  ;;  %v6821_v45 = vld [vmem:[#allocation2 + $0x20] sm:$0xff] }
 0x1da   : > { %v2567_v38 = vsel %vm1474_vm4, %v2565_v37, %v2566_v43  ;;  %v2710_v2 = vrot.slane %v2326_v1, 3  ;;  %v2712_v56 = vrot.slane %v2327_v27, 3  ;;  %v2425_v34 = vsel %vm1329_vm3, %v2422_v46, %v2424_v28 }
 0x1db   : > { %v4108_v35 = vpack.c.bf16 %v1892_v61, %v1891_v16  ;;  %v2533_v23 = vmax.f32 %v2325_v25, %v2423_v40  ;;  %v2569_v33 = vsel %vm1474_vm4, %v2566_v43, %v2568_v59  ;;  %1923 = vst.msk [vmem:[#allocation2 + $0xda] sm:$0xff] %vm751_vm1, %v1891_v16  ;;  %1924 = vst.msk [vmem:[#allocation2 + $0xe2] sm:$0xff] %vm751_vm1, %v1892_v61  ;;  %v2853_v14 = vrot.slane %v2325_v25, 4  ;;  %v1946_v43 = vld [vmem:[#allocation2 + $0x28] sm:$0xf] }
 0x1dc   : > { %v2534_v20 = vmax.f32 %v2326_v1, %v2425_v34  ;;  %v2711_v62 = vsel %vm1619_vm5, %v2709_v58, %v2710_v2  ;;  %v2713_v21 = vsel %vm1619_vm5, %v2710_v2, %v2712_v56  ;;  %v2854_v0 = vrot.slane %v2326_v1, 4  ;;  %v1994_v16 = vld [vmem:[#allocation2 + $0x40] sm:$0xf]  ;;  %v1114_v1 = vld [vmem:[#allocation2 + $0x118] sm:$0xf] }
 0x1dd   : > { %4179 = vrot.lane.b32.xlu1 %v4108_v35, %s5571_s11  ;;  %v2677_v18 = vmax.f32 %v2533_v23, %v2567_v38  ;;  %v2856_v53 = vrot.slane %v2327_v27, 4  ;;  %v1063_v42 = vmax.f32 %v967_v5, %v6731_v26  ;;  %v1064_v46 = vmax.f32 %v968_v10, %v6736_v7 }
 0x1de   : > { %v2678_v60 = vmax.f32 %v2534_v20, %v2569_v33  ;;  %v1065_v37 = vmax.f32 %v969_v47, %v1017_v39  ;;  %v2040_v58 = vmax.f32 %v6813_v41, %v6757_v63  ;;  %v2855_v25 = vsel %vm1764_vm6, %v2853_v14, %v2854_v0  ;;  %v1949_v14 = vld [vmem:[#allocation2 + $0x40] sm:$0xf] }
 0x1df   : > { %v2821_v61 = vmax.f32 %v2677_v18, %v2711_v62  ;;  %v2857_v28 = vsel %vm1764_vm6, %v2854_v0, %v2856_v53  ;;  %v1160_v27 = vmax.f32 %v1063_v42, %v6769_v12  ;;  %v1161_v59 = vmax.f32 %v1064_v46, %v6773_v17 }
 0x1e0   : > { %v2822_v5 = vmax.f32 %v2678_v60, %v2713_v21  ;;  %v1162_v40 = vmax.f32 %v1065_v37, %v1114_v1  ;;  %v2041_v10 = vmax.f32 %v6821_v45, %v6761_v3  ;;  %v2042_v2 = vmax.f32 %v1946_v43, %v1994_v16 }
 0x1e1   : > { %v2965_v47 = vmax.f32 %v2821_v61, %v2855_v25  ;;  %v1257_v38 = vmax.f32 %v1160_v27, %v6412_v6  ;;  %v2136_v56 = vmax.f32 %v2040_v58, %v6766_v50  ;;  %v1258_v34 = vmax.f32 %v1161_v59, %v6414_v30  ;;  %v2186_v59 = vld [vmem:[#allocation2 + $0x70] sm:$0xf] }
 0x1e2   : > { %v2966_v35 = vmax.f32 %v2822_v5, %v2857_v28  ;;  %v1259_v23 = vmax.f32 %v1162_v40, %v6506_v4  ;;  %v2137_v33 = vmax.f32 %v2041_v10, %v6784_v22  ;;  %v2090_v4 = vld [vmem:[#allocation2 + $0x58] sm:$0xf] }
 0x1e3   : > { %v1370_v39 = vrot.slane %v1257_v38, 1  ;;  %v1515_v20 = vrot.slane %v1257_v38, 2  ;;  %v1660_v62 = vrot.slane %v1257_v38, 3  ;;  %v1805_v21 = vrot.slane %v1257_v38, 4  ;;  %2997 = vst.msk [vmem:[#allocation2 + $0x32] sm:$0xff] %vm751_vm1, %v2965_v47 }
 0x1e4   : > { %v4117_v18 = vpack.c.bf16 %v2966_v35, %v2965_v47  ;;  %v1371_v0 = vrot.slane %v1258_v34, 1  ;;  %v1373_v53 = vrot.slane %v1259_v23, 1  ;;  %v1516_v42 = vrot.slane %v1258_v34, 2  ;;  %2998 = vst.msk [vmem:[#allocation2 + $0x3a] sm:$0xff] %vm751_vm1, %v2966_v35  ;;  %v1997_v40 = vld [vmem:[#allocation2 + $0x58] sm:$0xf] }
 0x1e5   : > { %v1518_v60 = vrot.slane %v1259_v23, 2  ;;  %v1661_v46 = vrot.slane %v1258_v34, 3  ;;  %v1663_v37 = vrot.slane %v1259_v23, 3  ;;  %v1806_v43 = vrot.slane %v1258_v34, 4 }
 0x1e6   : > { %4213 = vrot.lane.b32.xlu1 %v4117_v18, %s5572_s12  ;;  %v1372_v16 = vsel %vm1329_vm3, %v1370_v39, %v1371_v0  ;;  %v1374_v58 = vsel %vm1329_vm3, %v1371_v0, %v1373_v53  ;;  %v1517_v61 = vsel %vm1474_vm4, %v1515_v20, %v1516_v42  ;;  %v1808_v25 = vrot.slane %v1259_v23, 4  ;;  %v6848_v18 = vld [vmem:[#allocation2 + $0x78] sm:$0xff]  ;;  %v6850_v0 = vld [vmem:[#allocation2 + $0x80] sm:$0xff]  ;;  %v2093_v53 = vld [vmem:[#allocation2 + $0x70] sm:$0xf] }
 0x1e7   : > { %v1458_v28 = vmax.f32 %v1257_v38, %v1372_v16  ;;  %v1459_v1 = vmax.f32 %v1258_v34, %v1374_v58  ;;  %v1519_v27 = vsel %vm1474_vm4, %v1516_v42, %v1518_v60  ;;  %v1662_v5 = vsel %vm1619_vm5, %v1660_v62, %v1661_v46  ;;  %v2282_v62 = vld [vmem:[#allocation2 + $0x88] sm:$0xf] }
 0x1e8   : > { %v1664_v10 = vsel %vm1619_vm5, %v1661_v46, %v1663_v37  ;;  %v1807_v47 = vsel %vm1764_vm6, %v1805_v21, %v1806_v43  ;;  %v1809_v35 = vsel %vm1764_vm6, %v1806_v43, %v1808_v25  ;;  %v2138_v39 = vmax.f32 %v2042_v2, %v2090_v4 }
 0x1e9   : > { %v1603_v23 = vmax.f32 %v1458_v28, %v1517_v61  ;;  %v1604_v38 = vmax.f32 %v1459_v1, %v1519_v27  ;;  %v2232_v34 = vmax.f32 %v2136_v56, %v6790_v9  ;;  %v2233_v20 = vmax.f32 %v2137_v33, %v6794_v52 }
 0x1ea   : > { %v2234_v42 = vmax.f32 %v2138_v39, %v2186_v59  ;;  %v2043_v60 = vmax.f32 %v6757_v63, %v6766_v50  ;;  %v2044_v21 = vmax.f32 %v6761_v3, %v6784_v22  ;;  %v2045_v2 = vmax.f32 %v1949_v14, %v1997_v40 }
 0x1eb   : > { %v1748_v46 = vmax.f32 %v1603_v23, %v1662_v5  ;;  %v1749_v37 = vmax.f32 %v1604_v38, %v1664_v10  ;;  %v2328_v43 = vmax.f32 %v2232_v34, %v6848_v18  ;;  %v2329_v4 = vmax.f32 %v2233_v20, %v6850_v0  ;;  %v6862_v5 = vld [vmem:[#allocation2 + $0x100] sm:$0xf]  ;;  %v2189_v34 = vld [vmem:[#allocation2 + $0x88] sm:$0xf] }
 0x1ec   : > { %v2330_v16 = vmax.f32 %v2234_v42, %v2282_v62  ;;  %v2139_v56 = vmax.f32 %v2043_v60, %v6790_v9  ;;  %v2140_v33 = vmax.f32 %v2044_v21, %v6794_v52  ;;  %v2141_v58 = vmax.f32 %v2045_v2, %v2093_v53  ;;  %v6872_v60 = vld [vmem:[#allocation2 + $0x90] sm:$0xff] }
 0x1ed   : > { %v1893_v61 = vmax.f32 %v1748_v46, %v1807_v47  ;;  %v1894_v25 = vmax.f32 %v1749_v37, %v1809_v35  ;;  %v2426_v28 = vrot.slane %v2328_v43, 1  ;;  %v2427_v63 = vrot.slane %v2329_v4, 1 }
 0x1ee   : > { %v2429_v1 = vrot.slane %v2330_v16, 1  ;;  %v2570_v27 = vrot.slane %v2328_v43, 2  ;;  %v2571_v3 = vrot.slane %v2329_v4, 2  ;;  %v2573_v14 = vrot.slane %v2330_v16, 2 }
 0x1ef   : > { %v4109_v59 = vpack.c.bf16 %v1894_v25, %v1893_v61  ;;  %v2428_v40 = vsel %vm1329_vm3, %v2426_v28, %v2427_v63  ;;  %v2714_v10 = vrot.slane %v2328_v43, 3  ;;  %v2715_v39 = vrot.slane %v2329_v4, 3  ;;  %1925 = vst.msk [vmem:[#allocation2 + $0xf2] sm:$0xff] %vm751_vm1, %v1893_v61  ;;  %1926 = vst.msk [vmem:[#allocation2 + $0xfa] sm:$0xff] %vm751_vm1, %v1894_v25  ;;  %v6875_v61 = vld [vmem:[#allocation2 + $0x98] sm:$0xff] }
 0x1f0   : > { %v2430_v47 = vsel %vm1329_vm3, %v2427_v63, %v2429_v1  ;;  %v2535_v35 = vmax.f32 %v2328_v43, %v2428_v40  ;;  %v2572_v23 = vsel %vm1474_vm4, %v2570_v27, %v2571_v3  ;;  %v2574_v38 = vsel %vm1474_vm4, %v2571_v3, %v2573_v14  ;;  %v2285_v25 = vld [vmem:[#allocation2 + $0xa0] sm:$0xf] }
 0x1f1   : > { %4181 = vrot.lane.b32.xlu0 %v4109_v59, %s5571_s11  ;;  %v2536_v20 = vmax.f32 %v2329_v4, %v2430_v47  ;;  %v2716_v62 = vsel %vm1619_vm5, %v2714_v10, %v2715_v39  ;;  %v2717_v53 = vrot.slane %v2330_v16, 3  ;;  %v2858_v42 = vrot.slane %v2328_v43, 4 }
 0x1f2   : > { %v2679_v21 = vmax.f32 %v2535_v35, %v2572_v23  ;;  %v2859_v2 = vrot.slane %v2329_v4, 4  ;;  %v2861_v46 = vrot.slane %v2330_v16, 4  ;;  %v2235_v37 = vmax.f32 %v2139_v56, %v6848_v18 }
 0x1f3   : > { %v2680_v28 = vmax.f32 %v2536_v20, %v2574_v38  ;;  %v2718_v63 = vsel %vm1619_vm5, %v2715_v39, %v2717_v53  ;;  %v2236_v1 = vmax.f32 %v2140_v33, %v6850_v0  ;;  %v2237_v27 = vmax.f32 %v2141_v58, %v2189_v34 }
 0x1f4   : > { %v2823_v3 = vmax.f32 %v2679_v21, %v2716_v62  ;;  %v2860_v14 = vsel %vm1764_vm6, %v2858_v42, %v2859_v2  ;;  %v2862_v43 = vsel %vm1764_vm6, %v2859_v2, %v2861_v46  ;;  %v2331_v59 = vmax.f32 %v2235_v37, %v6872_v60  ;;  %v1952_v42 = vld [vmem:[#allocation2 + $0x58] sm:$0xf] }
 0x1f5   : > { %v2824_v4 = vmax.f32 %v2680_v28, %v2718_v63  ;;  %v2332_v16 = vmax.f32 %v2236_v1, %v6875_v61  ;;  %v2333_v56 = vmax.f32 %v2237_v27, %v2285_v25  ;;  %v970_v40 = vmax.f32 %v6714_v48, %v6731_v26 }
 0x1f6   : > { %v2967_v10 = vmax.f32 %v2823_v3, %v2860_v14  ;;  %v2431_v47 = vrot.slane %v2331_v59, 1  ;;  %v2575_v39 = vrot.slane %v2331_v59, 2  ;;  %v2719_v35 = vrot.slane %v2331_v59, 3 }
 0x1f7   : > { %v2968_v33 = vmax.f32 %v2824_v4, %v2862_v43  ;;  %v2432_v58 = vrot.slane %v2332_v16, 1  ;;  %v2434_v23 = vrot.slane %v2333_v56, 1  ;;  %v2576_v38 = vrot.slane %v2332_v16, 2 }
 0x1f8   : > { %v2578_v34 = vrot.slane %v2333_v56, 2  ;;  %v2720_v20 = vrot.slane %v2332_v16, 3  ;;  %v2722_v62 = vrot.slane %v2333_v56, 3  ;;  %v2863_v53 = vrot.slane %v2331_v59, 4  ;;  %2999 = vst.msk [vmem:[#allocation2 + $0x4a] sm:$0xff] %vm751_vm1, %v2967_v10 }
 0x1f9   : > { %v4118_v21 = vpack.c.bf16 %v2968_v33, %v2967_v10  ;;  %v2433_v2 = vsel %vm1329_vm3, %v2431_v47, %v2432_v58  ;;  %v2435_v48 = vsel %vm1329_vm3, %v2432_v58, %v2434_v23  ;;  %v2577_v26 = vsel %vm1474_vm4, %v2575_v39, %v2576_v38  ;;  %3000 = vst.msk [vmem:[#allocation2 + $0x52] sm:$0xff] %vm751_vm1, %v2968_v33  ;;  %v2000_v10 = vld [vmem:[#allocation2 + $0x70] sm:$0xf]  ;;  %v2096_v23 = vld [vmem:[#allocation2 + $0x88] sm:$0xf] }
 0x1fa   : > { %v2537_v46 = vmax.f32 %v2331_v59, %v2433_v2  ;;  %v2538_v37 = vmax.f32 %v2332_v16, %v2435_v48  ;;  %v2579_v25 = vsel %vm1474_vm4, %v2576_v38, %v2578_v34  ;;  %v2721_v28 = vsel %vm1619_vm5, %v2719_v35, %v2720_v20  ;;  %v1020_v35 = vld [vmem:[#allocation2 + $0x118] sm:$0xf] }
 0x1fb   : > { %4215 = vrot.lane.b32.xlu1 %v4118_v21, %s5572_s12  ;;  %v2723_v63 = vsel %vm1619_vm5, %v2720_v20, %v2722_v62  ;;  %v2864_v1 = vrot.slane %v2332_v16, 4  ;;  %v2866_v27 = vrot.slane %v2333_v56, 4  ;;  %v971_v3 = vmax.f32 %v6717_v19, %v6736_v7 }
 0x1fc   : > { %v2681_v14 = vmax.f32 %v2537_v46, %v2577_v26  ;;  %v2682_v43 = vmax.f32 %v2538_v37, %v2579_v25  ;;  %v972_v4 = vmax.f32 %v6809_v55, %v6862_v5  ;;  %v1066_v59 = vmax.f32 %v970_v40, %v6769_v12 }
 0x1fd   : > { %v2865_v47 = vsel %vm1764_vm6, %v2863_v53, %v2864_v1  ;;  %v2867_v39 = vsel %vm1764_vm6, %v2864_v1, %v2866_v27  ;;  %v1067_v33 = vmax.f32 %v971_v3, %v6773_v17  ;;  %v2046_v16 = vmax.f32 %v6766_v50, %v6790_v9 }
 0x1fe   : > { %v2825_v56 = vmax.f32 %v2681_v14, %v2721_v28  ;;  %v2826_v19 = vmax.f32 %v2682_v43, %v2723_v63  ;;  %v1068_v7 = vmax.f32 %v972_v4, %v1020_v35  ;;  %v1163_v58 = vmax.f32 %v1066_v59, %v6412_v6  ;;  %v2192_v14 = vld [vmem:[#allocation2 + $0xa0] sm:$0xf]  ;;  %v6923_v43 = vld [vmem:[#allocation2 + $0xa8] sm:$0xff] }
 0x1ff   : > { %v1164_v55 = vmax.f32 %v1067_v33, %v6414_v30  ;;  %v2047_v12 = vmax.f32 %v6784_v22, %v6794_v52  ;;  %v2048_v5 = vmax.f32 %v1952_v42, %v2000_v10  ;;  %v2142_v40 = vmax.f32 %v2046_v16, %v6848_v18  ;;  %v6914_v30 = vld [vmem:[#allocation2 + $0x70] sm:$0xf]  ;;  %v8328_v22 = vld [vmem:[#allocation41_spill] sm:$0xff] }
 0x200   : > { %v2969_v38 = vmax.f32 %v2825_v56, %v2865_v47  ;;  %v2970_v34 = vmax.f32 %v2826_v19, %v2867_v39  ;;  %v1165_v17 = vmax.f32 %v1068_v7, %v6508_v32  ;;  %v1260_v50 = vmax.f32 %v1163_v58, %v6496_v13  ;;  %v6928_v39 = vld [vmem:[#allocation2 + $0xb0] sm:$0xff]  ;;  %v2288_v19 = vld [vmem:[#allocation2 + $0xb8] sm:$0xf] }
 0x201   : > { %v1261_v20 = vmax.f32 %v1164_v55, %v6498_v51  ;;  %v2143_v62 = vmax.f32 %v2047_v12, %v6850_v0  ;;  %v2144_v6 = vmax.f32 %v2048_v5, %v2096_v23  ;;  %v2238_v53 = vmax.f32 %v2142_v40, %v6872_v60 }
 0x202   : > { %v4119_v21 = vpack.c.bf16 %v2970_v34, %v2969_v38  ;;  %v1262_v42 = vmax.f32 %v1165_v17, %v8328_v22  ;;  %v1375_v2 = vrot.slane %v1260_v50, 1  ;;  %v1520_v48 = vrot.slane %v1260_v50, 2  ;;  %3001 = vst.msk [vmem:[#allocation2 + $0x62] sm:$0xff] %vm751_vm1, %v2969_v38  ;;  %3002 = vst.msk [vmem:[#allocation2 + $0x6a] sm:$0xff] %vm751_vm1, %v2970_v34 }
 0x203   : > { %v1376_v32 = vrot.slane %v1261_v20, 1  ;;  %v1521_v13 = vrot.slane %v1261_v20, 2  ;;  %v1665_v26 = vrot.slane %v1260_v50, 3  ;;  %v1666_v51 = vrot.slane %v1261_v20, 3 }
 0x204   : > { %4217 = vrot.lane.b32.xlu0 %v4119_v21, %s5572_s12  ;;  %v1378_v46 = vrot.slane %v1262_v42, 1  ;;  %v1523_v37 = vrot.slane %v1262_v42, 2  ;;  %v1668_v25 = vrot.slane %v1262_v42, 3  ;;  %v1810_v28 = vrot.slane %v1260_v50, 4 }
 0x205   : > { %v1377_v63 = vsel %vm1329_vm3, %v1375_v2, %v1376_v32  ;;  %v1522_v1 = vsel %vm1474_vm4, %v1520_v48, %v1521_v13  ;;  %v1667_v27 = vsel %vm1619_vm5, %v1665_v26, %v1666_v51  ;;  %v1811_v3 = vrot.slane %v1261_v20, 4 }
 0x206   : > { %v1379_v4 = vsel %vm1329_vm3, %v1376_v32, %v1378_v46  ;;  %v1460_v59 = vmax.f32 %v1260_v50, %v1377_v63  ;;  %v1524_v10 = vsel %vm1474_vm4, %v1521_v13, %v1523_v37  ;;  %v1669_v47 = vsel %vm1619_vm5, %v1666_v51, %v1668_v25  ;;  %v2003_v51 = vld [vmem:[#allocation2 + $0x88] sm:$0xf] }
 0x207   : > { %v1461_v35 = vmax.f32 %v1261_v20, %v1379_v4  ;;  %v1812_v33 = vsel %vm1764_vm6, %v1810_v28, %v1811_v3  ;;  %v1813_v16 = vrot.slane %v1262_v42, 4  ;;  %v2239_v56 = vmax.f32 %v2143_v62, %v6875_v61 }
 0x208   : > { %v1605_v7 = vmax.f32 %v1460_v59, %v1522_v1  ;;  %v2240_v58 = vmax.f32 %v2144_v6, %v2192_v14  ;;  %v2334_v23 = vmax.f32 %v2238_v53, %v6923_v43  ;;  %v2049_v55 = vmax.f32 %v6790_v9, %v6848_v18 }
 0x209   : > { %v1606_v12 = vmax.f32 %v1461_v35, %v1524_v10  ;;  %v1814_v5 = vsel %vm1764_vm6, %v1811_v3, %v1813_v16  ;;  %v2335_v40 = vmax.f32 %v2239_v56, %v6928_v39  ;;  %v2050_v38 = vmax.f32 %v6794_v52, %v6850_v0  ;;  %v2099_v3 = vld [vmem:[#allocation2 + $0xa0] sm:$0xf]  ;;  %v2195_v16 = vld [vmem:[#allocation2 + $0xb8] sm:$0xf] }
 0x20a   : > { %v1750_v34 = vmax.f32 %v1605_v7, %v1667_v27  ;;  %v2336_v17 = vmax.f32 %v2240_v58, %v2288_v19  ;;  %v2436_v50 = vrot.slane %v2334_v23, 1  ;;  %v2580_v20 = vrot.slane %v2334_v23, 2  ;;  %v2006_v56 = vld [vmem:[#allocation2 + $0xa0] sm:$0xf] }
 0x20b   : > { %v1751_v62 = vmax.f32 %v1606_v12, %v1669_v47  ;;  %v2437_v21 = vrot.slane %v2335_v40, 1  ;;  %v2581_v6 = vrot.slane %v2335_v40, 2  ;;  %v2724_v22 = vrot.slane %v2334_v23, 3 }
 0x20c   : > { %v1895_v53 = vmax.f32 %v1750_v34, %v1812_v33  ;;  %v2439_v42 = vrot.slane %v2336_v17, 1  ;;  %v2583_v2 = vrot.slane %v2336_v17, 2  ;;  %v2725_v9 = vrot.slane %v2335_v40, 3  ;;  %v2291_v34 = vld [vmem:[#allocation2 + $0xd0] sm:$0xf] }
 0x20d   : > { %v1896_v48 = vmax.f32 %v1751_v62, %v1814_v5  ;;  %v2438_v32 = vsel %vm1329_vm3, %v2436_v50, %v2437_v21  ;;  %v2582_v13 = vsel %vm1474_vm4, %v2580_v20, %v2581_v6  ;;  %v2727_v26 = vrot.slane %v2336_v17, 3  ;;  %v6955_v5 = vld [vmem:[#allocation2 + $0xc0] sm:$0xff]  ;;  %v2102_v50 = vld [vmem:[#allocation2 + $0xb8] sm:$0xf] }
 0x20e   : > { %1927 = vst.msk [vmem:[#allocation2 + $0x10a] sm:$0xff] %vm751_vm1, %v1895_v53  ;;  %v2440_v52 = vsel %vm1329_vm3, %v2437_v21, %v2439_v42  ;;  %v2539_v46 = vmax.f32 %v2334_v23, %v2438_v32  ;;  %v2584_v37 = vsel %vm1474_vm4, %v2581_v6, %v2583_v2  ;;  %v2726_v25 = vsel %vm1619_vm5, %v2724_v22, %v2725_v9 }
 0x20f   : > { %v4110_v28 = vpack.c.bf16 %v1896_v48, %v1895_v53  ;;  %1928 = vst.msk [vmem:[#allocation2 + $0x112] sm:$0xff] %vm751_vm1, %v1896_v48  ;;  %v2540_v63 = vmax.f32 %v2335_v40, %v2440_v52  ;;  %v2728_v1 = vsel %vm1619_vm5, %v2725_v9, %v2727_v26  ;;  %v2868_v27 = vrot.slane %v2334_v23, 4 }
 0x210   : > { %v2683_v14 = vmax.f32 %v2539_v46, %v2582_v13  ;;  %v2869_v4 = vrot.slane %v2335_v40, 4  ;;  %v2871_v59 = vrot.slane %v2336_v17, 4  ;;  %v2051_v10 = vmax.f32 %v6914_v30, %v2003_v51  ;;  %v6957_v30 = vld [vmem:[#allocation2 + $0xc8] sm:$0xff] }
 0x211   : > { %4183 = vrot.lane.b32.xlu1 %v4110_v28, %s5571_s11  ;;  %v2684_v47 = vmax.f32 %v2540_v63, %v2584_v37  ;;  %v2145_v35 = vmax.f32 %v2049_v55, %v6872_v60  ;;  %v2146_v33 = vmax.f32 %v2050_v38, %v6875_v61  ;;  %v2052_v19 = vmax.f32 %v6848_v18, %v6872_v60  ;;  %v1958_v17 = vld [vmem:[#allocation2 + $0x88] sm:$0xf] }
 0x212   : > { %v2827_v7 = vmax.f32 %v2683_v14, %v2726_v25  ;;  %v2870_v58 = vsel %vm1764_vm6, %v2868_v27, %v2869_v4  ;;  %v2872_v23 = vsel %vm1764_vm6, %v2869_v4, %v2871_v59  ;;  %v2147_v12 = vmax.f32 %v2051_v10, %v2099_v3  ;;  %v2198_v14 = vld [vmem:[#allocation2 + $0xd0] sm:$0xf] }
 0x213   : > { %v2828_v40 = vmax.f32 %v2684_v47, %v2728_v1  ;;  %v2241_v55 = vmax.f32 %v2145_v35, %v6923_v43  ;;  %v2242_v38 = vmax.f32 %v2146_v33, %v6928_v39  ;;  %v2053_v18 = vmax.f32 %v6850_v0, %v6875_v61  ;;  %v6977_v35 = vld [vmem:[#allocation2 + $0xd8] sm:$0xff] }
 0x214   : > { %v2971_v20 = vmax.f32 %v2827_v7, %v2870_v58  ;;  %v2243_v62 = vmax.f32 %v2147_v12, %v2195_v16  ;;  %v2054_v21 = vmax.f32 %v1958_v17, %v2006_v56  ;;  %v2148_v6 = vmax.f32 %v2052_v19, %v6923_v43  ;;  %v6981_v7 = vld [vmem:[#allocation2 + $0xe0] sm:$0xff]  ;;  %v2294_v58 = vld [vmem:[#allocation2 + $0xe8] sm:$0xf] }
 0x215   : > { %v2972_v22 = vmax.f32 %v2828_v40, %v2872_v23  ;;  %v2337_v53 = vmax.f32 %v2241_v55, %v6955_v5  ;;  %v2338_v42 = vmax.f32 %v2242_v38, %v6957_v30  ;;  %v2149_v2 = vmax.f32 %v2053_v18, %v6928_v39 }
 0x216   : > { %v2339_v9 = vmax.f32 %v2243_v62, %v2291_v34  ;;  %v2150_v48 = vmax.f32 %v2054_v21, %v2102_v50  ;;  %v2244_v32 = vmax.f32 %v2148_v6, %v6955_v5  ;;  %3003 = vst.msk [vmem:[#allocation2 + $0x7a] sm:$0xff] %vm751_vm1, %v2971_v20  ;;  %v2055_v0 = vmax.f32 %v6872_v60, %v6923_v43  ;;  %v7011_v60 = vld [vmem:[#allocation2 + $0xf8] sm:$0xff] }
 0x217   : > { %v4120_v13 = vpack.c.bf16 %v2972_v22, %v2971_v20  ;;  %v2441_v26 = vrot.slane %v2337_v53, 1  ;;  %v2442_v51 = vrot.slane %v2338_v42, 1  ;;  %v2585_v52 = vrot.slane %v2337_v53, 2  ;;  %3004 = vst.msk [vmem:[#allocation2 + $0x82] sm:$0xff] %vm751_vm1, %v2972_v22 }
 0x218   : > { %v2444_v46 = vrot.slane %v2339_v9, 1  ;;  %v2586_v37 = vrot.slane %v2338_v42, 2  ;;  %v2588_v25 = vrot.slane %v2339_v9, 2  ;;  %v2729_v28 = vrot.slane %v2337_v53, 3 }
 0x219   : > { %4219 = vrot.lane.b32.xlu1 %v4120_v13, %s5572_s12  ;;  %v2443_v63 = vsel %vm1329_vm3, %v2441_v26, %v2442_v51  ;;  %v2730_v1 = vrot.slane %v2338_v42, 3  ;;  %v2732_v27 = vrot.slane %v2339_v9, 3  ;;  %v2873_v3 = vrot.slane %v2337_v53, 4 }
 0x21a   : > { %v2445_v4 = vsel %vm1329_vm3, %v2442_v51, %v2444_v46  ;;  %v2541_v59 = vmax.f32 %v2337_v53, %v2443_v63  ;;  %v2587_v10 = vsel %vm1474_vm4, %v2585_v52, %v2586_v37  ;;  %v2589_v47 = vsel %vm1474_vm4, %v2586_v37, %v2588_v25  ;;  %v2009_v63 = vld [vmem:[#allocation2 + $0xb8] sm:$0xf] }
 0x21b   : > { %v2542_v33 = vmax.f32 %v2338_v42, %v2445_v4  ;;  %v2731_v16 = vsel %vm1619_vm5, %v2729_v28, %v2730_v1  ;;  %v2733_v56 = vsel %vm1619_vm5, %v2730_v1, %v2732_v27  ;;  %v2874_v19 = vrot.slane %v2338_v42, 4  ;;  %v1961_v28 = vld [vmem:[#allocation2 + $0xa0] sm:$0xf] }
 0x21c   : > { %v2685_v23 = vmax.f32 %v2541_v59, %v2587_v10  ;;  %v2876_v12 = vrot.slane %v2339_v9, 4  ;;  %v2245_v40 = vmax.f32 %v2149_v2, %v6957_v30  ;;  %v2246_v55 = vmax.f32 %v2150_v48, %v2198_v14 }
 0x21d   : > { %v2686_v38 = vmax.f32 %v2542_v33, %v2589_v47  ;;  %v2875_v34 = vsel %vm1764_vm6, %v2873_v3, %v2874_v19  ;;  %v2340_v17 = vmax.f32 %v2244_v32, %v6977_v35  ;;  %v2056_v18 = vmax.f32 %v6875_v61, %v6928_v39  ;;  %v2105_v33 = vld [vmem:[#allocation2 + $0xd0] sm:$0xf] }
 0x21e   : > { %v2829_v50 = vmax.f32 %v2685_v23, %v2731_v16  ;;  %v2877_v20 = vsel %vm1764_vm6, %v2874_v19, %v2876_v12  ;;  %v2341_v62 = vmax.f32 %v2245_v40, %v6981_v7  ;;  %v2342_v21 = vmax.f32 %v2246_v55, %v2294_v58  ;;  %v2012_v23 = vld [vmem:[#allocation2 + $0xd0] sm:$0xf] }
 0x21f   : > { %v2830_v6 = vmax.f32 %v2686_v38, %v2733_v56  ;;  %v2446_v22 = vrot.slane %v2340_v17, 1  ;;  %v2590_v53 = vrot.slane %v2340_v17, 2  ;;  %v2734_v42 = vrot.slane %v2340_v17, 3  ;;  %v2201_v38 = vld [vmem:[#allocation2 + $0xe8] sm:$0xf] }
 0x220   : > { %v2973_v2 = vmax.f32 %v2829_v50, %v2875_v34  ;;  %v2447_v9 = vrot.slane %v2341_v62, 1  ;;  %v2449_v48 = vrot.slane %v2342_v21, 1  ;;  %v2591_v13 = vrot.slane %v2341_v62, 2  ;;  %v7006_v34 = vld [vmem:[#allocation2 + $0xf0] sm:$0xff] }
 0x221   : > { %v2974_v26 = vmax.f32 %v2830_v6, %v2877_v20  ;;  %v2593_v51 = vrot.slane %v2342_v21, 2  ;;  %v2735_v32 = vrot.slane %v2341_v62, 3  ;;  %v2737_v52 = vrot.slane %v2342_v21, 3  ;;  %v2108_v6 = vld [vmem:[#allocation2 + $0xe8] sm:$0xf] }
 0x222   : > { %v2448_v61 = vsel %vm1329_vm3, %v2446_v22, %v2447_v9  ;;  %v2450_v46 = vsel %vm1329_vm3, %v2447_v9, %v2449_v48  ;;  %v2592_v37 = vsel %vm1474_vm4, %v2590_v53, %v2591_v13  ;;  %v2878_v25 = vrot.slane %v2340_v17, 4  ;;  %3005 = vst.msk [vmem:[#allocation2 + $0x92] sm:$0xff] %vm751_vm1, %v2973_v2  ;;  %v2297_v53 = vld [vmem:[#allocation2 + $0x100] sm:$0xf] }
 0x223   : > { %v4121_v1 = vpack.c.bf16 %v2974_v26, %v2973_v2  ;;  %v2543_v27 = vmax.f32 %v2340_v17, %v2448_v61  ;;  %v2544_v3 = vmax.f32 %v2341_v62, %v2450_v46  ;;  %v2594_v14 = vsel %vm1474_vm4, %v2591_v13, %v2593_v51  ;;  %3006 = vst.msk [vmem:[#allocation2 + $0x9a] sm:$0xff] %vm751_vm1, %v2974_v26 }
 0x224   : > { %v2736_v4 = vsel %vm1619_vm5, %v2734_v42, %v2735_v32  ;;  %v2738_v59 = vsel %vm1619_vm5, %v2735_v32, %v2737_v52  ;;  %v2879_v10 = vrot.slane %v2341_v62, 4  ;;  %v2881_v47 = vrot.slane %v2342_v21, 4 }
 0x225   : > { %4221 = vrot.lane.b32.xlu0 %v4121_v1, %s5572_s12  ;;  %v2687_v16 = vmax.f32 %v2543_v27, %v2592_v37  ;;  %v2688_v56 = vmax.f32 %v2544_v3, %v2594_v14  ;;  %v2057_v19 = vmax.f32 %v1961_v28, %v2009_v63  ;;  %v2151_v58 = vmax.f32 %v2055_v0, %v6955_v5  ;;  %v1964_v0 = vld [vmem:[#allocation2 + $0xb8] sm:$0xf] }
 0x226   : > { %v2880_v12 = vsel %vm1764_vm6, %v2878_v25, %v2879_v10  ;;  %v2882_v40 = vsel %vm1764_vm6, %v2879_v10, %v2881_v47  ;;  %v2152_v55 = vmax.f32 %v2056_v18, %v6957_v30  ;;  %v2058_v17 = vmax.f32 %v6923_v43, %v6955_v5 }
 0x227   : > { %v2831_v50 = vmax.f32 %v2687_v16, %v2736_v4  ;;  %v2832_v20 = vmax.f32 %v2688_v56, %v2738_v59  ;;  %v2153_v62 = vmax.f32 %v2057_v19, %v2105_v33  ;;  %v2247_v21 = vmax.f32 %v2151_v58, %v6977_v35  ;;  %v2204_v16 = vld [vmem:[#allocation2 + $0x100] sm:$0xf]  ;;  %v7027_v56 = vld [vmem:[#allocation2 + $0x108] sm:$0xff] }
 0x228   : > { %v2248_v22 = vmax.f32 %v2152_v55, %v6981_v7  ;;  %v2059_v18 = vmax.f32 %v6928_v39, %v6957_v30  ;;  %v2060_v42 = vmax.f32 %v1964_v0, %v2012_v23  ;;  %v2154_v2 = vmax.f32 %v2058_v17, %v6977_v35  ;;  %v7029_v19 = vld [vmem:[#allocation2] sm:$0xff]  ;;  %v7034_v55 = vld [vmem:[#allocation2 + $0x110] sm:$0xff] }
 0x229   : > { %v2975_v9 = vmax.f32 %v2831_v50, %v2880_v12  ;;  %v2976_v43 = vmax.f32 %v2832_v20, %v2882_v40  ;;  %v2249_v48 = vmax.f32 %v2153_v62, %v2201_v38  ;;  %v2343_v13 = vmax.f32 %v2247_v21, %v7006_v34  ;;  %v3030_v38 = vld [vmem:[#allocation2 + $0x8] sm:$0xff]  ;;  %v2300_v21 = vld [vmem:[#allocation2 + $0x118] sm:$0xf] }
 0x22a   : > { %v2344_v26 = vmax.f32 %v2248_v22, %v7011_v60  ;;  %v2155_v51 = vmax.f32 %v2059_v18, %v6981_v7  ;;  %v2156_v32 = vmax.f32 %v2060_v42, %v2108_v6  ;;  %v2250_v52 = vmax.f32 %v2154_v2, %v7006_v34 }
 0x22b   : > { %v4122_v61 = vpack.c.bf16 %v2976_v43, %v2975_v9  ;;  %v2345_v46 = vmax.f32 %v2249_v48, %v2297_v53  ;;  %v2451_v37 = vrot.slane %v2343_v13, 1  ;;  %v2595_v25 = vrot.slane %v2343_v13, 2  ;;  %3007 = vst.msk [vmem:[#allocation2 + $0xaa] sm:$0xff] %vm751_vm1, %v2975_v9  ;;  %3008 = vst.msk [vmem:[#allocation2 + $0xb2] sm:$0xff] %vm751_vm1, %v2976_v43 }
 0x22c   : > { %v2452_v39 = vrot.slane %v2344_v26, 1  ;;  %v2596_v28 = vrot.slane %v2344_v26, 2  ;;  %v2739_v63 = vrot.slane %v2343_v13, 3  ;;  %v2740_v1 = vrot.slane %v2344_v26, 3 }
 0x22d   : > { %4223 = vrot.lane.b32.xlu1 %v4122_v61, %s5572_s12  ;;  %v2454_v27 = vrot.slane %v2345_v46, 1  ;;  %v2598_v3 = vrot.slane %v2345_v46, 2  ;;  %v2742_v14 = vrot.slane %v2345_v46, 3  ;;  %v2883_v4 = vrot.slane %v2343_v13, 4 }
 0x22e   : > { %v2453_v59 = vsel %vm1329_vm3, %v2451_v37, %v2452_v39  ;;  %v2597_v10 = vsel %vm1474_vm4, %v2595_v25, %v2596_v28  ;;  %v2741_v47 = vsel %vm1619_vm5, %v2739_v63, %v2740_v1  ;;  %v2884_v33 = vrot.slane %v2344_v26, 4 }
 0x22f   : > { %v2455_v58 = vsel %vm1329_vm3, %v2452_v39, %v2454_v27  ;;  %v2545_v23 = vmax.f32 %v2343_v13, %v2453_v59  ;;  %v2599_v12 = vsel %vm1474_vm4, %v2596_v28, %v2598_v3  ;;  %v2743_v40 = vsel %vm1619_vm5, %v2740_v1, %v2742_v14  ;;  %v3031_v27 = vld [vmem:[#allocation2 + $0x10] sm:$0xf]  ;;  %v3032_v3 = vld [vmem:[#allocation2 + $0x18] sm:$0xff] }
 0x230   : > { %v2546_v17 = vmax.f32 %v2344_v26, %v2455_v58  ;;  %v2885_v50 = vsel %vm1764_vm6, %v2883_v4, %v2884_v33  ;;  %v2886_v20 = vrot.slane %v2345_v46, 4  ;;  %v2251_v62 = vmax.f32 %v2155_v51, %v7011_v60 }
 0x231   : > { %v2689_v0 = vmax.f32 %v2545_v23, %v2597_v10  ;;  %v2252_v6 = vmax.f32 %v2156_v32, %v2204_v16  ;;  %v2346_v22 = vmax.f32 %v2250_v52, %v7027_v56  ;;  %v3125_v53 = vmax.f32 %v7029_v19, %v6813_v41  ;;  %v7053_v16 = vld [vmem:[#allocation2 + $0xd0] sm:$0xf] }
 0x232   : > { %v2690_v18 = vmax.f32 %v2546_v17, %v2599_v12  ;;  %v2887_v42 = vsel %vm1764_vm6, %v2884_v33, %v2886_v20  ;;  %v2347_v2 = vmax.f32 %v2251_v62, %v7034_v55  ;;  %v3126_v9 = vmax.f32 %v3030_v38, %v6821_v45  ;;  %v3079_v45 = vld [vmem:[#allocation2 + $0x28] sm:$0xf]  ;;  %v7051_v33 = vld [vmem:[#allocation2 + $0x38] sm:$0xff] }
 0x233   : > { %v2833_v43 = vmax.f32 %v2689_v0, %v2741_v47  ;;  %v2348_v48 = vmax.f32 %v2252_v6, %v2300_v21  ;;  %v2456_v13 = vrot.slane %v2346_v22, 1  ;;  %v2600_v26 = vrot.slane %v2346_v22, 2  ;;  %v7049_v47 = vld [vmem:[#allocation2 + $0x30] sm:$0xff]  ;;  %v7058_v62 = vld [vmem:[#allocation2 + $0x48] sm:$0xff]  ;;  %v3033_v0 = vld [vmem:[#allocation2 + $0x20] sm:$0xff] }
 0x234   : > { %v2834_v51 = vmax.f32 %v2690_v18, %v2743_v40  ;;  %v2457_v61 = vrot.slane %v2347_v2, 1  ;;  %v2601_v46 = vrot.slane %v2347_v2, 2  ;;  %v2744_v32 = vrot.slane %v2346_v22, 3  ;;  %v3175_v40 = vld [vmem:[#allocation2 + $0x40] sm:$0xf]  ;;  %v7060_v21 = vld [vmem:[#allocation2 + $0x50] sm:$0xff] }
 0x235   : > { %v2977_v37 = vmax.f32 %v2833_v43, %v2885_v50  ;;  %v2459_v52 = vrot.slane %v2348_v48, 1  ;;  %v2603_v25 = vrot.slane %v2348_v48, 2  ;;  %v2745_v39 = vrot.slane %v2347_v2, 3  ;;  %v3034_v43 = vld [vmem:[#allocation2 + $0x28] sm:$0xf] }
 0x236   : > { %v2978_v41 = vmax.f32 %v2834_v51, %v2887_v42  ;;  %v2458_v28 = vsel %vm1329_vm3, %v2456_v13, %v2457_v61  ;;  %v2602_v63 = vsel %vm1474_vm4, %v2600_v26, %v2601_v46  ;;  %v2747_v1 = vrot.slane %v2348_v48, 3  ;;  %v3082_v13 = vld [vmem:[#allocation2 + $0x40] sm:$0xf] }
 0x237   : > { %v2460_v14 = vsel %vm1329_vm3, %v2457_v61, %v2459_v52  ;;  %v2547_v4 = vmax.f32 %v2346_v22, %v2458_v28  ;;  %v2604_v59 = vsel %vm1474_vm4, %v2601_v46, %v2603_v25  ;;  %v2746_v10 = vsel %vm1619_vm5, %v2744_v32, %v2745_v39  ;;  %3009 = vst.msk [vmem:[#allocation2 + $0xc2] sm:$0xff] %vm751_vm1, %v2977_v37  ;;  %v7068_v46 = vld [vmem:[#allocation2 + $0x60] sm:$0xff]  ;;  %v7070_v32 = vld [vmem:[#allocation2 + $0x68] sm:$0xff]  ;;  %v3367_v52 = vld [vmem:[#allocation2 + $0x70] sm:$0xf] }
 0x238   : > { %v4123_v19 = vpack.c.bf16 %v2978_v41, %v2977_v37  ;;  %v2548_v58 = vmax.f32 %v2347_v2, %v2460_v14  ;;  %v2748_v23 = vsel %vm1619_vm5, %v2745_v39, %v2747_v1  ;;  %v2888_v12 = vrot.slane %v2346_v22, 4  ;;  %3010 = vst.msk [vmem:[#allocation2 + $0xca] sm:$0xff] %vm751_vm1, %v2978_v41  ;;  %v3271_v22 = vld [vmem:[#allocation2 + $0x58] sm:$0xf] }
 0x239   : > { %v2691_v38 = vmax.f32 %v2547_v4, %v2602_v63  ;;  %v2889_v17 = vrot.slane %v2347_v2, 4  ;;  %v2891_v50 = vrot.slane %v2348_v48, 4  ;;  %v3127_v20 = vmax.f32 %v3031_v27, %v3079_v45  ;;  %v3178_v39 = vld [vmem:[#allocation2 + $0x58] sm:$0xf] }
 0x23a   : > { %4225 = vrot.lane.b32.xlu0 %v4123_v19, %s5572_s12  ;;  %v2692_v6 = vmax.f32 %v2548_v58, %v2604_v59  ;;  %v3221_v18 = vmax.f32 %v3125_v53, %v7049_v47  ;;  %v3222_v42 = vmax.f32 %v3126_v9, %v7051_v33  ;;  %v3128_v26 = vmax.f32 %v3032_v3, %v7049_v47  ;;  %v7080_v19 = vld [vmem:[#allocation2 + $0xe8] sm:$0xf] }
 0x23b   : > { %v2835_v2 = vmax.f32 %v2691_v38, %v2746_v10  ;;  %v2890_v48 = vsel %vm1764_vm6, %v2888_v12, %v2889_v17  ;;  %v2892_v51 = vsel %vm1764_vm6, %v2889_v17, %v2891_v50  ;;  %v3223_v61 = vmax.f32 %v3127_v20, %v3175_v40 }
 0x23c   : > { %v2836_v37 = vmax.f32 %v2692_v6, %v2748_v23  ;;  %v3317_v53 = vmax.f32 %v3221_v18, %v7058_v62  ;;  %v3318_v9 = vmax.f32 %v3222_v42, %v7060_v21  ;;  %v3129_v25 = vmax.f32 %v3033_v0, %v7051_v33  ;;  %v7084_v23 = vld [vmem:[#allocation2 + $0xe8] sm:$0xf] }
 0x23d   : > { %v2979_v41 = vmax.f32 %v2835_v2, %v2890_v48  ;;  %v3319_v28 = vmax.f32 %v3223_v61, %v3271_v22  ;;  %v3130_v63 = vmax.f32 %v3034_v43, %v3082_v13  ;;  %v3224_v1 = vmax.f32 %v3128_v26, %v7058_v62  ;;  %v3274_v13 = vld [vmem:[#allocation2 + $0x70] sm:$0xf]  ;;  %v7093_v61 = vld [vmem:[#allocation2 + $0x78] sm:$0xff] }
 0x23e   : > { %v2980_v27 = vmax.f32 %v2836_v37, %v2892_v51  ;;  %v3413_v45 = vmax.f32 %v3317_v53, %v7068_v46  ;;  %v3414_v3 = vmax.f32 %v3318_v9, %v7070_v32  ;;  %v3225_v14 = vmax.f32 %v3129_v25, %v7060_v21  ;;  %v7097_v25 = vld [vmem:[#allocation2 + $0x80] sm:$0xff] }
 0x23f   : > { %v3415_v4 = vmax.f32 %v3319_v28, %v3367_v52  ;;  %v3226_v59 = vmax.f32 %v3130_v63, %v3178_v39  ;;  %v3320_v10 = vmax.f32 %v3224_v1, %v7068_v46  ;;  %v2061_v58 = vmax.f32 %v6955_v5, %v6977_v35  ;;  %3011 = vst.msk [vmem:[#allocation2 + $0xda] sm:$0xff] %vm751_vm1, %v2979_v41  ;;  %v3370_v39 = vld [vmem:[#allocation2 + $0x88] sm:$0xf] }
 0x240   : > { %v4124_v12 = vpack.c.bf16 %v2980_v27, %v2979_v41  ;;  %v3509_v40 = vrot.slane %v3413_v45, 1  ;;  %v3510_v38 = vrot.slane %v3414_v3, 1  ;;  %v3653_v17 = vrot.slane %v3413_v45, 2  ;;  %3012 = vst.msk [vmem:[#allocation2 + $0xe2] sm:$0xff] %vm751_vm1, %v2980_v27 }
 0x241   : > { %v3512_v50 = vrot.slane %v3415_v4, 1  ;;  %v3654_v20 = vrot.slane %v3414_v3, 2  ;;  %v3656_v0 = vrot.slane %v3415_v4, 2  ;;  %v3797_v6 = vrot.slane %v3413_v45, 3 }
 0x242   : > { %4227 = vrot.lane.b32.xlu1 %v4124_v12, %s5572_s12  ;;  %v3511_v18 = vsel %vm1329_vm3, %v3509_v40, %v3510_v38  ;;  %v3798_v42 = vrot.slane %v3414_v3, 3  ;;  %v3800_v22 = vrot.slane %v3415_v4, 3  ;;  %v3941_v43 = vrot.slane %v3413_v45, 4 }
 0x243   : > { %v3513_v26 = vsel %vm1329_vm3, %v3510_v38, %v3512_v50  ;;  %v3621_v2 = vmax.f32 %v3413_v45, %v3511_v18  ;;  %v3655_v48 = vsel %vm1474_vm4, %v3653_v17, %v3654_v20  ;;  %v3657_v51 = vsel %vm1474_vm4, %v3654_v20, %v3656_v0 }
 0x244   : > { %v3622_v37 = vmax.f32 %v3414_v3, %v3513_v26  ;;  %v3799_v53 = vsel %vm1619_vm5, %v3797_v6, %v3798_v42  ;;  %v3801_v9 = vsel %vm1619_vm5, %v3798_v42, %v3800_v22  ;;  %v3942_v52 = vrot.slane %v3414_v3, 4 }
 0x245   : > { %v3765_v41 = vmax.f32 %v3621_v2, %v3655_v48  ;;  %v3944_v28 = vrot.slane %v3415_v4, 4  ;;  %v3321_v63 = vmax.f32 %v3225_v14, %v7070_v32  ;;  %v3322_v1 = vmax.f32 %v3226_v59, %v3274_v13 }
 0x246   : > { %v3766_v27 = vmax.f32 %v3622_v37, %v3657_v51  ;;  %v3943_v45 = vsel %vm1764_vm6, %v3941_v43, %v3942_v52  ;;  %v3416_v12 = vmax.f32 %v3320_v10, %v7093_v61  ;;  %v2062_v40 = vmax.f32 %v6957_v30, %v6981_v7 }
 0x247   : > { %v3909_v38 = vmax.f32 %v3765_v41, %v3799_v53  ;;  %v3945_v17 = vsel %vm1764_vm6, %v3942_v52, %v3944_v28  ;;  %v3417_v3 = vmax.f32 %v3321_v63, %v7097_v25  ;;  %v3418_v50 = vmax.f32 %v3322_v1, %v3370_v39  ;;  %v2111_v63 = vld [vmem:[#allocation2 + $0x100] sm:$0xf] }
 0x248   : > { %v3910_v20 = vmax.f32 %v3766_v27, %v3801_v9  ;;  %v3514_v0 = vrot.slane %v3416_v12, 1  ;;  %v3658_v4 = vrot.slane %v3416_v12, 2  ;;  %v3802_v6 = vrot.slane %v3416_v12, 3 }
 0x249   : > { %v4053_v14 = vmax.f32 %v3909_v38, %v3943_v45  ;;  %v3515_v59 = vrot.slane %v3417_v3, 1  ;;  %v3517_v18 = vrot.slane %v3418_v50, 1  ;;  %v3659_v42 = vrot.slane %v3417_v3, 2  ;;  %v2018_v38 = vld [vmem:[#allocation2 + $0x100] sm:$0xf] }
 0x24a   : > { %v4054_v22 = vmax.f32 %v3910_v20, %v3945_v17  ;;  %v3661_v43 = vrot.slane %v3418_v50, 2  ;;  %v3803_v10 = vrot.slane %v3417_v3, 3  ;;  %v3805_v13 = vrot.slane %v3418_v50, 3 }
 0x24b   : > { %v3516_v30 = vsel %vm1329_vm3, %v3514_v0, %v3515_v59  ;;  %v3518_v26 = vsel %vm1329_vm3, %v3515_v59, %v3517_v18  ;;  %v3660_v2 = vsel %vm1474_vm4, %v3658_v4, %v3659_v42  ;;  %v3946_v48 = vrot.slane %v3416_v12, 4  ;;  %v2207_v0 = vld [vmem:[#allocation2 + $0x118] sm:$0xf]  ;;  %v2303_v18 = vld [vmem:[#allocation2 + $0x130] sm:$0xf] }
 0x24c   : > { %v4133_v51 = vpack.c.bf16 %v4054_v22, %v4053_v14  ;;  %v3623_v37 = vmax.f32 %v3416_v12, %v3516_v30  ;;  %v3624_v53 = vmax.f32 %v3417_v3, %v3518_v26  ;;  %v3662_v9 = vsel %vm1474_vm4, %v3659_v42, %v3661_v43 }
 0x24d   : > { %v3804_v52 = vsel %vm1619_vm5, %v3802_v6, %v3803_v10  ;;  %v3806_v39 = vsel %vm1619_vm5, %v3803_v10, %v3805_v13  ;;  %v3947_v41 = vrot.slane %v3417_v3, 4  ;;  %v3949_v28 = vrot.slane %v3418_v50, 4  ;;  %v7121_v50 = vld [vmem:[#allocation2 + $0x120] sm:$0xff] }
 0x24e   : > { %4261 = vrot.lane.b32.xlu0 %v4133_v51, %s5573_s17  ;;  %v3767_v1 = vmax.f32 %v3623_v37, %v3660_v2  ;;  %v3768_v27 = vmax.f32 %v3624_v53, %v3662_v9  ;;  %v2063_v45 = vmax.f32 %v7053_v16, %v7080_v19  ;;  %v2157_v12 = vmax.f32 %v2061_v58, %v7006_v34  ;;  %v7126_v19 = vld [vmem:[#allocation2 + $0x128] sm:$0xff]  ;;  %v2114_v58 = vld [vmem:[#allocation2 + $0x118] sm:$0xf] }
 0x24f   : > { %v3948_v17 = vsel %vm1764_vm6, %v3946_v48, %v3947_v41  ;;  %v3950_v3 = vsel %vm1764_vm6, %v3947_v41, %v3949_v28  ;;  %v2158_v20 = vmax.f32 %v2062_v40, %v7011_v60  ;;  %v2064_v4 = vmax.f32 %v6977_v35, %v7006_v34 }
 0x250   : > { %v3911_v6 = vmax.f32 %v3767_v1, %v3804_v52  ;;  %v3912_v16 = vmax.f32 %v3768_v27, %v3806_v39  ;;  %v2159_v14 = vmax.f32 %v2063_v45, %v2111_v63  ;;  %v2253_v5 = vmax.f32 %v2157_v12, %v7027_v56  ;;  %v7142_v27 = vld [vmem:[#allocation2 + $0x138] sm:$0xff]  ;;  %v2210_v45 = vld [vmem:[#allocation2 + $0x130] sm:$0xf] }
 0x251   : > { %v2254_v59 = vmax.f32 %v2158_v20, %v7034_v55  ;;  %v2065_v42 = vmax.f32 %v6981_v7, %v7011_v60  ;;  %v2066_v40 = vmax.f32 %v7084_v23, %v2018_v38  ;;  %v2160_v22 = vmax.f32 %v2064_v4, %v7027_v56  ;;  %v7147_v20 = vld [vmem:[#allocation2 + $0x140] sm:$0xff] }
 0x252   : > { %v4055_v43 = vmax.f32 %v3911_v6, %v3948_v17  ;;  %v4056_v35 = vmax.f32 %v3912_v16, %v3950_v3  ;;  %v2255_v34 = vmax.f32 %v2159_v14, %v2207_v0  ;;  %v2349_v10 = vmax.f32 %v2253_v5, %v7121_v50  ;;  %v2306_v14 = vld [vmem:[#allocation2 + $0x148] sm:$0xf] }
 0x253   : > { %v2350_v13 = vmax.f32 %v2254_v59, %v7126_v19  ;;  %v2161_v30 = vmax.f32 %v2065_v42, %v7034_v55  ;;  %v2162_v26 = vmax.f32 %v2066_v40, %v2114_v58  ;;  %v2256_v2 = vmax.f32 %v2160_v22, %v7121_v50 }
 0x254   : > { %v4134_v48 = vpack.c.bf16 %v4056_v35, %v4055_v43  ;;  %v2351_v51 = vmax.f32 %v2255_v34, %v2303_v18  ;;  %v2461_v37 = vrot.slane %v2349_v10, 1  ;;  %v2605_v7 = vrot.slane %v2349_v10, 2 }
 0x255   : > { %v2462_v60 = vrot.slane %v2350_v13, 1  ;;  %v2606_v23 = vrot.slane %v2350_v13, 2  ;;  %v2749_v53 = vrot.slane %v2349_v10, 3  ;;  %v2750_v56 = vrot.slane %v2350_v13, 3 }
 0x256   : > { %4263 = vrot.lane.b32.xlu1 %v4134_v48, %s5573_s17  ;;  %v2464_v9 = vrot.slane %v2351_v51, 1  ;;  %v2608_v52 = vrot.slane %v2351_v51, 2  ;;  %v2752_v39 = vrot.slane %v2351_v51, 3  ;;  %v2893_v41 = vrot.slane %v2349_v10, 4 }
 0x257   : > { %v2463_v28 = vsel %vm1329_vm3, %v2461_v37, %v2462_v60  ;;  %v2607_v55 = vsel %vm1474_vm4, %v2605_v7, %v2606_v23  ;;  %v2751_v63 = vsel %vm1619_vm5, %v2749_v53, %v2750_v56  ;;  %v2894_v1 = vrot.slane %v2350_v13, 4 }
 0x258   : > { %v2465_v12 = vsel %vm1329_vm3, %v2462_v60, %v2464_v9  ;;  %v2549_v38 = vmax.f32 %v2349_v10, %v2463_v28  ;;  %v2609_v17 = vsel %vm1474_vm4, %v2606_v23, %v2608_v52  ;;  %v2753_v3 = vsel %vm1619_vm5, %v2750_v56, %v2752_v39  ;;  %v3085_v9 = vld [vmem:[#allocation2 + $0x58] sm:$0xf] }
 0x259   : > { %v2550_v0 = vmax.f32 %v2350_v13, %v2465_v12  ;;  %v2895_v4 = vsel %vm1764_vm6, %v2893_v41, %v2894_v1  ;;  %v2896_v6 = vrot.slane %v2351_v51, 4  ;;  %v2257_v16 = vmax.f32 %v2161_v30, %v7126_v19  ;;  %v7162_v52 = vld [vmem:[#allocation2 + $0xf8] sm:$0xff] }
 0x25a   : > { %v2693_v5 = vmax.f32 %v2549_v38, %v2607_v55  ;;  %v2258_v58 = vmax.f32 %v2162_v26, %v2210_v45  ;;  %v2352_v59 = vmax.f32 %v2256_v2, %v7142_v27  ;;  %v3131_v18 = vmax.f32 %v7049_v47, %v7058_v62 }
 0x25b   : > { %v2694_v42 = vmax.f32 %v2550_v0, %v2609_v17  ;;  %v2897_v40 = vsel %vm1764_vm6, %v2894_v1, %v2896_v6  ;;  %v2353_v22 = vmax.f32 %v2257_v16, %v7147_v20  ;;  %v3132_v43 = vmax.f32 %v7051_v33, %v7060_v21  ;;  %v7160_v33 = vld [vmem:[#allocation2 + $0xf0] sm:$0xff]  ;;  %v3037_v17 = vld [vmem:[#allocation2 + $0x40] sm:$0xf] }
 0x25c   : > { %v2837_v35 = vmax.f32 %v2693_v5, %v2751_v63  ;;  %v2354_v34 = vmax.f32 %v2258_v58, %v2306_v14  ;;  %v2466_v10 = vrot.slane %v2352_v59, 1  ;;  %v2610_v13 = vrot.slane %v2352_v59, 2  ;;  %v7167_v63 = vld [vmem:[#allocation2 + $0x100] sm:$0xf] }
 0x25d   : > { %v2838_v30 = vmax.f32 %v2694_v42, %v2753_v3  ;;  %v2467_v48 = vrot.slane %v2353_v22, 1  ;;  %v2611_v26 = vrot.slane %v2353_v22, 2  ;;  %v2754_v51 = vrot.slane %v2352_v59, 3  ;;  %v3181_v3 = vld [vmem:[#allocation2 + $0x70] sm:$0xf] }
 0x25e   : > { %v2981_v2 = vmax.f32 %v2837_v35, %v2895_v4  ;;  %v2469_v37 = vrot.slane %v2354_v34, 1  ;;  %v2613_v7 = vrot.slane %v2354_v34, 2  ;;  %v2755_v47 = vrot.slane %v2353_v22, 3  ;;  %v3277_v42 = vld [vmem:[#allocation2 + $0x88] sm:$0xf] }
 0x25f   : > { %v2982_v60 = vmax.f32 %v2838_v30, %v2897_v40  ;;  %v2468_v23 = vsel %vm1329_vm3, %v2466_v10, %v2467_v48  ;;  %v2612_v53 = vsel %vm1474_vm4, %v2610_v13, %v2611_v26  ;;  %v2757_v56 = vrot.slane %v2354_v34, 3  ;;  %v3088_v40 = vld [vmem:[#allocation2 + $0x70] sm:$0xf]  ;;  %v7181_v30 = vld [vmem:[#allocation2 + $0x98] sm:$0xff] }
 0x260   : > { %v2470_v39 = vsel %vm1329_vm3, %v2467_v48, %v2469_v37  ;;  %v2551_v41 = vmax.f32 %v2352_v59, %v2468_v23  ;;  %v2614_v28 = vsel %vm1474_vm4, %v2611_v26, %v2613_v7  ;;  %v2756_v55 = vsel %vm1619_vm5, %v2754_v51, %v2755_v47  ;;  %3013 = vst.msk [vmem:[#allocation2 + $0xf2] sm:$0xff] %vm751_vm1, %v2981_v2  ;;  %v3373_v26 = vld [vmem:[#allocation2 + $0xa0] sm:$0xf]  ;;  %v3040_v51 = vld [vmem:[#allocation2 + $0x58] sm:$0xf] }
 0x261   : > { %v4125_v1 = vpack.c.bf16 %v2982_v60, %v2981_v2  ;;  %v2552_v45 = vmax.f32 %v2353_v22, %v2470_v39  ;;  %v2758_v12 = vsel %vm1619_vm5, %v2755_v47, %v2757_v56  ;;  %v2898_v38 = vrot.slane %v2352_v59, 4  ;;  %3014 = vst.msk [vmem:[#allocation2 + $0xfa] sm:$0xff] %vm751_vm1, %v2982_v60  ;;  %v3184_v2 = vld [vmem:[#allocation2 + $0x88] sm:$0xf] }
 0x262   : > { %v2695_v0 = vmax.f32 %v2551_v41, %v2612_v53  ;;  %v2899_v4 = vrot.slane %v2353_v22, 4  ;;  %v2901_v6 = vrot.slane %v2354_v34, 4  ;;  %v3133_v16 = vmax.f32 %v3037_v17, %v3085_v9  ;;  %v7179_v34 = vld [vmem:[#allocation2 + $0x90] sm:$0xff]  ;;  %v7191_v39 = vld [vmem:[#allocation2 + $0x108] sm:$0xff]  ;;  %v7200_v17 = vld [vmem:[#allocation2 + $0x118] sm:$0xf] }
 0x263   : > { %4229 = vrot.lane.b32.xlu0 %v4125_v1, %s5572_s12  ;;  %v2696_v14 = vmax.f32 %v2552_v45, %v2614_v28  ;;  %v3227_v5 = vmax.f32 %v3131_v18, %v7068_v46  ;;  %v3228_v58 = vmax.f32 %v3132_v43, %v7070_v32  ;;  %v3134_v59 = vmax.f32 %v7058_v62, %v7068_v46  ;;  %v7193_v41 = vld [vmem:[#allocation2 + $0x110] sm:$0xff]  ;;  %v8329_v1 = vld [vmem:[#allocation37_spill] sm:$0xff]  ;;  %v8330_v45 = vld [vmem:[#allocation38_spill] sm:$0xff] }
 0x264   : > { %v2839_v35 = vmax.f32 %v2695_v0, %v2756_v55  ;;  %v2900_v10 = vsel %vm1764_vm6, %v2898_v38, %v2899_v4  ;;  %v2902_v13 = vsel %vm1764_vm6, %v2899_v4, %v2901_v6  ;;  %v3229_v22 = vmax.f32 %v3133_v16, %v3181_v3  ;;  %v7198_v38 = vld [vmem:[#allocation2 + $0x118] sm:$0xf] }
 0x265   : > { %v2840_v48 = vmax.f32 %v2696_v14, %v2758_v12  ;;  %v3323_v18 = vmax.f32 %v3227_v5, %v7093_v61  ;;  %v3324_v43 = vmax.f32 %v3228_v58, %v7097_v25  ;;  %v3135_v62 = vmax.f32 %v7060_v21, %v7070_v32 }
 0x266   : > { %v2983_v37 = vmax.f32 %v2839_v35, %v2900_v10  ;;  %v3325_v7 = vmax.f32 %v3229_v22, %v3277_v42  ;;  %v3136_v47 = vmax.f32 %v3040_v51, %v3088_v40  ;;  %v3230_v60 = vmax.f32 %v3134_v59, %v7093_v61  ;;  %v3280_v10 = vld [vmem:[#allocation2 + $0xa0] sm:$0xf] }
 0x267   : > { %v2984_v23 = vmax.f32 %v2840_v48, %v2902_v13  ;;  %v3419_v53 = vmax.f32 %v3323_v18, %v7179_v34  ;;  %v3420_v56 = vmax.f32 %v3324_v43, %v7181_v30  ;;  %v3231_v9 = vmax.f32 %v3135_v62, %v7097_v25  ;;  %v7209_v43 = vld [vmem:[#allocation2 + $0xa8] sm:$0xff] }
 0x268   : > { %v3421_v28 = vmax.f32 %v3325_v7, %v3373_v26  ;;  %v3232_v55 = vmax.f32 %v3136_v47, %v3184_v2  ;;  %v3326_v21 = vmax.f32 %v3230_v60, %v7179_v34  ;;  %v4111_v12 = vpack.c.bf16 %v8330_v45, %v8329_v1  ;;  %3015 = vst.msk [vmem:[#allocation2 + $0x10a] sm:$0xff] %vm751_vm1, %v2983_v37  ;;  %v3376_v7 = vld [vmem:[#allocation2 + $0xb8] sm:$0xf] }
 0x269   : > { %v4126_v3 = vpack.c.bf16 %v2984_v23, %v2983_v37  ;;  %v3519_v0 = vrot.slane %v3419_v53, 1  ;;  %v3520_v4 = vrot.slane %v3420_v56, 1  ;;  %v3663_v6 = vrot.slane %v3419_v53, 2  ;;  %3016 = vst.msk [vmem:[#allocation2 + $0x112] sm:$0xff] %vm751_vm1, %v2984_v23  ;;  %v7213_v37 = vld [vmem:[#allocation2 + $0xb0] sm:$0xff] }
 0x26a   : > { %v3522_v16 = vrot.slane %v3421_v28, 1  ;;  %v3664_v14 = vrot.slane %v3420_v56, 2  ;;  %v3666_v5 = vrot.slane %v3421_v28, 2  ;;  %v3807_v58 = vrot.slane %v3419_v53, 3 }
 0x26b   : > { %4231 = vrot.lane.b32.xlu1 %v4126_v3, %s5572_s12  ;;  %v3521_v42 = vsel %vm1329_vm3, %v3519_v0, %v3520_v4  ;;  %v3808_v40 = vrot.slane %v3420_v56, 3  ;;  %v3810_v59 = vrot.slane %v3421_v28, 3  ;;  %v3951_v35 = vrot.slane %v3419_v53, 4 }
 0x26c   : > { %v3523_v13 = vsel %vm1329_vm3, %v3520_v4, %v3522_v16  ;;  %v3625_v22 = vmax.f32 %v3419_v53, %v3521_v42  ;;  %v3665_v48 = vsel %vm1474_vm4, %v3663_v6, %v3664_v14  ;;  %v3667_v18 = vsel %vm1474_vm4, %v3664_v14, %v3666_v5  ;;  %v8331_v6 = vld [vmem:[#allocation39_spill] sm:$0xff]  ;;  %v8332_v16 = vld [vmem:[#allocation40_spill] sm:$0xff] }
 0x26d   : > { %v3626_v26 = vmax.f32 %v3420_v56, %v3523_v13  ;;  %v3809_v51 = vsel %vm1619_vm5, %v3807_v58, %v3808_v40  ;;  %v3811_v62 = vsel %vm1619_vm5, %v3808_v40, %v3810_v59  ;;  %v3952_v2 = vrot.slane %v3420_v56, 4 }
 0x26e   : > { %v3769_v47 = vmax.f32 %v3625_v22, %v3665_v48  ;;  %v3954_v60 = vrot.slane %v3421_v28, 4  ;;  %v3327_v23 = vmax.f32 %v3231_v9, %v7181_v30  ;;  %v3328_v53 = vmax.f32 %v3232_v55, %v3280_v10 }
 0x26f   : > { %v3770_v3 = vmax.f32 %v3626_v26, %v3667_v18  ;;  %v3953_v0 = vsel %vm1764_vm6, %v3951_v35, %v3952_v2  ;;  %v3422_v4 = vmax.f32 %v3326_v21, %v7209_v43  ;;  %v4112_v14 = vpack.c.bf16 %v8332_v16, %v8331_v6 }
 0x270   : > { %v3913_v5 = vmax.f32 %v3769_v47, %v3809_v51  ;;  %v3955_v58 = vsel %vm1764_vm6, %v3952_v2, %v3954_v60  ;;  %v3423_v56 = vmax.f32 %v3327_v23, %v7213_v37  ;;  %v3424_v42 = vmax.f32 %v3328_v53, %v3376_v7  ;;  %v3091_v53 = vld [vmem:[#allocation2 + $0x88] sm:$0xf] }
 0x271   : > { %v3914_v40 = vmax.f32 %v3770_v3, %v3811_v62  ;;  %v3524_v59 = vrot.slane %v3422_v4, 1  ;;  %v3668_v28 = vrot.slane %v3422_v4, 2  ;;  %v3812_v13 = vrot.slane %v3422_v4, 3 }
 0x272   : > { %v4057_v9 = vmax.f32 %v3913_v5, %v3953_v0  ;;  %v3525_v55 = vrot.slane %v3423_v56, 1  ;;  %v3527_v10 = vrot.slane %v3424_v42, 1  ;;  %v3669_v22 = vrot.slane %v3423_v56, 2 }
 0x273   : > { %v4058_v35 = vmax.f32 %v3914_v40, %v3955_v58  ;;  %v3671_v48 = vrot.slane %v3424_v42, 2  ;;  %v3813_v21 = vrot.slane %v3423_v56, 3  ;;  %v3815_v18 = vrot.slane %v3424_v42, 3 }
 0x274   : > { %v3526_v26 = vsel %vm1329_vm3, %v3524_v59, %v3525_v55  ;;  %v3528_v51 = vsel %vm1329_vm3, %v3525_v55, %v3527_v10  ;;  %v3670_v2 = vsel %vm1474_vm4, %v3668_v28, %v3669_v22  ;;  %v3956_v47 = vrot.slane %v3422_v4, 4  ;;  %v3043_v55 = vld [vmem:[#allocation2 + $0x70] sm:$0xf]  ;;  %v3094_v10 = vld [vmem:[#allocation2 + $0xa0] sm:$0xf] }
 0x275   : > { %v4135_v7 = vpack.c.bf16 %v4058_v35, %v4057_v9  ;;  %v3627_v62 = vmax.f32 %v3422_v4, %v3526_v26  ;;  %v3628_v60 = vmax.f32 %v3423_v56, %v3528_v51  ;;  %v3672_v23 = vsel %vm1474_vm4, %v3669_v22, %v3671_v48  ;;  %v3187_v9 = vld [vmem:[#allocation2 + $0xa0] sm:$0xf]  ;;  %v3283_v26 = vld [vmem:[#allocation2 + $0xb8] sm:$0xf] }
 0x276   : > { %v3814_v3 = vsel %vm1619_vm5, %v3812_v13, %v3813_v21  ;;  %v3816_v0 = vsel %vm1619_vm5, %v3813_v21, %v3815_v18  ;;  %v3957_v5 = vrot.slane %v3423_v56, 4  ;;  %v3959_v58 = vrot.slane %v3424_v42, 4  ;;  %v3046_v56 = vld [vmem:[#allocation2 + $0x88] sm:$0xf]  ;;  %v7239_v51 = vld [vmem:[#allocation2 + $0xc0] sm:$0xff] }
 0x277   : > { %4265 = vrot.lane.b32.xlu0 %v4135_v7, %s5573_s17  ;;  %v3771_v40 = vmax.f32 %v3627_v62, %v3670_v2  ;;  %v3772_v59 = vmax.f32 %v3628_v60, %v3672_v23  ;;  %v3137_v28 = vmax.f32 %v7068_v46, %v7093_v61  ;;  %v3138_v4 = vmax.f32 %v7070_v32, %v7097_v25  ;;  %v3190_v32 = vld [vmem:[#allocation2 + $0xb8] sm:$0xf]  ;;  %v7241_v7 = vld [vmem:[#allocation2 + $0xc8] sm:$0xff] }
 0x278   : > { %v3958_v22 = vsel %vm1764_vm6, %v3956_v47, %v3957_v5  ;;  %v3960_v13 = vsel %vm1764_vm6, %v3957_v5, %v3959_v58  ;;  %v3139_v35 = vmax.f32 %v3043_v55, %v3091_v53  ;;  %v3140_v42 = vmax.f32 %v7093_v61, %v7179_v34  ;;  %v3286_v5 = vld [vmem:[#allocation2 + $0xd0] sm:$0xf]  ;;  %v7252_v58 = vld [vmem:[#allocation2 + $0xd8] sm:$0xff] }
 0x279   : > { %v3915_v48 = vmax.f32 %v3771_v40, %v3814_v3  ;;  %v3916_v21 = vmax.f32 %v3772_v59, %v3816_v0  ;;  %v3233_v18 = vmax.f32 %v3137_v28, %v7179_v34  ;;  %v3234_v46 = vmax.f32 %v3138_v4, %v7181_v30  ;;  %v3379_v0 = vld [vmem:[#allocation2 + $0xd0] sm:$0xf] }
 0x27a   : > { %v3235_v2 = vmax.f32 %v3139_v35, %v3187_v9  ;;  %v3141_v47 = vmax.f32 %v7097_v25, %v7181_v30  ;;  %v3142_v62 = vmax.f32 %v3046_v56, %v3094_v10  ;;  %v3236_v60 = vmax.f32 %v3140_v42, %v7209_v43 }
 0x27b   : > { %v4059_v61 = vmax.f32 %v3915_v48, %v3958_v22  ;;  %v4060_v23 = vmax.f32 %v3916_v21, %v3960_v13  ;;  %4185 = vrot.lane.b32.xlu0 %v4111_v12, %s5571_s11  ;;  %v3329_v53 = vmax.f32 %v3233_v18, %v7209_v43  ;;  %v3330_v3 = vmax.f32 %v3234_v46, %v7213_v37 }
 0x27c   : > { %v3331_v40 = vmax.f32 %v3235_v2, %v3283_v26  ;;  %v3237_v25 = vmax.f32 %v3141_v47, %v7213_v37  ;;  %v3238_v59 = vmax.f32 %v3142_v62, %v3190_v32  ;;  %v3332_v55 = vmax.f32 %v3236_v60, %v7239_v51  ;;  %v7265_v62 = vld [vmem:[#allocation2 + $0xe0] sm:$0xff]  ;;  %v3382_v60 = vld [vmem:[#allocation2 + $0xe8] sm:$0xf] }
 0x27d   : > { %v4136_v28 = vpack.c.bf16 %v4060_v23, %v4059_v61  ;;  %v3425_v4 = vmax.f32 %v3329_v53, %v7239_v51  ;;  %v3426_v1 = vmax.f32 %v3330_v3, %v7241_v7  ;;  %v2067_v45 = vmax.f32 %v7160_v33, %v7191_v39 }
 0x27e   : > { %v3427_v12 = vmax.f32 %v3331_v40, %v3379_v0  ;;  %v3333_v9 = vmax.f32 %v3237_v25, %v7241_v7  ;;  %v3334_v10 = vmax.f32 %v3238_v59, %v3286_v5  ;;  %v3428_v22 = vmax.f32 %v3332_v55, %v7252_v58 }
 0x27f   : > { %4267 = vrot.lane.b32.xlu1 %v4136_v28, %s5573_s17  ;;  %v3529_v13 = vrot.slane %v3425_v4, 1  ;;  %v3530_v35 = vrot.slane %v3426_v1, 1  ;;  %v3673_v56 = vrot.slane %v3425_v4, 2  ;;  %v3674_v42 = vrot.slane %v3426_v1, 2 }
 0x280   : > { %v3532_v48 = vrot.slane %v3427_v12, 1  ;;  %v3676_v21 = vrot.slane %v3427_v12, 2  ;;  %v3817_v18 = vrot.slane %v3425_v4, 3  ;;  %v3818_v46 = vrot.slane %v3426_v1, 3 }
 0x281   : > { %v3531_v26 = vsel %vm1329_vm3, %v3529_v13, %v3530_v35  ;;  %v3675_v32 = vsel %vm1474_vm4, %v3673_v56, %v3674_v42  ;;  %v3820_v2 = vrot.slane %v3427_v12, 3  ;;  %v3961_v47 = vrot.slane %v3425_v4, 4 }
 0x282   : > { %v3533_v61 = vsel %vm1329_vm3, %v3530_v35, %v3532_v48  ;;  %v3629_v23 = vmax.f32 %v3425_v4, %v3531_v26  ;;  %v3677_v53 = vsel %vm1474_vm4, %v3674_v42, %v3676_v21  ;;  %v3819_v3 = vsel %vm1619_vm5, %v3817_v18, %v3818_v46 }
 0x283   : > { %4187 = vrot.lane.b32.xlu1 %v4112_v14, %s5571_s11  ;;  %v3630_v0 = vmax.f32 %v3426_v1, %v3533_v61  ;;  %v3821_v5 = vsel %vm1619_vm5, %v3818_v46, %v3820_v2  ;;  %v3962_v40 = vrot.slane %v3426_v1, 4  ;;  %v3964_v25 = vrot.slane %v3427_v12, 4 }
 0x284   : > { %v3773_v59 = vmax.f32 %v3629_v23, %v3675_v32  ;;  %v3429_v55 = vmax.f32 %v3333_v9, %v7265_v62  ;;  %v3430_v28 = vmax.f32 %v3334_v10, %v3382_v60  ;;  %v3534_v13 = vrot.slane %v3428_v22, 1 }
 0x285   : > { %v3774_v4 = vmax.f32 %v3630_v0, %v3677_v53  ;;  %v3963_v35 = vsel %vm1764_vm6, %v3961_v47, %v3962_v40  ;;  %v3965_v56 = vsel %vm1764_vm6, %v3962_v40, %v3964_v25  ;;  %v3678_v42 = vrot.slane %v3428_v22, 2 }
 0x286   : > { %v3917_v48 = vmax.f32 %v3773_v59, %v3819_v3  ;;  %v3535_v21 = vrot.slane %v3429_v55, 1  ;;  %v3537_v6 = vrot.slane %v3430_v28, 1  ;;  %v3679_v16 = vrot.slane %v3429_v55, 2  ;;  %v2117_v59 = vld [vmem:[#allocation2 + $0x130] sm:$0xf] }
 0x287   : > { %v3918_v14 = vmax.f32 %v3774_v4, %v3821_v5  ;;  %v3681_v18 = vrot.slane %v3430_v28, 2  ;;  %v3822_v46 = vrot.slane %v3428_v22, 3  ;;  %v3823_v1 = vrot.slane %v3429_v55, 3 }
 0x288   : > { %v4061_v12 = vmax.f32 %v3917_v48, %v3963_v35  ;;  %v3536_v26 = vsel %vm1329_vm3, %v3534_v13, %v3535_v21  ;;  %v3538_v9 = vsel %vm1329_vm3, %v3535_v21, %v3537_v6  ;;  %v3680_v10 = vsel %vm1474_vm4, %v3678_v42, %v3679_v16  ;;  %v7289_v42 = vld [vmem:[#allocation2 + $0x130] sm:$0xf]  ;;  %v2213_v21 = vld [vmem:[#allocation2 + $0x148] sm:$0xf] }
 0x289   : > { %v4062_v32 = vmax.f32 %v3918_v14, %v3965_v56  ;;  %v3631_v2 = vmax.f32 %v3428_v22, %v3536_v26  ;;  %v3632_v47 = vmax.f32 %v3429_v55, %v3538_v9  ;;  %v3682_v60 = vsel %vm1474_vm4, %v3679_v16, %v3681_v18  ;;  %v7297_v6 = vld [vmem:[#allocation2 + $0x168] sm:$0xff]  ;;  %v7301_v16 = vld [vmem:[#allocation2 + $0x190] sm:$0xf]  ;;  %v2033_v18 = vld [vmem:[#allocation2 + $0x178] sm:$0xf] }
 0x28a   : > { %v3824_v61 = vsel %vm1619_vm5, %v3822_v46, %v3823_v1  ;;  %v3825_v23 = vrot.slane %v3430_v28, 3  ;;  %v3966_v53 = vrot.slane %v3428_v22, 4  ;;  %v3967_v3 = vrot.slane %v3429_v55, 4  ;;  %v2309_v9 = vld [vmem:[#allocation2 + $0x160] sm:$0xf] }
 0x28b   : > { %v4137_v0 = vpack.c.bf16 %v4062_v32, %v4061_v12  ;;  %v3775_v5 = vmax.f32 %v3631_v2, %v3680_v10  ;;  %v3776_v40 = vmax.f32 %v3632_v47, %v3682_v60  ;;  %v3969_v25 = vrot.slane %v3430_v28, 4  ;;  %v7310_v12 = vld [vmem:[#allocation2 + $0x158] sm:$0xff]  ;;  %v1985_v32 = vld [vmem:[#allocation2 + $0x160] sm:$0xf] }
 0x28c   : > { %v3826_v13 = vsel %vm1619_vm5, %v3823_v1, %v3825_v23  ;;  %v3968_v4 = vsel %vm1764_vm6, %v3966_v53, %v3967_v3  ;;  %v2068_v35 = vmax.f32 %v7162_v52, %v7193_v41  ;;  %v2069_v56 = vmax.f32 %v7167_v63, %v7198_v38  ;;  %v7299_v52 = vld [vmem:[#allocation2 + $0x170] sm:$0xff]  ;;  %v7316_v60 = vld [vmem:[#allocation2 + $0x178] sm:$0xf] }
 0x28d   : > { %4269 = vrot.lane.b32.xlu0 %v4137_v0, %s5573_s17  ;;  %v3919_v22 = vmax.f32 %v3775_v5, %v3824_v61  ;;  %v3920_v55 = vmax.f32 %v3776_v40, %v3826_v13  ;;  %v3970_v48 = vsel %vm1764_vm6, %v3967_v3, %v3969_v25  ;;  %v2163_v28 = vmax.f32 %v2067_v45, %v7121_v50  ;;  %v7303_v63 = vld [vmem:[#allocation2 + $0x150] sm:$0xff] }
 0x28e   : > { %v2164_v38 = vmax.f32 %v2068_v35, %v7126_v19  ;;  %v2165_v14 = vmax.f32 %v2069_v56, %v2117_v59  ;;  %v2070_v46 = vmax.f32 %v7191_v39, %v7121_v50  ;;  %v2071_v33 = vmax.f32 %v7193_v41, %v7126_v19  ;;  %v2129_v35 = vld [vmem:[#allocation2 + $0x190] sm:$0xf] }
 0x28f   : > { %v4063_v45 = vmax.f32 %v3919_v22, %v3968_v4  ;;  %v4064_v1 = vmax.f32 %v3920_v55, %v3970_v48  ;;  %v2259_v26 = vmax.f32 %v2163_v28, %v7142_v27  ;;  %v2072_v10 = vmax.f32 %v7200_v17, %v7289_v42 }
 0x290   : > { %v2260_v2 = vmax.f32 %v2164_v38, %v7147_v20  ;;  %v2261_v47 = vmax.f32 %v2165_v14, %v2213_v21  ;;  %v2079_v39 = vmax.f32 %v7303_v63, %v7297_v6  ;;  %v2080_v41 = vmax.f32 %v7310_v12, %v7299_v52  ;;  %v2120_v14 = vld [vmem:[#allocation2 + $0x148] sm:$0xf] }
 0x291   : > { %v4138_v61 = vpack.c.bf16 %v4064_v1, %v4063_v45  ;;  %v2355_v23 = vmax.f32 %v2259_v26, %v7303_v63  ;;  %v2081_v53 = vmax.f32 %v1985_v32, %v2033_v18  ;;  %v2084_v3 = vmax.f32 %v7316_v60, %v7301_v16  ;;  %v2318_v60 = vld [vmem:[#allocation2 + $0x1a8] sm:$0xf] }
 0x292   : > { %v2356_v17 = vmax.f32 %v2260_v2, %v7310_v12  ;;  %v2357_v0 = vmax.f32 %v2261_v47, %v2309_v9  ;;  %v2166_v5 = vmax.f32 %v2070_v46, %v7142_v27  ;;  %v2167_v40 = vmax.f32 %v2071_v33, %v7147_v20  ;;  %v2216_v2 = vld [vmem:[#allocation2 + $0x160] sm:$0xf]  ;;  %v3097_v47 = vld [vmem:[#allocation2 + $0xb8] sm:$0xf] }
 0x293   : > { %4271 = vrot.lane.b32.xlu1 %v4138_v61, %s5573_s17  ;;  %v2471_v25 = vrot.slane %v2355_v23, 1  ;;  %v2615_v59 = vrot.slane %v2355_v23, 2  ;;  %v2759_v13 = vrot.slane %v2355_v23, 3  ;;  %v2903_v4 = vrot.slane %v2355_v23, 4 }
 0x294   : > { %v2472_v56 = vrot.slane %v2356_v17, 1  ;;  %v2474_v42 = vrot.slane %v2357_v0, 1  ;;  %v2616_v22 = vrot.slane %v2356_v17, 2  ;;  %v2618_v55 = vrot.slane %v2357_v0, 2 }
 0x295   : > { %v2760_v48 = vrot.slane %v2356_v17, 3  ;;  %v2762_v28 = vrot.slane %v2357_v0, 3  ;;  %v2904_v21 = vrot.slane %v2356_v17, 4  ;;  %v2906_v38 = vrot.slane %v2357_v0, 4 }
 0x296   : > { %v2473_v18 = vsel %vm1329_vm3, %v2471_v25, %v2472_v56  ;;  %v2475_v46 = vsel %vm1329_vm3, %v2472_v56, %v2474_v42  ;;  %v2617_v33 = vsel %vm1474_vm4, %v2615_v59, %v2616_v22  ;;  %v2619_v45 = vsel %vm1474_vm4, %v2616_v22, %v2618_v55  ;;  %v3049_v22 = vld [vmem:[#allocation2 + $0xa0] sm:$0xf] }
 0x297   : > { %v2553_v1 = vmax.f32 %v2355_v23, %v2473_v18  ;;  %v2554_v26 = vmax.f32 %v2356_v17, %v2475_v46  ;;  %v2761_v9 = vsel %vm1619_vm5, %v2759_v13, %v2760_v48  ;;  %v2763_v32 = vsel %vm1619_vm5, %v2760_v48, %v2762_v28  ;;  %v2312_v17 = vld [vmem:[#allocation2 + $0x178] sm:$0xf]  ;;  %v3193_v13 = vld [vmem:[#allocation2 + $0xd0] sm:$0xf] }
 0x298   : > { %v2905_v61 = vsel %vm1764_vm6, %v2903_v4, %v2904_v21  ;;  %v2907_v0 = vsel %vm1764_vm6, %v2904_v21, %v2906_v38  ;;  %v2168_v24 = vmax.f32 %v2072_v10, %v2120_v14  ;;  %v7337_v25 = vmax.f32 %v2081_v53, %v2129_v35 }
 0x299   : > { %v2697_v56 = vmax.f32 %v2553_v1, %v2617_v33  ;;  %v2698_v42 = vmax.f32 %v2554_v26, %v2619_v45  ;;  %v2262_v59 = vmax.f32 %v2166_v5, %v7303_v63  ;;  %v2263_v23 = vmax.f32 %v2167_v40, %v7310_v12  ;;  %v7349_v33 = vld [vmem:[#allocation2 + $0x130] sm:$0xf] }
 0x29a   : > { %v2264_v55 = vmax.f32 %v2168_v24, %v2216_v2  ;;  %v3143_v48 = vmax.f32 %v7179_v34, %v7209_v43  ;;  %v3144_v4 = vmax.f32 %v7181_v30, %v7213_v37  ;;  %v3145_v28 = vmax.f32 %v3049_v22, %v3097_v47 }
 0x29b   : > { %v2841_v10 = vmax.f32 %v2697_v56, %v2761_v9  ;;  %v2842_v53 = vmax.f32 %v2698_v42, %v2763_v32  ;;  %v2358_v35 = vmax.f32 %v2262_v59, %v7297_v6  ;;  %v2359_v21 = vmax.f32 %v2263_v23, %v7299_v52  ;;  %v3289_v59 = vld [vmem:[#allocation2 + $0xe8] sm:$0xf] }
 0x29c   : > { %v2360_v5 = vmax.f32 %v2264_v55, %v2312_v17  ;;  %v3239_v40 = vmax.f32 %v3143_v48, %v7239_v51  ;;  %v3240_v38 = vmax.f32 %v3144_v4, %v7241_v7  ;;  %v3241_v14 = vmax.f32 %v3145_v28, %v3193_v13  ;;  %v7359_v55 = vld [vmem:[#allocation2 + $0xf0] sm:$0xff] }
 0x29d   : > { %v2985_v24 = vmax.f32 %v2841_v10, %v2905_v61  ;;  %v2986_v18 = vmax.f32 %v2842_v53, %v2907_v0  ;;  %v2476_v46 = vrot.slane %v2358_v35, 1  ;;  %v2477_v34 = vrot.slane %v2359_v21, 1  ;;  %v7362_v53 = vld [vmem:[#allocation2 + $0xf8] sm:$0xff] }
 0x29e   : > { %v2479_v30 = vrot.slane %v2360_v5, 1  ;;  %v2620_v45 = vrot.slane %v2358_v35, 2  ;;  %v2621_v1 = vrot.slane %v2359_v21, 2  ;;  %v2623_v26 = vrot.slane %v2360_v5, 2 }
 0x29f   : > { %v4127_v9 = vpack.c.bf16 %v2986_v18, %v2985_v24  ;;  %v2478_v32 = vsel %vm1329_vm3, %v2476_v46, %v2477_v34  ;;  %v2764_v2 = vrot.slane %v2358_v35, 3  ;;  %v2765_v47 = vrot.slane %v2359_v21, 3  ;;  %3017 = vst.msk [vmem:[#allocation2 + $0x122] sm:$0xff] %vm751_vm1, %v2985_v24  ;;  %3018 = vst.msk [vmem:[#allocation2 + $0x12a] sm:$0xff] %vm751_vm1, %v2986_v18  ;;  %v3385_v24 = vld [vmem:[#allocation2 + $0x100] sm:$0xf] }
 0x2a0   : > { %v2480_v61 = vsel %vm1329_vm3, %v2477_v34, %v2479_v30  ;;  %v2555_v0 = vmax.f32 %v2358_v35, %v2478_v32  ;;  %v2622_v56 = vsel %vm1474_vm4, %v2620_v45, %v2621_v1  ;;  %v2624_v42 = vsel %vm1474_vm4, %v2621_v1, %v2623_v26 }
 0x2a1   : > { %4233 = vrot.lane.b32.xlu0 %v4127_v9, %s5572_s12  ;;  %v2556_v23 = vmax.f32 %v2359_v21, %v2480_v61  ;;  %v2766_v17 = vsel %vm1619_vm5, %v2764_v2, %v2765_v47  ;;  %v2767_v22 = vrot.slane %v2360_v5, 3  ;;  %v2908_v13 = vrot.slane %v2358_v35, 4 }
 0x2a2   : > { %v2699_v48 = vmax.f32 %v2555_v0, %v2622_v56  ;;  %v2909_v4 = vrot.slane %v2359_v21, 4  ;;  %v2911_v28 = vrot.slane %v2360_v5, 4  ;;  %v3335_v10 = vmax.f32 %v3239_v40, %v7252_v58 }
 0x2a3   : > { %v2700_v18 = vmax.f32 %v2556_v23, %v2624_v42  ;;  %v2768_v46 = vsel %vm1619_vm5, %v2765_v47, %v2767_v22  ;;  %v3336_v34 = vmax.f32 %v3240_v38, %v7265_v62  ;;  %v3337_v30 = vmax.f32 %v3241_v14, %v3289_v59  ;;  %v7372_v38 = vld [vmem:[#allocation2 + $0x148] sm:$0xf] }
 0x2a4   : > { %v2843_v45 = vmax.f32 %v2699_v48, %v2766_v17  ;;  %v2910_v1 = vsel %vm1764_vm6, %v2908_v13, %v2909_v4  ;;  %v2912_v35 = vsel %vm1764_vm6, %v2909_v4, %v2911_v28  ;;  %v3431_v26 = vmax.f32 %v3335_v10, %v7359_v55  ;;  %v7374_v59 = vld [vmem:[#allocation2 + $0x148] sm:$0xf]  ;;  %v3100_v10 = vld [vmem:[#allocation2 + $0xd0] sm:$0xf] }
 0x2a5   : > { %v2844_v21 = vmax.f32 %v2700_v18, %v2768_v46  ;;  %v3432_v5 = vmax.f32 %v3336_v34, %v7362_v53  ;;  %v3433_v40 = vmax.f32 %v3337_v30, %v3385_v24  ;;  %v3146_v9 = vmax.f32 %v7209_v43, %v7239_v51 }
 0x2a6   : > { %v2987_v32 = vmax.f32 %v2843_v45, %v2910_v1  ;;  %v3539_v2 = vrot.slane %v3431_v26, 1  ;;  %v3683_v47 = vrot.slane %v3431_v26, 2  ;;  %v3827_v61 = vrot.slane %v3431_v26, 3 }
 0x2a7   : > { %v2988_v14 = vmax.f32 %v2844_v21, %v2912_v35  ;;  %v3540_v0 = vrot.slane %v3432_v5, 1  ;;  %v3542_v56 = vrot.slane %v3433_v40, 1  ;;  %v3684_v42 = vrot.slane %v3432_v5, 2  ;;  %v3052_v35 = vld [vmem:[#allocation2 + $0xb8] sm:$0xf] }
 0x2a8   : > { %3019 = vst.msk [vmem:[#allocation2 + $0x13a] sm:$0xff] %vm751_vm1, %v2987_v32  ;;  %v3686_v23 = vrot.slane %v3433_v40, 2  ;;  %v3828_v17 = vrot.slane %v3432_v5, 3  ;;  %v3830_v22 = vrot.slane %v3433_v40, 3  ;;  %v3971_v13 = vrot.slane %v3431_v26, 4 }
 0x2a9   : > { %v4128_v48 = vpack.c.bf16 %v2988_v14, %v2987_v32  ;;  %3020 = vst.msk [vmem:[#allocation2 + $0x142] sm:$0xff] %vm751_vm1, %v2988_v14  ;;  %v3541_v43 = vsel %vm1329_vm3, %v3539_v2, %v3540_v0  ;;  %v3543_v4 = vsel %vm1329_vm3, %v3540_v0, %v3542_v56  ;;  %v3685_v28 = vsel %vm1474_vm4, %v3683_v47, %v3684_v42  ;;  %v3196_v32 = vld [vmem:[#allocation2 + $0xe8] sm:$0xf] }
 0x2aa   : > { %v3633_v24 = vmax.f32 %v3431_v26, %v3541_v43  ;;  %v3634_v18 = vmax.f32 %v3432_v5, %v3543_v4  ;;  %v3687_v46 = vsel %vm1474_vm4, %v3684_v42, %v3686_v23  ;;  %v3829_v34 = vsel %vm1619_vm5, %v3827_v61, %v3828_v17  ;;  %v3292_v42 = vld [vmem:[#allocation2 + $0x100] sm:$0xf]  ;;  %v7391_v23 = vld [vmem:[#allocation2 + $0x108] sm:$0xff]  ;;  %v3388_v43 = vld [vmem:[#allocation2 + $0x118] sm:$0xf] }
 0x2ab   : > { %4235 = vrot.lane.b32.xlu1 %v4128_v48, %s5572_s12  ;;  %v3831_v30 = vsel %vm1619_vm5, %v3828_v17, %v3830_v22  ;;  %v3972_v45 = vrot.slane %v3432_v5, 4  ;;  %v3974_v1 = vrot.slane %v3433_v40, 4  ;;  %v3147_v21 = vmax.f32 %v7213_v37, %v7241_v7  ;;  %v7396_v48 = vld [vmem:[#allocation2 + $0x110] sm:$0xff] }
 0x2ac   : > { %v3777_v2 = vmax.f32 %v3633_v24, %v3685_v28  ;;  %v3778_v47 = vmax.f32 %v3634_v18, %v3687_v46  ;;  %v3148_v14 = vmax.f32 %v3052_v35, %v3100_v10  ;;  %v3242_v26 = vmax.f32 %v3146_v9, %v7252_v58  ;;  %v3103_v9 = vld [vmem:[#allocation2 + $0xe8] sm:$0xf]  ;;  %v3055_v46 = vld [vmem:[#allocation2 + $0xd0] sm:$0xf] }
 0x2ad   : > { %v3973_v0 = vsel %vm1764_vm6, %v3971_v13, %v3972_v45  ;;  %v3975_v61 = vsel %vm1764_vm6, %v3972_v45, %v3974_v1  ;;  %v3243_v56 = vmax.f32 %v3147_v21, %v7265_v62  ;;  %v4113_v5 = vpack.c.bf16 %v6596_v15, %v6594_v36 }
 0x2ae   : > { %v3921_v40 = vmax.f32 %v3777_v2, %v3829_v34  ;;  %v3922_v37 = vmax.f32 %v3778_v47, %v3831_v30  ;;  %v3244_v17 = vmax.f32 %v3148_v14, %v3196_v32  ;;  %v3338_v22 = vmax.f32 %v3242_v26, %v7359_v55 }
 0x2af   : > { %v3339_v13 = vmax.f32 %v3243_v56, %v7362_v53  ;;  %v4114_v4 = vpack.c.bf16 %v6600_v49, %v6598_v57  ;;  %v3149_v28 = vmax.f32 %v7239_v51, %v7252_v58  ;;  %v3150_v36 = vmax.f32 %v7241_v7, %v7265_v62 }
 0x2b0   : > { %v4065_v15 = vmax.f32 %v3921_v40, %v3973_v0  ;;  %v4066_v10 = vmax.f32 %v3922_v37, %v3975_v61  ;;  %v3340_v24 = vmax.f32 %v3244_v17, %v3292_v42  ;;  %v3434_v18 = vmax.f32 %v3338_v22, %v7391_v23  ;;  %v3199_v42 = vld [vmem:[#allocation2 + $0x100] sm:$0xf] }
 0x2b1   : > { %v3435_v34 = vmax.f32 %v3339_v13, %v7396_v48  ;;  %v3151_v30 = vmax.f32 %v3055_v46, %v3103_v9  ;;  %v3245_v45 = vmax.f32 %v3149_v28, %v7359_v55  ;;  %v3246_v1 = vmax.f32 %v3150_v36, %v7362_v53  ;;  %v3295_v36 = vld [vmem:[#allocation2 + $0x118] sm:$0xf] }
 0x2b2   : > { %v4139_v35 = vpack.c.bf16 %v4066_v10, %v4065_v15  ;;  %v3436_v21 = vmax.f32 %v3340_v24, %v3388_v43  ;;  %v3544_v32 = vrot.slane %v3434_v18, 1  ;;  %v3688_v51 = vrot.slane %v3434_v18, 2 }
 0x2b3   : > { %v3545_v2 = vrot.slane %v3435_v34, 1  ;;  %v3689_v47 = vrot.slane %v3435_v34, 2  ;;  %v3832_v7 = vrot.slane %v3434_v18, 3  ;;  %v3833_v14 = vrot.slane %v3435_v34, 3 }
 0x2b4   : > { %4273 = vrot.lane.b32.xlu0 %v4139_v35, %s5573_s17  ;;  %v3547_v26 = vrot.slane %v3436_v21, 1  ;;  %v3691_v0 = vrot.slane %v3436_v21, 2  ;;  %v3835_v61 = vrot.slane %v3436_v21, 3  ;;  %v3976_v56 = vrot.slane %v3434_v18, 4  ;;  %v7417_v35 = vld [vmem:[#allocation2 + $0x120] sm:$0xff] }
 0x2b5   : > { %v3546_v40 = vsel %vm1329_vm3, %v3544_v32, %v3545_v2  ;;  %v3690_v37 = vsel %vm1474_vm4, %v3688_v51, %v3689_v47  ;;  %v3834_v17 = vsel %vm1619_vm5, %v3832_v7, %v3833_v14  ;;  %v3977_v22 = vrot.slane %v3435_v34, 4  ;;  %v7419_v32 = vld [vmem:[#allocation2 + $0x128] sm:$0xff]  ;;  %v3106_v51 = vld [vmem:[#allocation2 + $0x100] sm:$0xf] }
 0x2b6   : > { %v3548_v9 = vsel %vm1329_vm3, %v3545_v2, %v3547_v26  ;;  %v3635_v13 = vmax.f32 %v3434_v18, %v3546_v40  ;;  %v3692_v43 = vsel %vm1474_vm4, %v3689_v47, %v3691_v0  ;;  %v3836_v28 = vsel %vm1619_vm5, %v3833_v14, %v3835_v61  ;;  %v3391_v47 = vld [vmem:[#allocation2 + $0x130] sm:$0xf]  ;;  %v3058_v26 = vld [vmem:[#allocation2 + $0xe8] sm:$0xf] }
 0x2b7   : > { %v3636_v15 = vmax.f32 %v3435_v34, %v3548_v9  ;;  %v3978_v10 = vsel %vm1764_vm6, %v3976_v56, %v3977_v22  ;;  %v3979_v24 = vrot.slane %v3436_v21, 4  ;;  %v3247_v46 = vmax.f32 %v3151_v30, %v3199_v42 }
 0x2b8   : > { %v3779_v7 = vmax.f32 %v3635_v13, %v3690_v37  ;;  %4189 = vrot.lane.b32.xlu0 %v4113_v5, %s5571_s11  ;;  %v3341_v18 = vmax.f32 %v3245_v45, %v7391_v23  ;;  %v3342_v2 = vmax.f32 %v3246_v1, %v7396_v48  ;;  %v3152_v34 = vmax.f32 %v7252_v58, %v7359_v55  ;;  %v5241_v5 = vld [vmem:[%s8218_s3 + $0x18] sm:$0xff]   ;;  %v5242_v45 = vld [vmem:[%s8218_s3 + $0x10] sm:$0xff]  }
 0x2b9   : > { %v3780_v14 = vmax.f32 %v3636_v15, %v3692_v43  ;;  %v3980_v21 = vsel %vm1764_vm6, %v3977_v22, %v3979_v24  ;;  %v3343_v30 = vmax.f32 %v3247_v46, %v3295_v36  ;;  %v3153_v0 = vmax.f32 %v7265_v62, %v7362_v53  ;;  %5154 = vmatprep.subr.bf16.mxu1 %v5241_v5 }
 0x2ba   : > { %v3923_v1 = vmax.f32 %v3779_v7, %v3834_v17  ;;  %v3437_v61 = vmax.f32 %v3341_v18, %v7417_v35  ;;  %v3438_v58 = vmax.f32 %v3342_v2, %v7419_v32  ;;  %v3154_v56 = vmax.f32 %v3058_v26, %v3106_v51  ;;  %5155 = vmatpush3.bf16.msra.mxu1 %v5241_v5  ;;  %v3298_v5 = vld [vmem:[#allocation2 + $0x130] sm:$0xf] }
 0x2bb   : > { %v3924_v42 = vmax.f32 %v3780_v14, %v3836_v28  ;;  %v3439_v40 = vmax.f32 %v3343_v30, %v3391_v47  ;;  %v3248_v37 = vmax.f32 %v3152_v34, %v7391_v23  ;;  %v3249_v62 = vmax.f32 %v3153_v0, %v7396_v48  ;;  %5156 = vmatprep.subr.bf16.mxu1 %v5242_v45  ;;  %v5243_v28 = vld [vmem:[%s8218_s3 + $0x8] sm:$0xff]   ;;  %v3202_v14 = vld [vmem:[#allocation2 + $0x118] sm:$0xf] }
 0x2bc   : > { %v4067_v22 = vmax.f32 %v3923_v1, %v3978_v10  ;;  %v3549_v9 = vrot.slane %v3437_v61, 1  ;;  %v3550_v13 = vrot.slane %v3438_v58, 1  ;;  %v3693_v43 = vrot.slane %v3437_v61, 2 }
 0x2bd   : > { %v4068_v36 = vmax.f32 %v3924_v42, %v3980_v21  ;;  %v3552_v15 = vrot.slane %v3439_v40, 1  ;;  %v3694_v17 = vrot.slane %v3438_v58, 2  ;;  %v3696_v24 = vrot.slane %v3439_v40, 2 }
 0x2be   : > { %v3551_v46 = vsel %vm1329_vm3, %v3549_v9, %v3550_v13  ;;  %v3837_v51 = vrot.slane %v3437_v61, 3  ;;  %v3838_v7 = vrot.slane %v3438_v58, 3  ;;  %v3840_v18 = vrot.slane %v3439_v40, 3  ;;  %5157 = vmatpush3.bf16.msra.mxu1 %v5242_v45  ;;  %v5244_v45 = vld [vmem:[%s8218_s3] sm:$0xff]  }
 0x2bf   : > { %v4140_v2 = vpack.c.bf16 %v4068_v36, %v4067_v22  ;;  %v3553_v10 = vsel %vm1329_vm3, %v3550_v13, %v3552_v15  ;;  %v3637_v47 = vmax.f32 %v3437_v61, %v3551_v46  ;;  %v3695_v34 = vsel %vm1474_vm4, %v3693_v43, %v3694_v17  ;;  %v7449_v13 = vld [vmem:[#allocation2 + $0x138] sm:$0xff]  ;;  %v7451_v36 = vld [vmem:[#allocation2 + $0x140] sm:$0xff]  ;;  %5158 = vmatprep.subr.bf16.mxu1 %v5243_v28 }
 0x2c0   : > { %v3638_v21 = vmax.f32 %v3438_v58, %v3553_v10  ;;  %v3697_v30 = vsel %vm1474_vm4, %v3694_v17, %v3696_v24  ;;  %v3839_v26 = vsel %vm1619_vm5, %v3837_v51, %v3838_v7  ;;  %v3841_v0 = vsel %vm1619_vm5, %v3838_v7, %v3840_v18  ;;  %v7455_v46 = vld [vmem:[#allocation2 + $0x180] sm:$0xff]  ;;  %v3394_v51 = vld [vmem:[#allocation2 + $0x148] sm:$0xf] }
 0x2c1   : > { %4275 = vrot.lane.b32.xlu1 %v4140_v2, %s5573_s17  ;;  %v3781_v1 = vmax.f32 %v3637_v47, %v3695_v34  ;;  %v3981_v42 = vrot.slane %v3437_v61, 4  ;;  %v3982_v22 = vrot.slane %v3438_v58, 4  ;;  %v3984_v9 = vrot.slane %v3439_v40, 4 }
 0x2c2   : > { %v3782_v43 = vmax.f32 %v3638_v21, %v3697_v30  ;;  %v3250_v15 = vmax.f32 %v3154_v56, %v3202_v14  ;;  %v3344_v17 = vmax.f32 %v3248_v37, %v7417_v35  ;;  %v3345_v24 = vmax.f32 %v3249_v62, %v7419_v32  ;;  %5159 = vmatpush3.bf16.msra.mxu1 %v5243_v28 }
 0x2c3   : > { %v3925_v61 = vmax.f32 %v3781_v1, %v3839_v26  ;;  %v3983_v58 = vsel %vm1764_vm6, %v3981_v42, %v3982_v22  ;;  %v3985_v40 = vsel %vm1764_vm6, %v3982_v22, %v3984_v9  ;;  %v2073_v7 = vmax.f32 %v7121_v50, %v7142_v27  ;;  %5160 = vmatprep.subr.bf16.mxu1 %v5244_v45  ;;  %v7479_v22 = vld [vmem:[#allocation2 + $0x188] sm:$0xff] }
 0x2c4   : > { %v3926_v56 = vmax.f32 %v3782_v43, %v3841_v0  ;;  %v3346_v18 = vmax.f32 %v3250_v15, %v3298_v5  ;;  %v3440_v37 = vmax.f32 %v3344_v17, %v7449_v13  ;;  %v3441_v62 = vmax.f32 %v3345_v24, %v7451_v36  ;;  %v2123_v24 = vld [vmem:[#allocation2 + $0x160] sm:$0xf] }
 0x2c5   : > { %4191 = vrot.lane.b32.xlu1 %v4114_v4, %s5571_s11  ;;  %v4069_v2 = vmax.f32 %v3925_v61, %v3983_v58  ;;  %v2074_v10 = vmax.f32 %v7126_v19, %v7147_v20  ;;  %v2075_v47 = vmax.f32 %v7349_v33, %v7374_v59  ;;  %v2082_v50 = vmax.f32 %v7297_v6, %v7455_v46 }
 0x2c6   : > { %v4070_v34 = vmax.f32 %v3926_v56, %v3985_v40  ;;  %v3442_v14 = vmax.f32 %v3346_v18, %v3394_v51  ;;  %v3554_v21 = vrot.slane %v3440_v37, 1  ;;  %v3555_v30 = vrot.slane %v3441_v62, 1  ;;  %5161 = vmatpush3.bf16.msra.mxu1 %v5244_v45 }
 0x2c7   : > { %v3698_v28 = vrot.slane %v3440_v37, 2  ;;  %v3699_v26 = vrot.slane %v3441_v62, 2  ;;  %v3842_v0 = vrot.slane %v3440_v37, 3  ;;  %v3843_v57 = vrot.slane %v3441_v62, 3 }
 0x2c8   : > { %v4141_v49 = vpack.c.bf16 %v4070_v34, %v4069_v2  ;;  %v3556_v4 = vsel %vm1329_vm3, %v3554_v21, %v3555_v30  ;;  %v3557_v5 = vrot.slane %v3442_v14, 1  ;;  %v3701_v19 = vrot.slane %v3442_v14, 2  ;;  %v2219_v34 = vld [vmem:[#allocation2 + $0x178] sm:$0xf] }
 0x2c9   : > { %v3639_v1 = vmax.f32 %v3440_v37, %v3556_v4  ;;  %v3700_v33 = vsel %vm1474_vm4, %v3698_v28, %v3699_v26  ;;  %v3844_v59 = vsel %vm1619_vm5, %v3842_v0, %v3843_v57  ;;  %v3845_v42 = vrot.slane %v3442_v14, 3  ;;  %v2315_v0 = vld [vmem:[#allocation2 + $0x190] sm:$0xf] }
 0x2ca   : > { %4277 = vrot.lane.b32.xlu0 %v4141_v49, %s5573_s17  ;;  %v3558_v9 = vsel %vm1329_vm3, %v3555_v30, %v3557_v5  ;;  %v3702_v43 = vsel %vm1474_vm4, %v3699_v26, %v3701_v19  ;;  %v3986_v15 = vrot.slane %v3440_v37, 4  ;;  %v3987_v17 = vrot.slane %v3441_v62, 4 }
 0x2cb   : > { %v3640_v61 = vmax.f32 %v3441_v62, %v3558_v9  ;;  %v3783_v58 = vmax.f32 %v3639_v1, %v3700_v33  ;;  %v3846_v45 = vsel %vm1619_vm5, %v3843_v57, %v3845_v42  ;;  %v3989_v40 = vrot.slane %v3442_v14, 4  ;;  %v2030_v62 = vld [vmem:[#allocation2 + $0x160] sm:$0xf]  ;;  %v7505_v57 = vld [vmem:[#allocation2 + $0x198] sm:$0xff] }
 0x2cc   : > { %v3988_v51 = vsel %vm1764_vm6, %v3986_v15, %v3987_v17  ;;  %v2083_v56 = vmax.f32 %v7299_v52, %v7479_v22  ;;  %v2169_v18 = vmax.f32 %v2073_v7, %v7303_v63  ;;  %v2170_v2 = vmax.f32 %v2074_v10, %v7310_v12 }
 0x2cd   : > { %v3784_v21 = vmax.f32 %v3640_v61, %v3702_v43  ;;  %v3927_v30 = vmax.f32 %v3783_v58, %v3844_v59  ;;  %v3990_v37 = vsel %vm1764_vm6, %v3987_v17, %v3989_v40  ;;  %v2171_v28 = vmax.f32 %v2075_v47, %v2123_v24  ;;  %v2126_v40 = vld [vmem:[#allocation2 + $0x178] sm:$0xf] }
 0x2ce   : > { %v7495_v14 = vmax.f32 %v2079_v39, %v7455_v46  ;;  %v7501_v7 = vmax.f32 %v2080_v41, %v7479_v22  ;;  %v2265_v10 = vmax.f32 %v2169_v18, %v7297_v6  ;;  %v2266_v26 = vmax.f32 %v2170_v2, %v7299_v52  ;;  %v2131_v2 = vld [vmem:[#allocation2 + $0x1a0] sm:$0xff] }
 0x2cf   : > { %v3928_v47 = vmax.f32 %v3784_v21, %v3846_v45  ;;  %v4071_v49 = vmax.f32 %v3927_v30, %v3988_v51  ;;  %v2267_v4 = vmax.f32 %v2171_v28, %v2219_v34  ;;  %v2076_v39 = vmax.f32 %v7142_v27, %v7303_v63  ;;  %v2132_v34 = vld [vmem:[#allocation2 + $0x1a8] sm:$0xf] }
 0x2d0   : > { %v2361_v5 = vmax.f32 %v2265_v10, %v7455_v46  ;;  %v2362_v19 = vmax.f32 %v2266_v26, %v7479_v22  ;;  %v2077_v41 = vmax.f32 %v7147_v20, %v7310_v12  ;;  %v2078_v1 = vmax.f32 %v7372_v38, %v2030_v62 }
 0x2d1   : > { %v4072_v33 = vmax.f32 %v3928_v47, %v3990_v37  ;;  %v2363_v59 = vmax.f32 %v2267_v4, %v2315_v0  ;;  %v2172_v42 = vmax.f32 %v2076_v39, %v7297_v6  ;;  %v7516_v9 = vmax.f32 %v2082_v50, %v7505_v57  ;;  %v2222_v47 = vld [vmem:[#allocation2 + $0x190] sm:$0xf] }
 0x2d2   : > { %v2481_v43 = vrot.slane %v2361_v5, 1  ;;  %v2482_v15 = vrot.slane %v2362_v19, 1  ;;  %v2625_v17 = vrot.slane %v2361_v5, 2  ;;  %v2626_v27 = vrot.slane %v2362_v19, 2 }
 0x2d3   : > { %v4142_v63 = vpack.c.bf16 %v4072_v33, %v4071_v49  ;;  %v2484_v24 = vrot.slane %v2363_v59, 1  ;;  %v2628_v61 = vrot.slane %v2363_v59, 2  ;;  %v2769_v58 = vrot.slane %v2361_v5, 3  ;;  %v2225_v33 = vld [vmem:[#allocation2 + $0x1a8] sm:$0xf] }
 0x2d4   : > { %v2483_v45 = vsel %vm1329_vm3, %v2481_v43, %v2482_v15  ;;  %v2627_v20 = vsel %vm1474_vm4, %v2625_v17, %v2626_v27  ;;  %v2770_v12 = vrot.slane %v2362_v19, 3  ;;  %v2772_v38 = vrot.slane %v2363_v59, 3  ;;  %v7530_v43 = vld [vmem:[#allocation2 + $0x1b0] sm:$0xff]  ;;  %v2228_v17 = vld [vmem:[#allocation2 + $0x1c0] sm:$0xf] }
 0x2d5   : > { %4279 = vrot.lane.b32.xlu1 %v4142_v63, %s5573_s17  ;;  %v2485_v6 = vsel %vm1329_vm3, %v2482_v15, %v2484_v24  ;;  %v2557_v50 = vmax.f32 %v2361_v5, %v2483_v45  ;;  %v2629_v51 = vsel %vm1474_vm4, %v2626_v27, %v2628_v61  ;;  %v2913_v18 = vrot.slane %v2361_v5, 4  ;;  %v7532_v15 = vld [vmem:[#allocation2 + $0x1b8] sm:$0xff] }
 0x2d6   : > { %v2558_v21 = vmax.f32 %v2362_v19, %v2485_v6  ;;  %v2771_v30 = vsel %vm1619_vm5, %v2769_v58, %v2770_v12  ;;  %v2773_v37 = vsel %vm1619_vm5, %v2770_v12, %v2772_v38  ;;  %v2914_v28 = vrot.slane %v2362_v19, 4 }
 0x2d7   : > { %v2701_v62 = vmax.f32 %v2557_v50, %v2627_v20  ;;  %v2916_v10 = vrot.slane %v2363_v59, 4  ;;  %v2173_v26 = vmax.f32 %v2077_v41, %v7299_v52  ;;  %v2174_v0 = vmax.f32 %v2078_v1, %v2126_v40 }
 0x2d8   : > { %v2702_v49 = vmax.f32 %v2558_v21, %v2629_v51  ;;  %v2915_v4 = vsel %vm1764_vm6, %v2913_v18, %v2914_v28  ;;  %v2179_v39 = vmax.f32 %v2083_v56, %v2131_v2  ;;  %v2180_v5 = vmax.f32 %v2084_v3, %v2132_v34  ;;  %v2321_v3 = vld [vmem:[#allocation2 + $0x1c0] sm:$0xf]  ;;  %v7577_v21 = vpop.permute.xlu1 %4171 }
 0x2d9   : > { %v2845_v19 = vmax.f32 %v2701_v62, %v2771_v30  ;;  %v2917_v59 = vsel %vm1764_vm6, %v2914_v28, %v2916_v10  ;;  %v2268_v52 = vmax.f32 %v2172_v42, %v7455_v46  ;;  %v2269_v41 = vmax.f32 %v2173_v26, %v7479_v22  ;;  %v7544_v46 = vld [vmem:[#allocation2 + $0x1c8] sm:$0xff]  ;;  %v7546_v22 = vld [vmem:[#allocation2 + $0x1d0] sm:$0xff]  ;;  %v2324_v42 = vld [vmem:[#allocation2 + $0x1d8] sm:$0xf] }
 0x2da   : > { %v2846_v1 = vmax.f32 %v2702_v49, %v2773_v37  ;;  %v2270_v27 = vmax.f32 %v2174_v0, %v2222_v47  ;;  %v2271_v56 = vmax.f32 %v7495_v14, %v7505_v57  ;;  %v2272_v16 = vmax.f32 %v7501_v7, %v2131_v2 }
 0x2db   : > { %v2989_v63 = vmax.f32 %v2845_v19, %v2915_v4  ;;  %v2273_v24 = vmax.f32 %v7337_v25, %v2225_v33  ;;  %v2274_v61 = vmax.f32 %v7516_v9, %v7530_v43  ;;  %v2275_v58 = vmax.f32 %v2179_v39, %v7532_v15 }
 0x2dc   : > { %v2990_v45 = vmax.f32 %v2846_v1, %v2917_v59  ;;  %v2276_v20 = vmax.f32 %v2180_v5, %v2228_v17  ;;  %v7549_v14 = vmax.f32 %v2268_v52, %v7505_v57  ;;  %v7551_v7 = vmax.f32 %v2269_v41, %v2131_v2  ;;  %v7596_v52 = vpop.permute.xlu1 %4175 }
 0x2dd   : > { %v7553_v12 = vmax.f32 %v2270_v27, %v2318_v60  ;;  %v7556_v25 = vmax.f32 %v2271_v56, %v7530_v43  ;;  %v7559_v9 = vmax.f32 %v2272_v16, %v7532_v15  ;;  %v7561_v38 = vmax.f32 %v2273_v24, %v2321_v3  ;;  %3021 = vst.msk [vmem:[#allocation2 + $0x152] sm:$0xff] %vm751_vm1, %v2989_v63 }
 0x2de   : > { %v4129_v40 = vpack.c.bf16 %v2990_v45, %v2989_v63  ;;  %v7565_v6 = vmax.f32 %v2274_v61, %v7544_v46  ;;  %v7568_v57 = vmax.f32 %v2275_v58, %v7546_v22  ;;  %v7570_v50 = vmax.f32 %v2276_v20, %v2324_v42  ;;  %3022 = vst.msk [vmem:[#allocation2 + $0x15a] sm:$0xff] %vm751_vm1, %v2990_v45 }
 0x2df   : > { %v2486_v51 = vrot.slane %v7549_v14, 1  ;;  %v2487_v18 = vrot.slane %v7551_v7, 1  ;;  %v2489_v2 = vrot.slane %v7553_v12, 1  ;;  %v2491_v34 = vrot.slane %v7556_v25, 1 }
 0x2e0   : > { %4237 = vrot.lane.b32.xlu0 %v4129_v40, %s5572_s12  ;;  %v2492_v30 = vrot.slane %v7559_v9, 1  ;;  %v2494_v37 = vrot.slane %v7561_v38, 1  ;;  %v2496_v28 = vrot.slane %v7565_v6, 1  ;;  %v2497_v62 = vrot.slane %v7568_v57, 1 }
 0x2e1   : > { %v2488_v10 = vsel %vm1329_vm3, %v2486_v51, %v2487_v18  ;;  %v2490_v26 = vsel %vm1329_vm3, %v2487_v18, %v2489_v2  ;;  %v2499_v0 = vrot.slane %v7570_v50, 1  ;;  %v2630_v47 = vrot.slane %v7549_v14, 2  ;;  %v7612_v18 = vpop.permute.xlu1 %4179 }
 0x2e2   : > { %v2493_v49 = vsel %vm1329_vm3, %v2491_v34, %v2492_v30  ;;  %v2495_v4 = vsel %vm1329_vm3, %v2492_v30, %v2494_v37  ;;  %v2498_v39 = vsel %vm1329_vm3, %v2496_v28, %v2497_v62  ;;  %v2559_v5 = vmax.f32 %v7549_v14, %v2488_v10 }
 0x2e3   : > { %v2500_v33 = vsel %vm1329_vm3, %v2497_v62, %v2499_v0  ;;  %v2560_v19 = vmax.f32 %v7551_v7, %v2490_v26  ;;  %v2561_v59 = vmax.f32 %v7556_v25, %v2493_v49  ;;  %v2562_v17 = vmax.f32 %v7559_v9, %v2495_v4 }
 0x2e4   : > { %v2563_v41 = vmax.f32 %v7565_v6, %v2498_v39  ;;  %v2564_v1 = vmax.f32 %v7568_v57, %v2500_v33  ;;  %v2631_v27 = vrot.slane %v7551_v7, 2  ;;  %v2633_v56 = vrot.slane %v7553_v12, 2 }
 0x2e5   : > { %v2635_v16 = vrot.slane %v7556_v25, 2  ;;  %v2636_v60 = vrot.slane %v7559_v9, 2  ;;  %v2638_v3 = vrot.slane %v7561_v38, 2  ;;  %v2640_v63 = vrot.slane %v7565_v6, 2 }
 0x2e6   : > { %v2632_v24 = vsel %vm1474_vm4, %v2630_v47, %v2631_v27  ;;  %v2634_v61 = vsel %vm1474_vm4, %v2631_v27, %v2633_v56  ;;  %v2641_v58 = vrot.slane %v7568_v57, 2  ;;  %v2643_v42 = vrot.slane %v7570_v50, 2 }
 0x2e7   : > { %v2637_v45 = vsel %vm1474_vm4, %v2635_v16, %v2636_v60  ;;  %v2639_v20 = vsel %vm1474_vm4, %v2636_v60, %v2638_v3  ;;  %v2703_v40 = vmax.f32 %v2559_v5, %v2632_v24  ;;  %v2704_v51 = vmax.f32 %v2560_v19, %v2634_v61  ;;  %v7631_v3 = vpop.permute.xlu1 %4213 }
 0x2e8   : > { %v2642_v2 = vsel %vm1474_vm4, %v2640_v63, %v2641_v58  ;;  %v2644_v34 = vsel %vm1474_vm4, %v2641_v58, %v2643_v42  ;;  %v2705_v30 = vmax.f32 %v2561_v59, %v2637_v45  ;;  %v2706_v37 = vmax.f32 %v2562_v17, %v2639_v20 }
 0x2e9   : > { %v2707_v28 = vmax.f32 %v2563_v41, %v2642_v2  ;;  %v2708_v62 = vmax.f32 %v2564_v1, %v2644_v34  ;;  %v2774_v10 = vrot.slane %v7549_v14, 3  ;;  %v2775_v26 = vrot.slane %v7551_v7, 3 }
 0x2ea   : > { %v2777_v0 = vrot.slane %v7553_v12, 3  ;;  %v2779_v47 = vrot.slane %v7556_v25, 3  ;;  %v2780_v49 = vrot.slane %v7559_v9, 3  ;;  %v2782_v4 = vrot.slane %v7561_v38, 3 }
 0x2eb   : > { %v2776_v39 = vsel %vm1619_vm5, %v2774_v10, %v2775_v26  ;;  %v2784_v5 = vrot.slane %v7565_v6, 3  ;;  %v2785_v33 = vrot.slane %v7568_v57, 3  ;;  %v2787_v19 = vrot.slane %v7570_v50, 3 }
 0x2ec   : > { %v2778_v59 = vsel %vm1619_vm5, %v2775_v26, %v2777_v0  ;;  %v2781_v17 = vsel %vm1619_vm5, %v2779_v47, %v2780_v49  ;;  %v2783_v41 = vsel %vm1619_vm5, %v2780_v49, %v2782_v4  ;;  %v2847_v1 = vmax.f32 %v2703_v40, %v2776_v39  ;;  %v3061_v47 = vld [vmem:[#allocation2 + $0x100] sm:$0xf]  ;;  %v3205_v49 = vld [vmem:[#allocation2 + $0x130] sm:$0xf] }
 0x2ed   : > { %v2786_v27 = vsel %vm1619_vm5, %v2784_v5, %v2785_v33  ;;  %v2788_v56 = vsel %vm1619_vm5, %v2785_v33, %v2787_v19  ;;  %v2848_v16 = vmax.f32 %v2704_v51, %v2778_v59  ;;  %v2849_v60 = vmax.f32 %v2705_v30, %v2781_v17  ;;  %v3064_v19 = vld [vmem:[#allocation2 + $0x118] sm:$0xf]  ;;  %v3208_v59 = vld [vmem:[#allocation2 + $0x148] sm:$0xf] }
 0x2ee   : > { %v2850_v63 = vmax.f32 %v2706_v37, %v2783_v41  ;;  %v2851_v24 = vmax.f32 %v2707_v28, %v2786_v27  ;;  %v2852_v61 = vmax.f32 %v2708_v62, %v2788_v56  ;;  %v2918_v58 = vrot.slane %v7549_v14, 4  ;;  %v3109_v28 = vld [vmem:[#allocation2 + $0x118] sm:$0xf]  ;;  %v3301_v41 = vld [vmem:[#allocation2 + $0x148] sm:$0xf] }
 0x2ef   : > { %v2919_v42 = vrot.slane %v7551_v7, 4  ;;  %v2921_v45 = vrot.slane %v7553_v12, 4  ;;  %v2923_v20 = vrot.slane %v7556_v25, 4  ;;  %v2924_v40 = vrot.slane %v7559_v9, 4  ;;  %v7647_v25 = vpop.permute.xlu0 %4165 }
 0x2f0   : > { %v2926_v2 = vrot.slane %v7561_v38, 4  ;;  %v2928_v51 = vrot.slane %v7565_v6, 4  ;;  %v2929_v34 = vrot.slane %v7568_v57, 4  ;;  %v2931_v30 = vrot.slane %v7570_v50, 4  ;;  %v3112_v50 = vld [vmem:[#allocation2 + $0x130] sm:$0xf] }
 0x2f1   : > { %v2920_v37 = vsel %vm1764_vm6, %v2918_v58, %v2919_v42  ;;  %v2922_v14 = vsel %vm1764_vm6, %v2919_v42, %v2921_v45  ;;  %v2925_v7 = vsel %vm1764_vm6, %v2923_v20, %v2924_v40  ;;  %v3155_v12 = vmax.f32 %v7359_v55, %v7391_v23  ;;  %v7658_v55 = vpop.permute.xlu1 %4215  ;;  %v3397_v58 = vld [vmem:[#allocation2 + $0x160] sm:$0xf] }
 0x2f2   : > { %v2927_v9 = vsel %vm1764_vm6, %v2924_v40, %v2926_v2  ;;  %v2930_v38 = vsel %vm1764_vm6, %v2928_v51, %v2929_v34  ;;  %v2932_v6 = vsel %vm1764_vm6, %v2929_v34, %v2931_v30  ;;  %v2991_v57 = vmax.f32 %v2847_v1, %v2920_v37  ;;  %v7673_v1 = vld [vmem:[#allocation2 + $0x150] sm:$0xff]  ;;  %v7694_v34 = vld [vmem:[#allocation2 + $0x148] sm:$0xf] }
 0x2f3   : > { %v2992_v62 = vmax.f32 %v2848_v16, %v2922_v14  ;;  %v7652_v10 = vmax.f32 %v2849_v60, %v2925_v7  ;;  %v7654_v26 = vmax.f32 %v2850_v63, %v2927_v9  ;;  %v7656_v0 = vmax.f32 %v2851_v24, %v2930_v38  ;;  %v7683_v24 = vld [vmem:[#allocation2 + $0x158] sm:$0xff]  ;;  %v7690_v20 = vpop.permute.xlu0 %4167 }
 0x2f4   : > { %v7660_v4 = vmax.f32 %v2852_v61, %v2932_v6  ;;  %3023 = vst.msk [vmem:[#allocation2 + $0x16a] sm:$0xff] %vm751_vm1, %v2991_v57  ;;  %v3156_v39 = vmax.f32 %v7362_v53, %v7396_v48  ;;  %v3157_v5 = vmax.f32 %v3061_v47, %v3109_v28  ;;  %v3251_v33 = vmax.f32 %v3155_v12, %v7417_v35  ;;  %v3304_v61 = vld [vmem:[#allocation2 + $0x160] sm:$0xf] }
 0x2f5   : > { %v4130_v17 = vpack.c.bf16 %v2992_v62, %v2991_v57  ;;  %3024 = vst.msk [vmem:[#allocation2 + $0x172] sm:$0xff] %vm751_vm1, %v2992_v62  ;;  %3025 = vst.msk [vmem:[#allocation2 + $0x182] sm:$0xff] %vm751_vm1, %v7652_v10  ;;  %v3158_v53 = vmax.f32 %v7391_v23, %v7417_v35  ;;  %v3159_v27 = vmax.f32 %v7396_v48, %v7419_v32  ;;  %v7702_v12 = vpop.permute.xlu1 %4183 }
 0x2f6   : > { %3026 = vst.msk [vmem:[#allocation2 + $0x18a] sm:$0xff] %vm751_vm1, %v7654_v26  ;;  %3027 = vst.msk [vmem:[#allocation2 + $0x19a] sm:$0xff] %vm751_vm1, %v7656_v0  ;;  %v3160_v56 = vmax.f32 %v3064_v19, %v3112_v50  ;;  %v3252_v16 = vmax.f32 %v3156_v39, %v7419_v32  ;;  %v3253_v60 = vmax.f32 %v3157_v5, %v3205_v49  ;;  %v7705_v50 = vld [vmem:[#allocation2 + $0x130] sm:$0xf] }
 0x2f7   : > { %3028 = vst.msk [vmem:[#allocation2 + $0x1a2] sm:$0xff] %vm751_vm1, %v7660_v4  ;;  %v3347_v63 = vmax.f32 %v3251_v33, %v7449_v13  ;;  %4239 = vrot.lane.b32.xlu1 %v4130_v17, %s5572_s12  ;;  %v3254_v23 = vmax.f32 %v3158_v53, %v7449_v13  ;;  %v3255_v42 = vmax.f32 %v3159_v27, %v7451_v36 }
 0x2f8   : > { %v3256_v48 = vmax.f32 %v3160_v56, %v3208_v59  ;;  %v3348_v40 = vmax.f32 %v3252_v16, %v7451_v36  ;;  %v3349_v2 = vmax.f32 %v3253_v60, %v3301_v41  ;;  %v3161_v30 = vmax.f32 %v7417_v35, %v7449_v13  ;;  %v7716_v56 = vpop.permute.xlu0 %4169 }
 0x2f9   : > { %v3443_v51 = vmax.f32 %v3347_v63, %v7673_v1  ;;  %v3350_v37 = vmax.f32 %v3254_v23, %v7673_v1  ;;  %v3351_v14 = vmax.f32 %v3255_v42, %v7683_v24  ;;  %v3162_v28 = vmax.f32 %v7419_v32, %v7451_v36 }
 0x2fa   : > { %v3352_v7 = vmax.f32 %v3256_v48, %v3304_v61  ;;  %v3444_v9 = vmax.f32 %v3348_v40, %v7683_v24  ;;  %v3445_v38 = vmax.f32 %v3349_v2, %v3397_v58  ;;  %v7710_v49 = vmax.f32 %v3161_v30, %v7673_v1  ;;  %v7724_v2 = vpop.permute.xlu1 %4219 }
 0x2fb   : > { %v3559_v6 = vrot.slane %v3443_v51, 1  ;;  %v3703_v57 = vrot.slane %v3443_v51, 2  ;;  %v3847_v62 = vrot.slane %v3443_v51, 3  ;;  %v3991_v47 = vrot.slane %v3443_v51, 4  ;;  %v7712_v53 = vld [vmem:[#allocation2 + $0x168] sm:$0xff] }
 0x2fc   : > { %v3560_v39 = vrot.slane %v3444_v9, 1  ;;  %v3562_v5 = vrot.slane %v3445_v38, 1  ;;  %v3704_v32 = vrot.slane %v3444_v9, 2  ;;  %v3706_v33 = vrot.slane %v3445_v38, 2  ;;  %v7714_v27 = vld [vmem:[#allocation2 + $0x170] sm:$0xff] }
 0x2fd   : > { %v3848_v19 = vrot.slane %v3444_v9, 3  ;;  %v3850_v59 = vrot.slane %v3445_v38, 3  ;;  %v3992_v17 = vrot.slane %v3444_v9, 4  ;;  %v3994_v41 = vrot.slane %v3445_v38, 4  ;;  %v3400_v58 = vld [vmem:[#allocation2 + $0x178] sm:$0xf] }
 0x2fe   : > { %v3561_v16 = vsel %vm1329_vm3, %v3559_v6, %v3560_v39  ;;  %v3563_v60 = vsel %vm1329_vm3, %v3560_v39, %v3562_v5  ;;  %v3705_v63 = vsel %vm1474_vm4, %v3703_v57, %v3704_v32  ;;  %v3707_v61 = vsel %vm1474_vm4, %v3704_v32, %v3706_v33 }
 0x2ff   : > { %v3641_v23 = vmax.f32 %v3443_v51, %v3561_v16  ;;  %v3642_v42 = vmax.f32 %v3444_v9, %v3563_v60  ;;  %v3849_v48 = vsel %vm1619_vm5, %v3847_v62, %v3848_v19  ;;  %v3851_v40 = vsel %vm1619_vm5, %v3848_v19, %v3850_v59  ;;  %v7731_v9 = vpop.permute.xlu0 %4173 }
 0x300   : > { %v3993_v30 = vsel %vm1764_vm6, %v3991_v47, %v3992_v17  ;;  %v3995_v38 = vsel %vm1764_vm6, %v3992_v17, %v3994_v41  ;;  %v3446_v6 = vmax.f32 %v3350_v37, %v7712_v53  ;;  %v3447_v39 = vmax.f32 %v3351_v14, %v7714_v27 }
 0x301   : > { %v3785_v57 = vmax.f32 %v3641_v23, %v3705_v63  ;;  %v3786_v5 = vmax.f32 %v3642_v42, %v3707_v61  ;;  %v3448_v32 = vmax.f32 %v3352_v7, %v3400_v58  ;;  %v3258_v51 = vmax.f32 %v3162_v28, %v7683_v24  ;;  %v3211_v58 = vld [vmem:[#allocation2 + $0x160] sm:$0xf]  ;;  %v7738_v42 = vpop.permute.xlu1 %4223 }
 0x302   : > { %v3564_v62 = vrot.slane %v3446_v6, 1  ;;  %v3565_v33 = vrot.slane %v3447_v39, 1  ;;  %v3708_v19 = vrot.slane %v3446_v6, 2  ;;  %v3709_v59 = vrot.slane %v3447_v39, 2 }
 0x303   : > { %v3929_v16 = vmax.f32 %v3785_v57, %v3849_v48  ;;  %v3930_v60 = vmax.f32 %v3786_v5, %v3851_v40  ;;  %v3567_v47 = vrot.slane %v3448_v32, 1  ;;  %v3711_v45 = vrot.slane %v3448_v32, 2  ;;  %v7736_v23 = vpop.permute.xlu0 %4177 }
 0x304   : > { %v3566_v17 = vsel %vm1329_vm3, %v3564_v62, %v3565_v33  ;;  %v3710_v37 = vsel %vm1474_vm4, %v3708_v19, %v3709_v59  ;;  %v3852_v14 = vrot.slane %v3446_v6, 3  ;;  %v3853_v41 = vrot.slane %v3447_v39, 3 }
 0x305   : > { %v4073_v63 = vmax.f32 %v3929_v16, %v3993_v30  ;;  %v4074_v7 = vmax.f32 %v3930_v60, %v3995_v38  ;;  %v3568_v28 = vsel %vm1329_vm3, %v3565_v33, %v3567_v47  ;;  %v3643_v61 = vmax.f32 %v3446_v6, %v3566_v17  ;;  %v3307_v30 = vld [vmem:[#allocation2 + $0x178] sm:$0xf]  ;;  %v7746_v17 = vld [vmem:[#allocation2 + $0x180] sm:$0xff] }
 0x306   : > { %v3644_v48 = vmax.f32 %v3447_v39, %v3568_v28  ;;  %v3712_v40 = vsel %vm1474_vm4, %v3709_v59, %v3711_v45  ;;  %v3854_v57 = vsel %vm1619_vm5, %v3852_v14, %v3853_v41  ;;  %v3855_v5 = vrot.slane %v3448_v32, 3  ;;  %v7748_v28 = vld [vmem:[#allocation2 + $0x188] sm:$0xff] }
 0x307   : > { %v4143_v62 = vpack.c.bf16 %v4074_v7, %v4073_v63  ;;  %v3787_v19 = vmax.f32 %v3643_v61, %v3710_v37  ;;  %v3996_v35 = vrot.slane %v3446_v6, 4  ;;  %v3997_v31 = vrot.slane %v3447_v39, 4  ;;  %v3403_v37 = vld [vmem:[#allocation2 + $0x190] sm:$0xf]  ;;  %v7755_v14 = vpop.permute.xlu0 %4181 }
 0x308   : > { %v3788_v38 = vmax.f32 %v3644_v48, %v3712_v40  ;;  %v3856_v33 = vsel %vm1619_vm5, %v3853_v41, %v3855_v5  ;;  %v3999_v16 = vrot.slane %v3448_v32, 4  ;;  %v8333_v60 = vmax.f32 %v7705_v50, %v7694_v34  ;;  %v3118_v32 = vld [vmem:[#allocation2 + $0x160] sm:$0xf]  ;;  %v7757_v34 = vpop.permute.xlu1 %4227 }
 0x309   : > { %4281 = vrot.lane.b32.xlu0 %v4143_v62, %s5573_s17  ;;  %v3931_v45 = vmax.f32 %v3787_v19, %v3854_v57  ;;  %v3998_v59 = vsel %vm1764_vm6, %v3996_v35, %v3997_v31  ;;  %v3353_v6 = vmax.f32 %v7710_v49, %v7712_v53  ;;  %v3354_v39 = vmax.f32 %v3258_v51, %v7714_v27 }
 0x30a   : > { %v3259_v47 = vmax.f32 %v8333_v60, %v3211_v58  ;;  %v3932_v50 = vmax.f32 %v3788_v38, %v3856_v33  ;;  %v4000_v41 = vsel %vm1764_vm6, %v3997_v31, %v3999_v16  ;;  %v4116_v63 = vpack.c.bf16 %v6608_v44, %v6606_v54  ;;  %v3070_v58 = vld [vmem:[#allocation2 + $0x148] sm:$0xf] }
 0x30b   : > { %v4075_v61 = vmax.f32 %v3931_v45, %v3998_v59  ;;  %v3449_v35 = vmax.f32 %v3353_v6, %v7746_v17  ;;  %v3450_v49 = vmax.f32 %v3354_v39, %v7748_v28  ;;  %v3164_v51 = vmax.f32 %v7449_v13, %v7673_v1  ;;  %v7775_v59 = vpop.permute.xlu0 %4217 }
 0x30c   : > { %v3355_v7 = vmax.f32 %v3259_v47, %v3307_v30  ;;  %v4076_v48 = vmax.f32 %v3932_v50, %v4000_v41  ;;  %v3165_v57 = vmax.f32 %v7451_v36, %v7683_v24  ;;  %v3166_v5 = vmax.f32 %v3070_v58, %v3118_v32  ;;  %v3214_v36 = vld [vmem:[#allocation2 + $0x178] sm:$0xf] }
 0x30d   : > { %v8334_v31 = vpack.c.bf16 %v6604_v8, %v6602_v29  ;;  %v3569_v54 = vrot.slane %v3449_v35, 1  ;;  %v3570_v44 = vrot.slane %v3450_v49, 1  ;;  %v3713_v62 = vrot.slane %v3449_v35, 2  ;;  %v7777_v29 = vpop.permute.xlu1 %4263 }
 0x30e   : > { %v3451_v40 = vmax.f32 %v3355_v7, %v3403_v37  ;;  %v3714_v19 = vrot.slane %v3450_v49, 2  ;;  %v4144_v30 = vpack.c.bf16 %v4076_v48, %v4075_v61  ;;  %v3857_v16 = vrot.slane %v3449_v35, 3  ;;  %v3310_v61 = vld [vmem:[#allocation2 + $0x190] sm:$0xf] }
 0x30f   : > { %4193 = vrot.lane.b32.xlu0 %v8334_v31, %s5571_s11  ;;  %v3571_v13 = vsel %vm1329_vm3, %v3569_v54, %v3570_v44  ;;  %v3858_v47 = vrot.slane %v3450_v49, 3  ;;  %v3260_v45 = vmax.f32 %v3164_v51, %v7712_v53  ;;  %v4001_v37 = vrot.slane %v3449_v35, 4  ;;  %v7784_v54 = vld [vmem:[#allocation2 + $0x198] sm:$0xff] }
 0x310   : > { %v3572_v38 = vrot.slane %v3451_v40, 1  ;;  %v3716_v33 = vrot.slane %v3451_v40, 2  ;;  %v3715_v60 = vsel %vm1474_vm4, %v3713_v62, %v3714_v19  ;;  %4283 = vrot.lane.b32.xlu1 %v4144_v30, %s5573_s17  ;;  %v3645_v6 = vmax.f32 %v3449_v35, %v3571_v13  ;;  %v7788_v35 = vld [vmem:[#allocation2 + $0x1a0] sm:$0xff] }
 0x311   : > { %v3860_v39 = vrot.slane %v3451_v40, 3  ;;  %v3859_v41 = vsel %vm1619_vm5, %v3857_v16, %v3858_v47  ;;  %v4002_v7 = vrot.slane %v3450_v49, 4  ;;  %v4004_v51 = vrot.slane %v3451_v40, 4 }
 0x312   : > { %v3573_v8 = vsel %vm1329_vm3, %v3570_v44, %v3572_v38  ;;  %v3717_v50 = vsel %vm1474_vm4, %v3714_v19, %v3716_v33  ;;  %v3789_v58 = vmax.f32 %v3645_v6, %v3715_v60  ;;  %v3261_v48 = vmax.f32 %v3165_v57, %v7714_v27  ;;  %v3406_v38 = vld [vmem:[#allocation2 + $0x1a8] sm:$0xf]  ;;  %v7790_v19 = vpop.permute.xlu0 %4221  ;;  %v7798_v60 = vpop.permute.xlu1 %4231 }
 0x313   : > { %v3646_v32 = vmax.f32 %v3450_v49, %v3573_v8  ;;  %v3262_v31 = vmax.f32 %v3166_v5, %v3214_v36  ;;  %v4003_v44 = vsel %vm1764_vm6, %v4001_v37, %v4002_v7  ;;  %v3356_v30 = vmax.f32 %v3260_v45, %v7746_v17 }
 0x314   : > { %4195 = vrot.lane.b32.xlu1 %v4116_v63, %s5571_s11  ;;  %v3861_v49 = vsel %vm1619_vm5, %v3858_v47, %v3860_v39  ;;  %v3933_v40 = vmax.f32 %v3789_v58, %v3859_v41  ;;  %v3357_v57 = vmax.f32 %v3261_v48, %v7748_v28  ;;  %v4131_v13 = vpack.c.bf16 %v7654_v26, %v7652_v10 }
 0x315   : > { %v3790_v62 = vmax.f32 %v3646_v32, %v3717_v50  ;;  %v3358_v5 = vmax.f32 %v3262_v31, %v3310_v61  ;;  %v3452_v16 = vmax.f32 %v3356_v30, %v7784_v54  ;;  %v4005_v36 = vsel %vm1764_vm6, %v4002_v7, %v4004_v51  ;;  %v3121_v31 = vld [vmem:[#allocation2 + $0x178] sm:$0xf] }
 0x316   : > { %v4077_v45 = vmax.f32 %v3933_v40, %v4003_v44  ;;  %v3453_v8 = vmax.f32 %v3357_v57, %v7788_v35  ;;  %v7802_v32 = vpop.permute.xlu0 %4225  ;;  %v3167_v7 = vmax.f32 %v7673_v1, %v7712_v53 }
 0x317   : > { %v3934_v33 = vmax.f32 %v3790_v62, %v3861_v49  ;;  %v3454_v63 = vmax.f32 %v3358_v5, %v3406_v38  ;;  %v3574_v47 = vrot.slane %v3452_v16, 1  ;;  %v3718_v39 = vrot.slane %v3452_v16, 2  ;;  %v3073_v5 = vld [vmem:[#allocation2 + $0x160] sm:$0xf] }
 0x318   : > { %v3862_v37 = vrot.slane %v3452_v16, 3  ;;  %v3575_v50 = vrot.slane %v3453_v8, 1  ;;  %v3719_v61 = vrot.slane %v3453_v8, 2  ;;  %v3863_v10 = vrot.slane %v3453_v8, 3 }
 0x319   : > { %v4078_v6 = vmax.f32 %v3934_v33, %v4005_v36  ;;  %v3577_v41 = vrot.slane %v3454_v63, 1  ;;  %v3721_v58 = vrot.slane %v3454_v63, 2  ;;  %v3865_v26 = vrot.slane %v3454_v63, 3  ;;  %v3217_v33 = vld [vmem:[#allocation2 + $0x190] sm:$0xf]  ;;  %v7812_v36 = vpop.permute.xlu1 %4267 }
 0x31a   : > { %v3576_v51 = vsel %vm1329_vm3, %v3574_v47, %v3575_v50  ;;  %v3720_v44 = vsel %vm1474_vm4, %v3718_v39, %v3719_v61  ;;  %v4006_v30 = vrot.slane %v3452_v16, 4  ;;  %v3864_v57 = vsel %vm1619_vm5, %v3862_v37, %v3863_v10  ;;  %v7819_v37 = vpop.permute.xlu0 %4261 }
 0x31b   : > { %v4145_v48 = vpack.c.bf16 %v4078_v6, %v4077_v45  ;;  %v3578_v62 = vsel %vm1329_vm3, %v3575_v50, %v3577_v41  ;;  %v3647_v38 = vmax.f32 %v3452_v16, %v3576_v51  ;;  %v3722_v40 = vsel %vm1474_vm4, %v3719_v61, %v3721_v58  ;;  %v3313_v16 = vld [vmem:[#allocation2 + $0x1a8] sm:$0xf] }
 0x31c   : > { %v3648_v49 = vmax.f32 %v3453_v8, %v3578_v62  ;;  %v4007_v1 = vrot.slane %v3453_v8, 4  ;;  %v4009_v45 = vrot.slane %v3454_v63, 4  ;;  %v3168_v6 = vmax.f32 %v7683_v24, %v7714_v27  ;;  %v3409_v62 = vld [vmem:[#allocation2 + $0x1c0] sm:$0xf] }
 0x31d   : > { %4285 = vrot.lane.b32.xlu0 %v4145_v48, %s5573_s17  ;;  %v3169_v47 = vmax.f32 %v3073_v5, %v3121_v31  ;;  %v3791_v39 = vmax.f32 %v3647_v38, %v3720_v44  ;;  %v3263_v41 = vmax.f32 %v3167_v7, %v7746_v17  ;;  %v3124_v48 = vld [vmem:[#allocation2 + $0x190] sm:$0xf]  ;;  %v3170_v61 = vmax.f32 %v7712_v53, %v7746_v17  ;;  %v3076_v44 = vld [vmem:[#allocation2 + $0x178] sm:$0xf]  ;;  %v3220_v17 = vld [vmem:[#allocation2 + $0x1a8] sm:$0xf]  ;;  %v7832_v5 = vpop.permute.xlu1 %4187 }
 0x31e   : > { %v3792_v50 = vmax.f32 %v3648_v49, %v3722_v40  ;;  %v3866_v58 = vsel %vm1619_vm5, %v3863_v10, %v3865_v26  ;;  %v4008_v8 = vsel %vm1764_vm6, %v4006_v30, %v4007_v1  ;;  %v3264_v63 = vmax.f32 %v3168_v6, %v7748_v28 }
 0x31f   : > { %v3265_v51 = vmax.f32 %v3169_v47, %v3217_v33  ;;  %v3935_v24 = vmax.f32 %v3791_v39, %v3864_v57  ;;  %v3359_v7 = vmax.f32 %v3263_v41, %v7784_v54  ;;  %v3171_v53 = vmax.f32 %v7714_v27, %v7748_v28 }
 0x320   : > { %v3936_v31 = vmax.f32 %v3792_v50, %v3866_v58  ;;  %v4010_v38 = vsel %vm1764_vm6, %v4007_v1, %v4009_v45  ;;  %v3360_v10 = vmax.f32 %v3264_v63, %v7788_v35  ;;  %v3172_v30 = vmax.f32 %v3076_v44, %v3124_v48  ;;  %v7836_v50 = vpop.permute.xlu0 %4229  ;;  %v3316_v63 = vld [vmem:[#allocation2 + $0x1c0] sm:$0xf] }
 0x321   : > { %4241 = vrot.lane.b32.xlu0 %v4131_v13, %s5572_s12  ;;  %v3361_v26 = vmax.f32 %v3265_v51, %v3313_v16  ;;  %v4079_v49 = vmax.f32 %v3935_v24, %v4008_v8  ;;  %v3455_v57 = vmax.f32 %v3359_v7, %v7530_v43  ;;  %v3266_v13 = vmax.f32 %v3170_v61, %v7784_v54 }
 0x322   : > { %v4080_v40 = vmax.f32 %v3936_v31, %v4010_v38  ;;  %v3456_v33 = vmax.f32 %v3360_v10, %v7532_v15  ;;  %v3267_v27 = vmax.f32 %v3171_v53, %v7788_v35  ;;  %v3268_v28 = vmax.f32 %v3172_v30, %v3220_v17  ;;  %v3412_v38 = vld [vmem:[#allocation2 + $0x1d8] sm:$0xf]  ;;  %v7846_v10 = vpop.permute.xlu1 %4271 }
 0x323   : > { %v3457_v6 = vmax.f32 %v3361_v26, %v3409_v62  ;;  %v3579_v1 = vrot.slane %v3455_v57, 1  ;;  %v3723_v45 = vrot.slane %v3455_v57, 2  ;;  %v3867_v39 = vrot.slane %v3455_v57, 3 }
 0x324   : > { %v4146_v47 = vpack.c.bf16 %v4080_v40, %v4079_v49  ;;  %v3580_v41 = vrot.slane %v3456_v33, 1  ;;  %v3724_v48 = vrot.slane %v3456_v33, 2  ;;  %v4132_v54 = vpack.c.bf16 %v7660_v4, %v7656_v0 }
 0x325   : > { %v3582_v16 = vrot.slane %v3457_v6, 1  ;;  %v3726_v58 = vrot.slane %v3457_v6, 2  ;;  %v3868_v61 = vrot.slane %v3456_v33, 3  ;;  %v3870_v8 = vrot.slane %v3457_v6, 3 }
 0x326   : > { %4287 = vrot.lane.b32.xlu1 %v4146_v47, %s5573_s17  ;;  %v3362_v35 = vmax.f32 %v3266_v13, %v7530_v43  ;;  %v3581_v51 = vsel %vm1329_vm3, %v3579_v1, %v3580_v41  ;;  %v4011_v31 = vrot.slane %v3455_v57, 4  ;;  %v4012_v7 = vrot.slane %v3456_v33, 4  ;;  %v4266_v13 = vpop.permute.xlu0 %4265 }
 0x327   : > { %v3583_v24 = vsel %vm1329_vm3, %v3580_v41, %v3582_v16  ;;  %v3649_v62 = vmax.f32 %v3455_v57, %v3581_v51  ;;  %v3725_v53 = vsel %vm1474_vm4, %v3723_v45, %v3724_v48  ;;  %v3727_v17 = vsel %vm1474_vm4, %v3724_v48, %v3726_v58 }
 0x328   : > { %v3650_v44 = vmax.f32 %v3456_v33, %v3583_v24  ;;  %v3869_v0 = vsel %vm1619_vm5, %v3867_v39, %v3868_v61  ;;  %v4014_v4 = vrot.slane %v3457_v6, 4  ;;  %v3363_v43 = vmax.f32 %v3267_v27, %v7532_v15 }
 0x329   : > { %v3364_v26 = vmax.f32 %v3268_v28, %v3316_v63  ;;  %v3793_v30 = vmax.f32 %v3649_v62, %v3725_v53  ;;  %v3871_v40 = vsel %vm1619_vm5, %v3868_v61, %v3870_v8  ;;  %v3458_v57 = vmax.f32 %v3362_v35, %v7544_v46  ;;  %v7856_v46 = vpop.permute.xlu1 %4235 }
 0x32a   : > { %4243 = vrot.lane.b32.xlu1 %v4132_v54, %s5572_s12  ;;  %v3794_v49 = vmax.f32 %v3650_v44, %v3727_v17  ;;  %v4013_v33 = vsel %vm1764_vm6, %v4011_v31, %v4012_v7  ;;  %v4015_v47 = vsel %vm1764_vm6, %v4012_v7, %v4014_v4  ;;  %v3459_v1 = vmax.f32 %v3363_v43, %v7546_v22  ;;  %v7862_v62 = vpop.permute.xlu0 %4185 }
 0x32b   : > { %v3460_v45 = vmax.f32 %v3364_v26, %v3412_v38  ;;  %v3937_v6 = vmax.f32 %v3793_v30, %v3869_v0  ;;  %v3584_v15 = vrot.slane %v3458_v57, 1  ;;  %v3728_v27 = vrot.slane %v3458_v57, 2 }
 0x32c   : > { %v3938_v39 = vmax.f32 %v3794_v49, %v3871_v40  ;;  %v3585_v28 = vrot.slane %v3459_v1, 1  ;;  %v3729_v16 = vrot.slane %v3459_v1, 2  ;;  %v3872_v61 = vrot.slane %v3458_v57, 3 }
 0x32d   : > { %v3587_v41 = vrot.slane %v3460_v45, 1  ;;  %v3731_v48 = vrot.slane %v3460_v45, 2  ;;  %v4081_v58 = vmax.f32 %v3937_v6, %v4013_v33  ;;  %v3873_v35 = vrot.slane %v3459_v1, 3  ;;  %v8335_v6 = vld [vmem:[#allocation9_spill] sm:$0xff] }
 0x32e   : > { %v4082_v54 = vmax.f32 %v3938_v39, %v4015_v47  ;;  %v3586_v8 = vsel %vm1329_vm3, %v3584_v15, %v3585_v28  ;;  %v3730_v22 = vsel %vm1474_vm4, %v3728_v27, %v3729_v16  ;;  %v3875_v44 = vrot.slane %v3460_v45, 3  ;;  %v8338_v27 = vld [vmem:[#allocation8_spill] sm:$0xff] }
 0x32f   : > { %v3588_v63 = vsel %vm1329_vm3, %v3585_v28, %v3587_v41  ;;  %v3651_v24 = vmax.f32 %v3458_v57, %v3586_v8  ;;  %v3732_v7 = vsel %vm1474_vm4, %v3729_v16, %v3731_v48  ;;  %v4016_v53 = vrot.slane %v3458_v57, 4  ;;  %v8336_v57 = vld [vmem:[#allocation7_spill] sm:$0xff]  ;;  %v8339_v28 = vld [vmem:[#allocation6_spill] sm:$0xff]  ;;  %v4270_v48 = vpop.permute.xlu0 %4269 }
 0x330   : > { %v4147_v51 = vpack.c.bf16 %v4082_v54, %v4081_v58  ;;  %v3652_v31 = vmax.f32 %v3459_v1, %v3588_v63  ;;  %v4017_v17 = vrot.slane %v3459_v1, 4  ;;  %v4019_v38 = vrot.slane %v3460_v45, 4  ;;  %v8341_v58 = vld [vmem:[#allocation13_spill] sm:$0xff]  ;;  %v8342_v54 = vld [vmem:[#allocation11_spill] sm:$0xff] }
 0x331   : > { %v3795_v0 = vmax.f32 %v3651_v24, %v3730_v22  ;;  %v3874_v43 = vsel %vm1619_vm5, %v3872_v61, %v3873_v35  ;;  %v3876_v26 = vsel %vm1619_vm5, %v3873_v35, %v3875_v44  ;;  %v8337_v1 = vpack.c.bf16 %v8335_v6, %v8336_v57  ;;  %v8357_v6 = vld [vmem:[#allocation19_spill] sm:$0xff] }
 0x332   : > { %4289 = vrot.lane.b32.xlu0 %v4147_v51, %s5573_s17  ;;  %v3796_v4 = vmax.f32 %v3652_v31, %v3732_v7  ;;  %v4018_v33 = vsel %vm1764_vm6, %v4016_v53, %v4017_v17  ;;  %v4020_v47 = vsel %vm1764_vm6, %v4017_v17, %v4019_v38  ;;  %v8340_v41 = vpack.c.bf16 %v8338_v27, %v8339_v28  ;;  %v8347_v7 = vld [vmem:[#allocation12_spill] sm:$0xff]  ;;  %v8350_v53 = vld [vmem:[#allocation17_spill] sm:$0xff]  ;;  %v8351_v17 = vld [vmem:[#allocation15_spill] sm:$0xff] }
 0x333   : > { %v3939_v30 = vmax.f32 %v3795_v0, %v3874_v43  ;;  %v4276_v40 = vpop.permute.xlu1 %4275  ;;  %v4295_v45 = vsel %vm751_vm1, %v8337_v1, %v7647_v25  ;;  %v8343_v61 = vpack.c.bf16 %v8341_v58, %v8342_v54  ;;  %v8352_v38 = vpack.c.bf16 %v8350_v53, %v8351_v17  ;;  %v8360_v27 = vld [vmem:[#allocation18_spill] sm:$0xff]  ;;  %v8375_v53 = vld [vmem:[#allocation31_spill] sm:$0xff] }
 0x334   : > { %v3940_v49 = vmax.f32 %v3796_v4, %v3876_v26  ;;  %v4298_v16 = vsel %vm751_vm1, %v8340_v41, %v7690_v20  ;;  %v4342_v63 = vsel %vm317_vm0, %v4295_v45, %v7631_v3  ;;  %v4234_v3 = vpop.permute.xlu0 %4233  ;;  %v8362_v41 = vld [vmem:[#allocation25_spill] sm:$0xff] }
 0x335   : > { %v4083_v39 = vmax.f32 %v3939_v30, %v4018_v33  ;;  %v4301_v8 = vsel %vm751_vm1, %v8343_v61, %v7716_v56  ;;  %v4344_v25 = vsel %vm317_vm0, %v4298_v16, %v7658_v55  ;;  %v4375_v51 = vsel %vm4373_vm7, %v4342_v63, %v7819_v37  ;;  %v8344_v55 = vld [vmem:[#allocation32_spill] sm:$0xff]  ;;  %v8348_v37 = vld [vmem:[#allocation10_spill] sm:$0xff] }
 0x336   : > { %v4084_v15 = vmax.f32 %v3940_v49, %v4020_v47  ;;  %v4346_v35 = vsel %vm317_vm0, %v4301_v8, %v7775_v59  ;;  %v4377_v20 = vsel %vm4373_vm7, %v4344_v25, %v7777_v29  ;;  %5162 = vmatprep.mubr.msk.bf16.mxu1 %vm4445_vm8, %v4375_v51  ;;  %v8345_v59 = vld [vmem:[#allocation30_spill] sm:$0xff]  ;;  %v8349_v44 = vpack.c.bf16 %v8347_v7, %v8348_v37  ;;  %v8365_v8 = vld [vmem:[#allocation24_spill] sm:$0xff] }
 0x337   : > { %v4379_v56 = vsel %vm4373_vm7, %v4346_v35, %v4266_v13  ;;  %v4192_v24 = vpop.permute.xlu1 %4191  ;;  %5163 = vmatmul.mubr.msk.bf16.vlgmr.msra.gmra.mxu1 %vm4445_vm8, %v4377_v20  ;;  %v8346_v31 = vpack.c.bf16 %v8344_v55, %v8345_v59  ;;  %v4307_v0 = vsel %vm751_vm1, %v8352_v38, %v7731_v9  ;;  %v8354_v33 = vld [vmem:[#allocation14_spill] sm:$0xff]  ;;  %v8369_v35 = vld [vmem:[#allocation27_spill] sm:$0xff] }
 0x338   : > { %v4148_v22 = vpack.c.bf16 %v4084_v15, %v4083_v39  ;;  %5166 = vmatprep.mubr.msk.bf16.mxu1 %vm4445_vm8, %v4379_v56  ;;  %v4304_v13 = vsel %vm751_vm1, %v8349_v44, %v7577_v21  ;;  %v4350_v43 = vsel %vm317_vm0, %v4307_v0, %v7790_v19  ;;  %v4274_v49 = vpop.permute.xlu0 %4273  ;;  %v8353_v21 = vld [vmem:[#allocation16_spill] sm:$0xff]  ;;  %v8366_v63 = vld [vmem:[#allocation22_spill] sm:$0xff] }
 0x339   : > { %v4334_v29 = vsel %vm751_vm1, %v8346_v31, %v4192_v24  ;;  %v4348_v4 = vsel %vm317_vm0, %v4304_v13, %v7724_v2  ;;  %v4383_v30 = vsel %vm4373_vm7, %v4350_v43, %v4270_v48  ;;  %v8355_v9 = vpack.c.bf16 %v8353_v21, %v8354_v33  ;;  %v8356_v2 = vld [vmem:[#allocation21_spill] sm:$0xff]  ;;  %v8372_v59 = vld [vmem:[#allocation26_spill] sm:$0xff]  ;;  %v8377_v21 = vld [vmem:[#allocation35_spill] sm:$0xff] }
 0x33a   : > { %4291 = vrot.lane.b32.xlu1 %v4148_v22, %s5573_s17  ;;  %v4381_v26 = vsel %vm4373_vm7, %v4348_v4, %v7812_v36  ;;  %v8358_v19 = vpack.c.bf16 %v8356_v2, %v8357_v6  ;;  %v8367_v25 = vpack.c.bf16 %v8365_v8, %v8366_v63  ;;  %v8368_v22 = vld [vmem:[#allocation29_spill] sm:$0xff]  ;;  %v8378_v33 = vpack.c.bf16 %v6324_v11, %v8377_v21 }
 0x33b   : > { %v4310_v47 = vsel %vm751_vm1, %v8355_v9, %v7596_v52  ;;  %v8359_v52 = vld [vmem:[#allocation20_spill] sm:$0xff]  ;;  %v8370_v20 = vpack.c.bf16 %v8368_v22, %v8369_v35  ;;  %v8374_v13 = vld [vmem:[#allocation33_spill] sm:$0xff] }
 0x33c   : > { %v4313_v57 = vsel %vm751_vm1, %v8358_v19, %v7736_v23  ;;  %v4352_v36 = vsel %vm317_vm0, %v4310_v47, %v7738_v42  ;;  %v4190_v39 = vpop.permute.xlu0 %4189  ;;  %v8361_v23 = vpack.c.bf16 %v8359_v52, %v8360_v27  ;;  %v8376_v17 = vpack.c.bf16 %v8374_v13, %v8375_v53 }
 0x33d   : > { %v4354_v1 = vsel %vm317_vm0, %v4313_v57, %v7802_v32  ;;  %v4385_v45 = vsel %vm4373_vm7, %v4352_v36, %v7846_v10  ;;  %v8363_v32 = vld [vmem:[#allocation23_spill] sm:$0xff]  ;;  %v4325_v51 = vsel %vm751_vm1, %v8370_v20, %v7862_v62  ;;  %v8380_v57 = vld [vmem:[#allocation34_spill] sm:$0xff] }
 0x33e   : > { %v4387_v15 = vsel %vm4373_vm7, %v4354_v1, %v4274_v49  ;;  %v4316_v28 = vsel %vm751_vm1, %v8361_v23, %v7612_v18  ;;  %v8364_v16 = vpack.c.bf16 %v8362_v41, %v8363_v32  ;;  %v4362_v56 = vsel %vm317_vm0, %v4325_v51, %v4234_v3 }
 0x33f   : > { %5167 = vmatmul.mubr.msk.bf16.gmra.mxu1 %vm4445_vm8, %v4381_v26  ;;  %v4356_v48 = vsel %vm317_vm0, %v4316_v28, %v7757_v34  ;;  %v4331_v38 = vsel %vm751_vm1, %v8376_v17, %v4190_v39 }
 0x340   : > { %5170 = vmatprep.mubr.msk.bf16.mxu1 %vm4445_vm8, %v4383_v30  ;;  %v4278_v42 = vpop.permute.xlu0 %4277  ;;  %v4319_v10 = vsel %vm751_vm1, %v8364_v16, %v7755_v14  ;;  %v4389_v54 = vsel %vm4373_vm7, %v4356_v48, %v4276_v40  ;;  %v4322_v14 = vsel %vm751_vm1, %v8367_v25, %v7702_v12 }
 0x341   : > { %v4358_v58 = vsel %vm317_vm0, %v4319_v10, %v7836_v50  ;;  %v4360_v34 = vsel %vm317_vm0, %v4322_v14, %v7798_v60  ;;  %v8371_v60 = vld [vmem:[#allocation28_spill] sm:$0xff] }
 0x342   : > { %v4391_v61 = vsel %vm4373_vm7, %v4358_v58, %v4278_v42  ;;  %v8373_v31 = vpack.c.bf16 %v8371_v60, %v8372_v59 }
 0x344   : > { %v4328_v7 = vsel %vm751_vm1, %v8373_v31, %v7832_v5 }
 0x345   : > { %v4364_v37 = vsel %vm317_vm0, %v4328_v7, %v7856_v46 }
 0x347   : > { %5171 = vmatmul.mubr.msk.bf16.gmra.mxu1 %vm4445_vm8, %v4385_v45  ;;  %v4280_v18 = vpop.permute.xlu1 %4279 }
 0x348   : > { %5174 = vmatprep.mubr.msk.bf16.mxu1 %vm4445_vm8, %v4387_v15  ;;  %v4393_v50 = vsel %vm4373_vm7, %v4360_v34, %v4280_v18  ;;  %v8012_v15 = vld [vmem:[%s8219_s4] ss:$0 sm:$0xff] }
 0x34f   : > { %5175 = vmatmul.mubr.msk.bf16.gmra.mxu1 %vm4445_vm8, %v4389_v54 }
 0x350   : > { %5178 = vmatprep.mubr.msk.bf16.mxu1 %vm4445_vm8, %v4391_v61 }
 0x352   : > { %v4238_v40 = vpop.permute.xlu0 %4237 }
 0x353   : > { %v4366_v0 = vsel %vm317_vm0, %v4331_v38, %v4238_v40 }
 0x357   : > { %5179 = vmatmul.mubr.msk.bf16.gmra.mxu1 %vm4445_vm8, %v4393_v50 }
 0x369   : > { %v4240_v55 = vpop.permute.xlu1 %4239 }
 0x36a   : > { %v4368_v46 = vsel %vm317_vm0, %v4334_v29, %v4240_v55  ;;  %v8379_v29 = vld [vmem:[#allocation36_spill] sm:$0xff] }
 0x36b   : > { %v8381_v36 = vpack.c.bf16 %v8379_v29, %v8380_v57 }
 0x37b   : > { %v4282_v24 = vpop.permute.xlu0 %4281 }
 0x37c   : > { %v4395_v12 = vsel %vm4373_vm7, %v4362_v56, %v4282_v24 }
 0x37d   : > { %5182 = vmatprep.mubr.msk.bf16.mxu1 %vm4445_vm8, %v4395_v12 }
 0x381   : > { %v4194_v3 = vpop.permute.xlu0 %4193 }
 0x382   : > { %v4284_v44 = vpop.permute.xlu1 %4283  ;;  %v4337_v9 = vsel %vm751_vm1, %v8378_v33, %v4194_v3 }
 0x383   : > { %v4397_v62 = vsel %vm4373_vm7, %v4364_v37, %v4284_v44 }
 0x384   : > { %5183 = vmatmul.mubr.msk.bf16.gmra.mxu1 %vm4445_vm8, %v4397_v62 }
 0x386   : > { %v4196_v5 = vpop.permute.xlu1 %4195 }
 0x387   : > { %v4340_v1 = vsel %vm751_vm1, %v8381_v36, %v4196_v5 }
 0x38f   : > { %v4286_v4 = vpop.permute.xlu0 %4285 }
 0x390   : > { %v4399_v43 = vsel %vm4373_vm7, %v4366_v0, %v4286_v4 }
 0x391   : > { %5186 = vmatprep.mubr.msk.bf16.mxu1 %vm4445_vm8, %v4399_v43 }
 0x393   : > { %v4242_v49 = vpop.permute.xlu0 %4241 }
 0x394   : > { %v4370_v47 = vsel %vm317_vm0, %v4337_v9, %v4242_v49 }
 0x398   : > { %v4288_v26 = vpop.permute.xlu1 %4287 }
 0x399   : > { %v4401_v30 = vsel %vm4373_vm7, %v4368_v46, %v4288_v26 }
 0x39a   : > { %5187 = vmatmul.mubr.msk.bf16.gmra.mxu1 %vm4445_vm8, %v4401_v30 }
 0x39c   : > { %v4244_v19 = vpop.permute.xlu1 %4243 }
 0x39d   : > { %v4372_v45 = vsel %vm317_vm0, %v4340_v1, %v4244_v19 }
 0x3a4   : > { %v4290_v2 = vpop.permute.xlu0 %4289 }
 0x3a5   : > { %v4403_v6 = vsel %vm4373_vm7, %v4370_v47, %v4290_v2 }
 0x3a6   : > { %5190 = vmatprep.mubr.msk.bf16.mxu1 %vm4445_vm8, %v4403_v6 }
 0x3ac   : > { %v4292_v39 = vpop.permute.xlu1 %4291 }
 0x3ad   : > { %v4405_v11 = vsel %vm4373_vm7, %v4372_v45, %v4292_v39 }
 0x3ae   : > { %5191 = vmatmul.mubr.msk.bf16.gmra.mxu1 %vm4445_vm8, %v4405_v11 }
 0x3f7   : > { %v5164_v52 = vpop.f32.mrf.mxu1 }
 0x3f8   : > { %v8015_v27 = vadd.f32 %v5164_v52, %v8012_v15 }
 0x3f9   : > { %v4512_v23 = vpop.f32.mrf.mxu1 }
 0x3fa   : > { %v5046_v28 = vmul.f32 -1.442695, %v8015_v27  ;;  %v8019_v42 = vadd.f32 %v8012_v15, %v4512_v23 }
 0x3fb   : > { %v5165_v41 = vpop.f32.mrf.mxu1 }
 0x3fc   : > { %5373 = vpow2.f32 %v5046_v28  ;;  %v5044_v32 = vmul.f32 -1.442695, %v8019_v42  ;;  %v8023_v16 = vadd.f32 %v5165_v41, %v8012_v15 }
 0x3fd   : > { %v4515_v10 = vpop.f32.mrf.mxu1 }
 0x3fe   : > { %5375 = vpow2.f32 %v5044_v32  ;;  %v5047_v48 = vmul.f32 -1.442695, %v8023_v16  ;;  %v8027_v58 = vadd.f32 %v8012_v15, %v4515_v10 }
 0x3ff   : > { %v5168_v54 = vpop.f32.mrf.mxu1 }
 0x400   : > { %5377 = vpow2.f32 %v5047_v48  ;;  %v5045_v61 = vmul.f32 -1.442695, %v8027_v58  ;;  %v8031_v18 = vadd.f32 %v5168_v54, %v8012_v15 }
 0x401   : > { %v4528_v8 = vpop.f32.mrf.mxu1 }
 0x402   : > { %5379 = vpow2.f32 %v5045_v61  ;;  %v5050_v63 = vmul.f32 -1.442695, %v8031_v18  ;;  %v8035_v25 = vadd.f32 %v8012_v15, %v4528_v8 }
 0x403   : > { %v5169_v14 = vpop.f32.mrf.mxu1 }
 0x404   : > { %5381 = vpow2.f32 %v5050_v63  ;;  %v5048_v34 = vmul.f32 -1.442695, %v8035_v25  ;;  %v8039_v50 = vadd.f32 %v5169_v14, %v8012_v15 }
 0x405   : > { %v4531_v40 = vpop.f32.mrf.mxu1 }
 0x406   : > { %5383 = vpow2.f32 %v5048_v34  ;;  %v5051_v22 = vmul.f32 -1.442695, %v8039_v50  ;;  %v8043_v35 = vadd.f32 %v8012_v15, %v4531_v40 }
 0x407   : > { %v5172_v20 = vpop.f32.mrf.mxu1 }
 0x408   : > { %5385 = vpow2.f32 %v5051_v22  ;;  %v5049_v51 = vmul.f32 -1.442695, %v8043_v35  ;;  %v8047_v56 = vadd.f32 %v5172_v20, %v8012_v15 }
 0x409   : > { %v5374_v24 = vpop.eup %5373  ;;  %v4544_v55 = vpop.f32.mrf.mxu1 }
 0x40a   : > { %v4737_v12 = vadd.f32 1.0, %v5374_v24  ;;  %5387 = vpow2.f32 %v5049_v51  ;;  %v5054_v60 = vmul.f32 -1.442695, %v8047_v56  ;;  %v8051_v59 = vadd.f32 %v8012_v15, %v4544_v55 }
 0x40b   : > { %v5376_v31 = vpop.eup %5375  ;;  %v5173_v7 = vpop.f32.mrf.mxu1 }
 0x40c   : > { %5389 = vrcp.f32 %v4737_v12  ;;  %v4735_v37 = vadd.f32 1.0, %v5376_v31  ;;  %v5052_v44 = vmul.f32 -1.442695, %v8051_v59  ;;  %v8055_v62 = vadd.f32 %v5173_v7, %v8012_v15 }
 0x40d   : > { %v5378_v3 = vpop.eup %5377  ;;  %5391 = vpow2.f32 %v5054_v60  ;;  %v4547_v13 = vpop.f32.mrf.mxu1 }
 0x40e   : > { %5393 = vrcp.f32 %v4735_v37  ;;  %v4738_v53 = vadd.f32 1.0, %v5378_v3  ;;  %v5055_v17 = vmul.f32 -1.442695, %v8055_v62  ;;  %v8060_v38 = vadd.f32 %v8012_v15, %v4547_v13 }
 0x40f   : > { %v5380_v0 = vpop.eup %5379  ;;  %5395 = vpow2.f32 %v5052_v44  ;;  %v5176_v4 = vpop.f32.mrf.mxu1 }
 0x410   : > { %5397 = vrcp.f32 %v4738_v53  ;;  %v4736_v43 = vadd.f32 1.0, %v5380_v0  ;;  %v5053_v5 = vmul.f32 -1.442695, %v8060_v38  ;;  %v8064_v46 = vadd.f32 %v5176_v4, %v8012_v15 }
 0x411   : > { %v5382_v26 = vpop.eup %5381  ;;  %5399 = vpow2.f32 %v5055_v17  ;;  %v4560_v30 = vpop.f32.mrf.mxu1 }
 0x412   : > { %5401 = vrcp.f32 %v4736_v43  ;;  %v4741_v49 = vadd.f32 1.0, %v5382_v26  ;;  %v5058_v21 = vmul.f32 -1.442695, %v8064_v46  ;;  %v8073_v33 = vadd.f32 %v8012_v15, %v4560_v30 }
 0x413   : > { %v5384_v9 = vpop.eup %5383  ;;  %5403 = vpow2.f32 %v5053_v5  ;;  %v5177_v47 = vpop.f32.mrf.mxu1 }
 0x414   : > { %5405 = vrcp.f32 %v4741_v49  ;;  %v4739_v2 = vadd.f32 1.0, %v5384_v9  ;;  %v5056_v6 = vmul.f32 -1.442695, %v8073_v33  ;;  %v8077_v19 = vadd.f32 %v5177_v47, %v8012_v15 }
 0x415   : > { %v5386_v29 = vpop.eup %5385  ;;  %5407 = vpow2.f32 %v5058_v21  ;;  %v4563_v57 = vpop.f32.mrf.mxu1 }
 0x416   : > { %5409 = vrcp.f32 %v4739_v2  ;;  %v4742_v36 = vadd.f32 1.0, %v5386_v29  ;;  %v5059_v1 = vmul.f32 -1.442695, %v8077_v19  ;;  %v8082_v45 = vadd.f32 %v8012_v15, %v4563_v57 }
 0x417   : > { %v5388_v39 = vpop.eup %5387  ;;  %5411 = vpow2.f32 %v5056_v6  ;;  %v5180_v11 = vpop.f32.mrf.mxu1 }
 0x418   : > { %5413 = vrcp.f32 %v4742_v36  ;;  %v4740_v52 = vadd.f32 1.0, %v5388_v39  ;;  %v5057_v23 = vmul.f32 -1.442695, %v8082_v45  ;;  %v8086_v28 = vadd.f32 %v5180_v11, %v8012_v15 }
 0x419   : > { %v5390_v41 = vpop.eup %5389  ;;  %5415 = vpow2.f32 %v5059_v1  ;;  %v4576_v32 = vpop.f32.mrf.mxu1 }
 0x41a   : > { %v5392_v10 = vpop.eup %5391  ;;  %v4833_v48 = vmul.f32 %v5390_v41, %v8015_v27  ;;  %5417 = vrcp.f32 %v4740_v52  ;;  %v5062_v54 = vmul.f32 -1.442695, %v8086_v28  ;;  %v8096_v61 = vadd.f32 %v8012_v15, %v4576_v32 }
 0x41b   : > { %v5394_v8 = vpop.eup %5393  ;;  %v4745_v63 = vadd.f32 1.0, %v5392_v10  ;;  %5419 = vpow2.f32 %v5057_v23  ;;  %v5181_v14 = vpop.f32.mrf.mxu1 }
 0x41c   : > { %v5396_v34 = vpop.eup %5395  ;;  %4865 = vst.msk [vmem:[%s8091_s16 + $0x10] sm:$0xff] %vm317_vm0, %v4833_v48  ;;  %v4831_v40 = vmul.f32 %v5394_v8, %v8019_v42  ;;  %5421 = vpow2.f32 %v5062_v54  ;;  %v5060_v22 = vmul.f32 -1.442695, %v8096_v61  ;;  %v8103_v27 = vadd.f32 %v5181_v14, %v8012_v15 }
 0x41d   : > { %v5398_v20 = vpop.eup %5397  ;;  %5423 = vrcp.f32 %v4745_v63  ;;  %v4743_v51 = vadd.f32 1.0, %v5396_v34  ;;  %v4579_v24 = vpop.f32.mrf.mxu1 }
 0x41e   : > { %v5400_v55 = vpop.eup %5399  ;;  %4863 = vst.msk [vmem:[%s8091_s16] sm:$0xff] %vm317_vm0, %v4831_v40  ;;  %v4834_v12 = vmul.f32 %v5398_v20, %v8023_v16  ;;  %5425 = vpow2.f32 %v5060_v22  ;;  %v5063_v42 = vmul.f32 -1.442695, %v8103_v27  ;;  %v8110_v60 = vadd.f32 %v8012_v15, %v4579_v24 }
 0x41f   : > { %v5402_v31 = vpop.eup %5401  ;;  %5427 = vrcp.f32 %v4743_v51  ;;  %v4746_v7 = vadd.f32 1.0, %v5400_v55 }
 0x420   : > { %v5404_v37 = vpop.eup %5403  ;;  %4866 = vst.msk [vmem:[%s8091_s16 + $0x18] sm:$0xff] %vm317_vm0, %v4834_v12  ;;  %v4832_v44 = vmul.f32 %v5402_v31, %v8027_v58  ;;  %5429 = vpow2.f32 %v5063_v42  ;;  %v5061_v3 = vmul.f32 -1.442695, %v8110_v60 }
 0x421   : > { %v5406_v16 = vpop.eup %5405  ;;  %5431 = vrcp.f32 %v4746_v7  ;;  %v4744_v13 = vadd.f32 1.0, %v5404_v37 }
 0x422   : > { %v5408_v53 = vpop.eup %5407  ;;  %4864 = vst.msk [vmem:[%s8091_s16 + $0x8] sm:$0xff] %vm317_vm0, %v4832_v44  ;;  %v4837_v17 = vmul.f32 %v5406_v16, %v8031_v18  ;;  %5433 = vpow2.f32 %v5061_v3 }
 0x423   : > { %v5410_v0 = vpop.eup %5409  ;;  %5435 = vrcp.f32 %v4744_v13  ;;  %v4749_v4 = vadd.f32 1.0, %v5408_v53 }
 0x424   : > { %v5412_v43 = vpop.eup %5411  ;;  %4869 = vst.msk [vmem:[%s8091_s16 + $0x30] sm:$0xff] %vm317_vm0, %v4837_v17  ;;  %v4835_v58 = vmul.f32 %v5410_v0, %v8035_v25 }
 0x425   : > { %v5414_v5 = vpop.eup %5413  ;;  %5437 = vrcp.f32 %v4749_v4  ;;  %v4747_v26 = vadd.f32 1.0, %v5412_v43 }
 0x426   : > { %v5416_v30 = vpop.eup %5415  ;;  %4867 = vst.msk [vmem:[%s8091_s16 + $0x20] sm:$0xff] %vm317_vm0, %v4835_v58  ;;  %v4838_v49 = vmul.f32 %v5414_v5, %v8039_v50 }
 0x427   : > { %v5418_v18 = vpop.eup %5417  ;;  %5439 = vrcp.f32 %v4747_v26  ;;  %v4750_v21 = vadd.f32 1.0, %v5416_v30 }
 0x428   : > { %v5420_v9 = vpop.eup %5419  ;;  %4870 = vst.msk [vmem:[%s8091_s16 + $0x38] sm:$0xff] %vm317_vm0, %v4838_v49  ;;  %v4836_v47 = vmul.f32 %v5418_v18, %v8043_v35 }
 0x429   : > { %v5422_v2 = vpop.eup %5421  ;;  %5441 = vrcp.f32 %v4750_v21  ;;  %v4748_v25 = vadd.f32 1.0, %v5420_v9 }
 0x42a   : > { %v5424_v6 = vpop.eup %5423  ;;  %4868 = vst.msk [vmem:[%s8091_s16 + $0x28] sm:$0xff] %vm317_vm0, %v4836_v47  ;;  %v4753_v29 = vadd.f32 1.0, %v5422_v2 }
 0x42b   : > { %v5426_v57 = vpop.eup %5425  ;;  %v4841_v50 = vmul.f32 %v5424_v6, %v8047_v56  ;;  %5443 = vrcp.f32 %v4748_v25 }
 0x42c   : > { %v5428_v36 = vpop.eup %5427  ;;  %5445 = vrcp.f32 %v4753_v29  ;;  %v4751_v1 = vadd.f32 1.0, %v5426_v57 }
 0x42d   : > { %v5430_v39 = vpop.eup %5429  ;;  %4873 = vst.msk [vmem:[%s8091_s16 + $0x50] sm:$0xff] %vm317_vm0, %v4841_v50  ;;  %v4839_v35 = vmul.f32 %v5428_v36, %v8051_v59 }
 0x42e   : > { %v5432_v11 = vpop.eup %5431  ;;  %5447 = vrcp.f32 %v4751_v1  ;;  %v4754_v52 = vadd.f32 1.0, %v5430_v39 }
 0x42f   : > { %v5434_v23 = vpop.eup %5433  ;;  %4871 = vst.msk [vmem:[%s8091_s16 + $0x40] sm:$0xff] %vm317_vm0, %v4839_v35  ;;  %v4842_v56 = vmul.f32 %v5432_v11, %v8055_v62 }
 0x430   : > { %v5436_v41 = vpop.eup %5435  ;;  %5449 = vrcp.f32 %v4754_v52  ;;  %v4752_v32 = vadd.f32 1.0, %v5434_v23 }
 0x431   : > { %4874 = vst.msk [vmem:[%s8091_s16 + $0x58] sm:$0xff] %vm317_vm0, %v4842_v56  ;;  %v4840_v10 = vmul.f32 %v5436_v41, %v8060_v38 }
 0x432   : > { %v5438_v48 = vpop.eup %5437  ;;  %5451 = vrcp.f32 %v4752_v32 }
 0x433   : > { %4872 = vst.msk [vmem:[%s8091_s16 + $0x48] sm:$0xff] %vm317_vm0, %v4840_v10  ;;  %v4845_v59 = vmul.f32 %v5438_v48, %v8064_v46 }
 0x434   : > { %v5440_v54 = vpop.eup %5439 }
 0x435   : > { %4877 = vst.msk [vmem:[%s8091_s16 + $0x70] sm:$0xff] %vm317_vm0, %v4845_v59  ;;  %v4843_v62 = vmul.f32 %v5440_v54, %v8073_v33 }
 0x436   : > { %v5442_v8 = vpop.eup %5441 }
 0x437   : > { %4875 = vst.msk [vmem:[%s8091_s16 + $0x60] sm:$0xff] %vm317_vm0, %v4843_v62  ;;  %v4846_v38 = vmul.f32 %v5442_v8, %v8077_v19 }
 0x438   : > { %v5444_v63 = vpop.eup %5443 }
 0x439   : > { %v5446_v14 = vpop.eup %5445  ;;  %4878 = vst.msk [vmem:[%s8091_s16 + $0x78] sm:$0xff] %vm317_vm0, %v4846_v38  ;;  %v4844_v34 = vmul.f32 %v5444_v63, %v8082_v45 }
 0x43a   : > { %v4849_v46 = vmul.f32 %v5446_v14, %v8086_v28 }
 0x43b   : > { %v5448_v40 = vpop.eup %5447  ;;  %4876 = vst.msk [vmem:[%s8091_s16 + $0x68] sm:$0xff] %vm317_vm0, %v4844_v34 }
 0x43c   : > { %4881 = vst.msk [vmem:[%s8091_s16 + $0x90] sm:$0xff] %vm317_vm0, %v4849_v46  ;;  %v4847_v33 = vmul.f32 %v5448_v40, %v8096_v61 }
 0x43d   : > { %v5450_v22 = vpop.eup %5449 }
 0x43e   : > { %4879 = vst.msk [vmem:[%s8091_s16 + $0x80] sm:$0xff] %vm317_vm0, %v4847_v33  ;;  %v4850_v19 = vmul.f32 %v5450_v22, %v8103_v27 }
 0x43f   : > { %v5452_v20 = vpop.eup %5451 }
 0x440   : > { %4882 = vst.msk [vmem:[%s8091_s16 + $0x98] sm:$0xff] %vm317_vm0, %v4850_v19  ;;  %v4848_v51 = vmul.f32 %v5452_v20, %v8110_v60 }
 0x442   : > { %4880 = vst.msk [vmem:[%s8091_s16 + $0x88] sm:$0xff] %vm317_vm0, %v4848_v51 }
 0x444   : > { %v5184_v45 = vpop.f32.mrf.mxu1 }
 0x445   : > { %v4601_v28 = vadd.f32 %v5184_v45, %v8012_v15 }
 0x446   : > { %v4592_v24 = vpop.f32.mrf.mxu1 }
 0x447   : > { %v5066_v55 = vmul.f32 -1.442695, %v4601_v28  ;;  %v4593_v12 = vadd.f32 %v8012_v15, %v4592_v24 }
 0x448   : > { %v5185_v61 = vpop.f32.mrf.mxu1 }
 0x449   : > { %5453 = vpow2.f32 %v5066_v55  ;;  %v5064_v42 = vmul.f32 -1.442695, %v4593_v12  ;;  %v4604_v31 = vadd.f32 %v5185_v61, %v8012_v15 }
 0x44a   : > { %v4595_v27 = vpop.f32.mrf.mxu1 }
 0x44b   : > { %5455 = vpow2.f32 %v5064_v42  ;;  %v5067_v7 = vmul.f32 -1.442695, %v4604_v31  ;;  %v4596_v37 = vadd.f32 %v8012_v15, %v4595_v27 }
 0x44d   : > { %5457 = vpow2.f32 %v5067_v7  ;;  %v5065_v60 = vmul.f32 -1.442695, %v4596_v37 }
 0x44f   : > { %5459 = vpow2.f32 %v5065_v60 }
 0x456   : > { %v5454_v44 = vpop.eup %5453 }
 0x457   : > { %v4757_v3 = vadd.f32 1.0, %v5454_v44 }
 0x458   : > { %v5456_v16 = vpop.eup %5455 }
 0x459   : > { %5461 = vrcp.f32 %v4757_v3  ;;  %v4755_v13 = vadd.f32 1.0, %v5456_v16 }
 0x45a   : > { %v5188_v53 = vpop.f32.mrf.mxu1  ;;  %v5458_v17 = vpop.eup %5457 }
 0x45b   : > { %v4617_v0 = vadd.f32 %v5188_v53, %v8012_v15  ;;  %5463 = vrcp.f32 %v4755_v13  ;;  %v4758_v4 = vadd.f32 1.0, %v5458_v17 }
 0x45c   : > { %v4608_v43 = vpop.f32.mrf.mxu1  ;;  %v5460_v58 = vpop.eup %5459 }
 0x45d   : > { %v5070_v5 = vmul.f32 -1.442695, %v4617_v0  ;;  %v4609_v26 = vadd.f32 %v8012_v15, %v4608_v43  ;;  %5465 = vrcp.f32 %v4758_v4  ;;  %v4756_v30 = vadd.f32 1.0, %v5460_v58 }
 0x45e   : > { %v5189_v49 = vpop.f32.mrf.mxu1 }
 0x45f   : > { %5467 = vpow2.f32 %v5070_v5  ;;  %v5068_v18 = vmul.f32 -1.442695, %v4609_v26  ;;  %v4620_v21 = vadd.f32 %v5189_v49, %v8012_v15 }
 0x460   : > { %5469 = vrcp.f32 %v4756_v30  ;;  %v4611_v9 = vpop.f32.mrf.mxu1 }
 0x461   : > { %5471 = vpow2.f32 %v5068_v18  ;;  %v5071_v47 = vmul.f32 -1.442695, %v4620_v21  ;;  %v4612_v2 = vadd.f32 %v8012_v15, %v4611_v9 }
 0x463   : > { %5473 = vpow2.f32 %v5071_v47  ;;  %v5069_v25 = vmul.f32 -1.442695, %v4612_v2 }
 0x465   : > { %5475 = vpow2.f32 %v5069_v25 }
 0x466   : > { %v5462_v6 = vpop.eup %5461 }
 0x467   : > { %v4853_v29 = vmul.f32 %v5462_v6, %v4601_v28 }
 0x468   : > { %v5464_v57 = vpop.eup %5463 }
 0x469   : > { %4885 = vst.msk [vmem:[%s8091_s16 + $0xb0] sm:$0xff] %vm317_vm0, %v4853_v29  ;;  %v4851_v50 = vmul.f32 %v5464_v57, %v4593_v12 }
 0x46a   : > { %v5466_v36 = vpop.eup %5465 }
 0x46b   : > { %4883 = vst.msk [vmem:[%s8091_s16 + $0xa0] sm:$0xff] %vm317_vm0, %v4851_v50  ;;  %v4854_v39 = vmul.f32 %v5466_v36, %v4604_v31 }
 0x46c   : > { %v5468_v1 = vpop.eup %5467 }
 0x46d   : > { %v5470_v35 = vpop.eup %5469  ;;  %v4761_v11 = vadd.f32 1.0, %v5468_v1  ;;  %4886 = vst.msk [vmem:[%s8091_s16 + $0xb8] sm:$0xff] %vm317_vm0, %v4854_v39 }
 0x46e   : > { %v5472_v52 = vpop.eup %5471  ;;  %v4852_v23 = vmul.f32 %v5470_v35, %v4596_v37  ;;  %v5192_v56 = vpop.f32.mrf.mxu1 }
 0x46f   : > { %5477 = vrcp.f32 %v4761_v11  ;;  %v4759_v41 = vadd.f32 1.0, %v5472_v52  ;;  %v4633_v32 = vadd.f32 %v5192_v56, %v8012_v15 }
 0x470   : > { %v5474_v10 = vpop.eup %5473  ;;  %4884 = vst.msk [vmem:[%s8091_s16 + $0xa8] sm:$0xff] %vm317_vm0, %v4852_v23  ;;  %v4624_v48 = vpop.f32.mrf.mxu1 }
 0x471   : > { %5479 = vrcp.f32 %v4759_v41  ;;  %v4762_v59 = vadd.f32 1.0, %v5474_v10  ;;  %v5074_v54 = vmul.f32 -1.442695, %v4633_v32  ;;  %v4625_v62 = vadd.f32 %v8012_v15, %v4624_v48 }
 0x472   : > { %v5476_v8 = vpop.eup %5475  ;;  %v5193_v38 = vpop.f32.mrf.mxu1 }
 0x473   : > { %5481 = vrcp.f32 %v4762_v59  ;;  %v4760_v63 = vadd.f32 1.0, %v5476_v8  ;;  %v5072_v14 = vmul.f32 -1.442695, %v4625_v62  ;;  %v4636_v34 = vadd.f32 %v5193_v38, %v8012_v15 }
 0x474   : > { %5483 = vpow2.f32 %v5074_v54  ;;  %v4627_v46 = vpop.f32.mrf.mxu1 }
 0x475   : > { %5485 = vrcp.f32 %v4760_v63  ;;  %v5075_v40 = vmul.f32 -1.442695, %v4636_v34  ;;  %v4628_v33 = vadd.f32 %v8012_v15, %v4627_v46 }
 0x476   : > { %5487 = vpow2.f32 %v5072_v14 }
 0x477   : > { %5489 = vpow2.f32 %v5075_v40  ;;  %v5073_v22 = vmul.f32 -1.442695, %v4628_v33 }
 0x479   : > { %5491 = vpow2.f32 %v5073_v22 }
 0x47c   : > { %v5478_v19 = vpop.eup %5477 }
 0x47d   : > { %v4857_v20 = vmul.f32 %v5478_v19, %v4617_v0 }
 0x47e   : > { %v5480_v51 = vpop.eup %5479 }
 0x47f   : > { %4889 = vst.msk [vmem:[%s8091_s16 + $0xd0] sm:$0xff] %vm317_vm0, %v4857_v20  ;;  %v4855_v45 = vmul.f32 %v5480_v51, %v4609_v26 }
 0x480   : > { %v5482_v28 = vpop.eup %5481 }
 0x481   : > { %v5484_v24 = vpop.eup %5483  ;;  %4887 = vst.msk [vmem:[%s8091_s16 + $0xc0] sm:$0xff] %vm317_vm0, %v4855_v45  ;;  %v4858_v55 = vmul.f32 %v5482_v28, %v4620_v21 }
 0x482   : > { %v5486_v12 = vpop.eup %5485  ;;  %v4765_v61 = vadd.f32 1.0, %v5484_v24 }
 0x483   : > { %v5488_v15 = vpop.eup %5487  ;;  %4890 = vst.msk [vmem:[%s8091_s16 + $0xd8] sm:$0xff] %vm317_vm0, %v4858_v55  ;;  %v4856_v42 = vmul.f32 %v5486_v12, %v4612_v2 }
 0x484   : > { %v5490_v31 = vpop.eup %5489  ;;  %5493 = vrcp.f32 %v4765_v61  ;;  %v4763_v27 = vadd.f32 1.0, %v5488_v15 }
 0x485   : > { %4888 = vst.msk [vmem:[%s8091_s16 + $0xc8] sm:$0xff] %vm317_vm0, %v4856_v42  ;;  %v4766_v7 = vadd.f32 1.0, %v5490_v31 }
 0x486   : > { %v5492_v37 = vpop.eup %5491  ;;  %5495 = vrcp.f32 %v4763_v27 }
 0x487   : > { %5497 = vrcp.f32 %v4766_v7  ;;  %v4764_v60 = vadd.f32 1.0, %v5492_v37 }
 0x489   : > { %5499 = vrcp.f32 %v4764_v60 }
 0x491   : > { %v5494_v44 = vpop.eup %5493 }
 0x492   : > { %v4861_v3 = vmul.f32 %v5494_v44, %v4633_v32 }
 0x493   : > { %v5496_v16 = vpop.eup %5495 }
 0x494   : > { %v5498_v13 = vpop.eup %5497  ;;  %4893 = vst.msk [vmem:[%s8091_s16 + $0xf0] sm:$0xff] %vm317_vm0, %v4861_v3  ;;  %v4859_v53 = vmul.f32 %v5496_v16, %v4625_v62 }
 0x495   : > { %v4862_v17 = vmul.f32 %v5498_v13, %v4636_v34 }
 0x496   : > { %v5500_v0 = vpop.eup %5499  ;;  %4891 = vst.msk [vmem:[%s8091_s16 + $0xe0] sm:$0xff] %vm317_vm0, %v4859_v53 }
 0x497   : > { %4894 = vst.msk [vmem:[%s8091_s16 + $0xf8] sm:$0xff] %vm317_vm0, %v4862_v17  ;;  %v4860_v4 = vmul.f32 %v5500_v0, %v4628_v33 }
 0x499   : > { %4892 = vst.msk [vmem:[%s8091_s16 + $0xe8] sm:$0xff] %vm317_vm0, %v4860_v4 }
 0x49a PF: > { %p15_p9 = scmp.ge.s32.totalorder %s5626_s23, 4   ;;  %s8382_s18 = smov %s5557_s19 }
 0x49b   : > { %s8383_s19 = smov %s5561_s20  ;;  %s8384_s20 = smov %s5636_s26 }
 0x49c   : > { %s8385_s21 = smov %s5626_s23  ;;  %17 = sbr.rel (!%p15_p9) target bundleno = 3 (0x3), region = 84 }
 0x4a1   :  { %4916 = vsyncpa [#allocation4], 1 }
 0x4a2   :  { %4918 = vsyncpa [#allocation4 + $0x1], 1 }

</bundles_post_ra>
